<compile_context>
chip_gen: v7x
topology: tpu7x:2x2x1
jax: 0.10.0
libtpu: 0.0.40
codegen_flags: <defaults>
</compile_context>

<pallas_src>
import jax
import jax.numpy as jnp
from jax import lax
from jax.experimental import pallas as pl
from jax.experimental.pallas import tpu as pltpu

# ----------------------------- problem sizes ---------------------------------
B, S, D, SE, DFF, NUM_LAYERS = 2, 16, 32, 8, 64, 3
THRESHOLD = 0.1

RAW_WEIGHT_NAMES = ("wq", "wk", "wv", "wo", "wq2", "wk2", "wv2", "wo2", "w1", "w2")


# ----------------------------- small utilities --------------------------------
def _round_up(x, m):
    return ((x + m - 1) // m) * m


def _pad_last(x, to):
    pad = to - x.shape[-1]
    if pad == 0:
        return x
    cfg = [(0, 0)] * (x.ndim - 1) + [(0, pad)]
    return jnp.pad(x, cfg)


def _row_block(rows, max_rows=1024):
    if rows <= max_rows:
        return rows
    blk = max_rows
    while rows % blk != 0 and blk > 8:
        blk //= 2
    return blk


def _vmem_limit_bytes():
    # Per-generation scoped-VMEM budget (review): ~100 MiB on v5e/v6e (128 MiB physical),
    # 48 MiB on v7x (64 MiB physical) and unknown generations.
    try:
        kind = jax.devices()[0].device_kind.lower()
    except Exception:
        kind = ""
    if "v5" in kind or "v6" in kind:
        return 100 * 1024 * 1024
    return 48 * 1024 * 1024


# ----------------------------- in-kernel helpers ------------------------------
def _softmax(x):
    # max-subtracted, so the denominator is always >= 1 (safe even with big-negative
    # additive masks); approx reciprocal runs on the otherwise-idle EUP slot.
    m = jnp.max(x, axis=-1, keepdims=True)
    e = jnp.exp(x - m)
    s = jnp.sum(e, axis=-1, keepdims=True)
    return e * pl.reciprocal(s, approx=True)


def _mxu(a, b):
    # bf16 MXU operands, f32 accumulation.  Activations stay f32 in-vreg elsewhere
    # (v5e-safe; bf16 in-vreg activations would be a v6e/v7x-only refinement).
    return jnp.dot(a.astype(jnp.bfloat16), b.astype(jnp.bfloat16),
                   preferred_element_type=jnp.float32)


def _bmm_nt(a, b):
    # (B, M, K) x (B, N, K) -> (B, M, N); both operands contract on the lane axis
    # (same pattern as the reference flash kernel).
    return jnp.einsum("bmk,bnk->bmn", a.astype(jnp.bfloat16), b.astype(jnp.bfloat16),
                      preferred_element_type=jnp.float32)


def _bmm(a, b):
    # (B, M, N) x (B, N, K) -> (B, M, K)
    return jnp.einsum("bmn,bnk->bmk", a.astype(jnp.bfloat16), b.astype(jnp.bfloat16),
                      preferred_element_type=jnp.float32)


# ----------------------------- fused layer-stack kernel ------------------------
def _make_fused_layers_kernel(*, d_true):
    inv_d = 1.0 / float(d_true)
    attn_scale = 1.0 / float(d_true) ** 0.5

    def _layernorm(x, eps=1e-6):
        # Sums run over the padded lane axis; padded lanes are exactly zero, so dividing
        # by the TRUE feature count reproduces the unpadded mean / variance.
        s1 = jnp.sum(x, axis=-1, keepdims=True)
        mu = s1 * inv_d
        s2 = jnp.sum(x * x, axis=-1, keepdims=True)
        var = s2 * inv_d - mu * mu
        return (x - mu) * lax.rsqrt(var + eps)

    def kernel(x_ref, enc_ref, amask_ref, emask_ref, tmod_ref,
               wqkv_ref, wo_ref, wq2_ref, wkv2_ref, wo2_ref, w1_ref, w2_ref,
               out_ref, res_ref):
        l = pl.program_id(0)
        n_l = pl.num_programs(0)

        # hidden states are carried across the layer axis directly in the resident
        # output block (constant index_map => single HBM writeback at the end).
        @pl.when(l == 0)
        def _():
            out_ref[...] = x_ref[...]

        x = out_ref[...]                                # (B, S, DP)  f32
        b, s, dp = x.shape
        enc = enc_ref[...]                              # (B, SE, DP) bf16 (pre-cast)
        se = enc.shape[1]
        amask = amask_ref[...]                          # (B, 1, S)   additive bias
        emask = emask_ref[...]                          # (B, 1, SE)  additive bias
        tmod = tmod_ref[...]                            # (B, 6, DP)  adaLN modulation

        shift_msa, scale_msa, gate_msa = tmod[:, 0:1, :], tmod[:, 1:2, :], tmod[:, 2:3, :]
        shift_mlp, scale_mlp, gate_mlp = tmod[:, 3:4, :], tmod[:, 4:5, :], tmod[:, 5:6, :]

        wqkv = wqkv_ref[0]
        wo = wo_ref[0]
        wq2 = wq2_ref[0]
        wkv2 = wkv2_ref[0]
        wo2 = wo2_ref[0]
        w1 = w1_ref[0]
        w2 = w2_ref[0]

        # --- self-attention (adaLN modulated, fused QKV projection on B*S rows) ---
        h = _layernorm(x) * (1.0 + scale_msa) + shift_msa
        qkv = _mxu(h.reshape(b * s, dp), wqkv)          # (B*S, 3*DP)
        q = qkv[:, :dp].reshape(b, s, dp)
        k = qkv[:, dp:2 * dp].reshape(b, s, dp)
        v = qkv[:, 2 * dp:].reshape(b, s, dp)
        scores = _bmm_nt(q, k) * attn_scale + amask     # (B, S, S)
        attn = _bmm(_softmax(scores), v)                # (B, S, DP)
        attn = _mxu(attn.reshape(b * s, dp), wo).reshape(b, s, dp)
        x = x + gate_msa * attn

        # --- cross-attention against encoder hidden states (fused K/V projection) ---
        q2 = _mxu(x.reshape(b * s, dp), wq2).reshape(b, s, dp)
        kv2 = _mxu(enc.reshape(b * se, dp), wkv2)       # (B*SE, 2*DP)
        k2 = kv2[:, :dp].reshape(b, se, dp)
        v2 = kv2[:, dp:].reshape(b, se, dp)
        scores2 = _bmm_nt(q2, k2) * attn_scale + emask  # (B, S, SE)
        cross = _bmm(_softmax(scores2), v2)             # (B, S, DP)
        cross = _mxu(cross.reshape(b * s, dp), wo2).reshape(b, s, dp)
        x = x + cross

        # --- feed-forward ---
        # TODO(synk): SANA's GLUMBConv FFN (depthwise conv + GLU over post_patch H/W) is
        # simplified to a dense GELU MLP; height/width unused here.
        h2 = _layernorm(x) * (1.0 + scale_mlp) + shift_mlp
        ff = _mxu(h2.reshape(b * s, dp), w1)            # (B*S, DFFP)
        ff = jax.nn.gelu(ff, approximate=True)
        ff = _mxu(ff, w2).reshape(b, s, dp)
        x = x + gate_mlp * ff

        out_ref[...] = x

        @pl.when(l == n_l - 1)
        def _():
            # fused residual: final hidden states minus the (still-resident) kernel input.
            res_ref[...] = x - x_ref[...]

    return kernel


def run_fused_layers(hs_p, enc_p, amask, emask, tmod_p, w, *, d_true):
    """One pallas_call over grid=(n_layers,). All shapes already lane-padded to DP.

    Returns (hidden_states_padded, residual_padded), both f32 (B, S, DP)."""
    b, s, dp = hs_p.shape
    se = enc_p.shape[1]
    n_layers = w["wqkv"].shape[0]
    dffp = w["w1"].shape[-1]

    kernel = _make_fused_layers_kernel(d_true=d_true)

    act_map = lambda l: (0, 0, 0)   # constant across layers -> VMEM-resident block
    w_map = lambda l: (l, 0, 0)     # new weight block per layer (streamed once)

    in_specs = [
        pl.BlockSpec((b, s, dp), act_map),        # hidden_states (kept for residual)
        pl.BlockSpec((b, se, dp), act_map),       # encoder hidden states (bf16, resident)
        pl.BlockSpec((b, 1, s), act_map),         # attention mask (additive bias)
        pl.BlockSpec((b, 1, se), act_map),        # encoder attention mask (additive bias)
        pl.BlockSpec((b, 6, dp), act_map),        # adaLN modulation
        pl.BlockSpec((1, dp, 3 * dp), w_map),     # fused QKV
        pl.BlockSpec((1, dp, dp), w_map),         # attn out proj
        pl.BlockSpec((1, dp, dp), w_map),         # cross-attn Q
        pl.BlockSpec((1, dp, 2 * dp), w_map),     # fused cross-attn K/V
        pl.BlockSpec((1, dp, dp), w_map),         # cross-attn out proj
        pl.BlockSpec((1, dp, dffp), w_map),       # FFN in
        pl.BlockSpec((1, dffp, dp), w_map),       # FFN out
    ]
    out_specs = [pl.BlockSpec((b, s, dp), act_map),
                 pl.BlockSpec((b, s, dp), act_map)]
    out_shape = [jax.ShapeDtypeStruct((b, s, dp), jnp.float32),
                 jax.ShapeDtypeStruct((b, s, dp), jnp.float32)]

    hs_out, residual = pl.pallas_call(
        kernel,
        grid=(n_layers,),
        in_specs=in_specs,
        out_specs=out_specs,
        out_shape=out_shape,
        compiler_params=pltpu.CompilerParams(
            dimension_semantics=("arbitrary",),
            vmem_limit_bytes=_vmem_limit_bytes(),
        ),
    )(hs_p, enc_p, amask, emask, tmod_p,
      w["wqkv"], w["wo"], w["wq2"], w["wkv2"], w["wo2"], w["w1"], w["w2"])
    return hs_out, residual


# ----------------------------- helper kernels ----------------------------------
def _add_kernel(a_ref, b_ref, o_ref):
    o_ref[...] = a_ref[...] + b_ref[...]


def _rel_l1_kernel(t1_ref, t2_ref, o_ref, dacc, bacc):
    i = pl.program_id(0)

    @pl.when(i == 0)
    def _():
        dacc[...] = jnp.zeros_like(dacc)
        bacc[...] = jnp.zeros_like(bacc)

    t1 = t1_ref[...]
    dacc[...] += jnp.sum(jnp.abs(t1 - t2_ref[...]))
    bacc[...] += jnp.sum(jnp.abs(t1))
    # mean|t1 - t2| / mean|t1| == sum/sum (same element count); eps guards a zero residual.
    o_ref[...] = dacc[...] / (bacc[...] + 1e-12)


def add_residual(a, b):
    """In-place apply of the cached residual on lane-dense (rows, DP) tiles."""
    shape = a.shape
    dp = shape[-1]
    rows = a.size // dp
    a2 = a.reshape(rows, dp)
    b2 = b.reshape(rows, dp)
    tr = _row_block(rows)
    out = pl.pallas_call(
        _add_kernel,
        grid=(rows // tr,),
        in_specs=[pl.BlockSpec((tr, dp), lambda i: (i, 0)),
                  pl.BlockSpec((tr, dp), lambda i: (i, 0))],
        out_specs=pl.BlockSpec((tr, dp), lambda i: (i, 0)),
        out_shape=jax.ShapeDtypeStruct((rows, dp), a.dtype),
        input_output_aliases={0: 0},
    )(a2, b2)
    return out.reshape(shape)


def relative_l1_distance(t1, t2):
    """mean(|t1 - t2|) / mean(|t1|) as a device scalar, tiled over lane-dense rows."""
    dp = t1.shape[-1]
    rows = t1.size // dp
    t1_2 = t1.reshape(rows, dp)
    t2_2 = t2.reshape(rows, dp)
    tr = _row_block(rows)
    out = pl.pallas_call(
        _rel_l1_kernel,
        grid=(rows // tr,),
        in_specs=[pl.BlockSpec((tr, dp), lambda i: (i, 0)),
                  pl.BlockSpec((tr, dp), lambda i: (i, 0))],
        out_specs=pl.BlockSpec((1, 1), lambda i: (0, 0)),
        out_shape=jax.ShapeDtypeStruct((1, 1), jnp.float32),
        scratch_shapes=[pltpu.VMEM((1, 1), jnp.float32),
                        pltpu.VMEM((1, 1), jnp.float32)],
    )(t1_2, t2_2)
    return out[0, 0]   # stays on device; no host sync


# ----------------------------- weight packing ----------------------------------
def stack_and_fuse_weights(layer_weights, dp, dffp):
    """Stack per-layer dicts into (L, ...) arrays, zero-pad to lane-dense dims,
    fuse QKV / cross-KV, cast to bf16 (MXU operand dtype)."""
    def p2(w, r, c):
        return jnp.pad(w, ((0, r - w.shape[0]), (0, c - w.shape[1])))

    fused = {
        "wqkv": jnp.stack([jnp.concatenate([p2(w["wq"], dp, dp), p2(w["wk"], dp, dp),
                                            p2(w["wv"], dp, dp)], axis=-1)
                           for w in layer_weights]),
        "wo":   jnp.stack([p2(w["wo"], dp, dp) for w in layer_weights]),
        "wq2":  jnp.stack([p2(w["wq2"], dp, dp) for w in layer_weights]),
        "wkv2": jnp.stack([jnp.concatenate([p2(w["wk2"], dp, dp), p2(w["wv2"], dp, dp)],
                                           axis=-1)
                           for w in layer_weights]),
        "wo2":  jnp.stack([p2(w["wo2"], dp, dp) for w in layer_weights]),
        "w1":   jnp.stack([p2(w["w1"], dp, dffp) for w in layer_weights]),
        "w2":   jnp.stack([p2(w["w2"], dffp, dp) for w in layer_weights]),
    }
    return {k: v.astype(jnp.bfloat16) for k, v in fused.items()}


# ----------------------------- caching wrapper ---------------------------------
class CacheContext:
    def __init__(self):
        self.buffers = {}

    def get_buffer(self, name):
        return self.buffers.get(name)

    def set_buffer(self, name, buf):
        self.buffers[name] = buf


class SanaCachedTransformerBlocks:
    """JAX/Pallas port of nunchaku.caching.utils.SanaCachedTransformerBlocks."""

    def __init__(self, *, layer_weights, residual_diff_threshold, verbose=False):
        self.residual_diff_threshold = float(residual_diff_threshold)
        self.verbose = verbose
        self.cache = CacheContext()
        self.num_layers = len(layer_weights)
        self.d = layer_weights[0]["wq"].shape[0]
        self.dp = _round_up(self.d, 128)
        dff = layer_weights[0]["w1"].shape[1]
        self.dffp = _round_up(dff, 128)

        w_all = stack_and_fuse_weights(layer_weights, self.dp, self.dffp)
        self.w_all = w_all
        self.w_first = {k: v[:1] for k, v in w_all.items()}   # layer 0
        self.w_rest = {k: v[1:] for k, v in w_all.items()}    # layers 1..N-1

        d_true = self.d
        dp = self.dp
        thr = self.residual_diff_threshold
        n_layers = self.num_layers

        def prepare(hs, enc, tmod):
            hs_p = _pad_last(hs.astype(jnp.float32), dp)
            enc_p = _pad_last(enc, dp).astype(jnp.bfloat16)   # single wrapper-side cast
            tmod_p = _pad_last(tmod.astype(jnp.float32), dp)
            return hs_p, enc_p, tmod_p

        def run_rest(hs1_p, enc_p, amask, emask, tmod_p, w_rest):
            if n_layers > 1:
                return run_fused_layers(hs1_p, enc_p, amask, emask, tmod_p, w_rest,
                                        d_true=d_true)
            return hs1_p, jnp.zeros_like(hs1_p)

        def full_forward(hs, enc, amask, emask, tmod, w_all):
            # caching disabled (threshold <= 0 or batch > 2): run the full stack.
            hs_p, enc_p, tmod_p = prepare(hs, enc, tmod)
            out_p, _ = run_fused_layers(hs_p, enc_p, amask, emask, tmod_p, w_all,
                                        d_true=d_true)
            return out_p[..., :d_true]

        def first_forward(hs, enc, amask, emask, tmod, w_first, w_rest):
            # no cache yet -> forced miss: layer 0 (+ first residual), then layers 1..N-1.
            hs_p, enc_p, tmod_p = prepare(hs, enc, tmod)
            hs1_p, first_res = run_fused_layers(hs_p, enc_p, amask, emask, tmod_p, w_first,
                                                d_true=d_true)
            hs_final_p, multi_res = run_rest(hs1_p, enc_p, amask, emask, tmod_p, w_rest)
            return hs_final_p[..., :d_true], first_res, multi_res

        def cached_forward(hs, enc, amask, emask, tmod, w_first, w_rest,
                           prev_first, prev_multi):
            hs_p, enc_p, tmod_p = prepare(hs, enc, tmod)
            hs1_p, first_res = run_fused_layers(hs_p, enc_p, amask, emask, tmod_p, w_first,
                                                d_true=d_true)
            diff = relative_l1_distance(prev_first, first_res)   # device scalar
            can_use = diff < thr

            def hit(_):
                return add_residual(hs1_p, prev_multi), prev_first, prev_multi

            def miss(_):
                hs_final_p, multi_res = run_rest(hs1_p, enc_p, amask, emask, tmod_p, w_rest)
                return hs_final_p, first_res, multi_res

            hs_final_p, new_first, new_multi = lax.cond(can_use, hit, miss, None)
            return hs_final_p[..., :d_true], new_first, new_multi, can_use

        self._full_forward = jax.jit(full_forward)
        self._first_forward = jax.jit(first_forward)
        self._cached_forward = jax.jit(cached_forward)

    def forward(self, hidden_states, attention_mask, encoder_hidden_states,
                encoder_attention_mask=None, timestep=None,
                post_patch_height=None, post_patch_width=None):
        b, s, d = hidden_states.shape
        se = encoder_hidden_states.shape[1]
        if attention_mask is None:
            attention_mask = jnp.zeros((b, 1, s), jnp.float32)
        if encoder_attention_mask is None:
            encoder_attention_mask = jnp.zeros((b, 1, se), jnp.float32)
        if timestep is None:
            timestep = jnp.zeros((b, 6, d), jnp.float32)
        tmod = timestep  # (B, 6, D) adaLN modulation (computed in glue)

        if self.residual_diff_threshold <= 0.0 or b > 2:
            if b > 2:
                print("Batch size > 2 (for SANA CFG) currently not supported")
            return self._full_forward(hidden_states, encoder_hidden_states,
                                      attention_mask, encoder_attention_mask,
                                      tmod, self.w_all)

        prev_first = self.cache.get_buffer("first_multi_hidden_states_residual")
        prev_multi = self.cache.get_buffer("multi_hidden_states_residual")

        if prev_first is None or prev_multi is None:
            # Cache empty (static, host-known) -> forced miss path.
            hs_final, first_res, multi_res = self._first_forward(
                hidden_states, encoder_hidden_states, attention_mask,
                encoder_attention_mask, tmod, self.w_first, self.w_rest)
            if self.verbose:
                print("Cache miss!!!")
            self.cache.set_buffer("first_multi_hidden_states_residual", first_res)
            self.cache.set_buffer("multi_hidden_states_residual", multi_res)
            return hs_final

        # Cache present: decision stays on device (lax.cond); no host sync.
        hs_final, new_first, new_multi, used_cache = self._cached_forward(
            hidden_states, encoder_hidden_states, attention_mask,
            encoder_attention_mask, tmod, self.w_first, self.w_rest,
            prev_first, prev_multi)
        if self.verbose:
            # single-bool device->host read, only in verbose mode (mirrors torch .item()).
            print("Cache hit!!!" if bool(used_cache) else "Cache miss!!!")
        self.cache.set_buffer("first_multi_hidden_states_residual", new_first)
        self.cache.set_buffer("multi_hidden_states_residual", new_multi)
        return hs_final


# ----------------------------- pure-JAX reference -------------------------------
def ref_forward_stack(hs, enc, amask, emask, tmod, layer_weights):
    """Unpadded jnp reference mirroring the kernel math (bf16 matmul operands, f32 accum)."""
    x = hs.astype(jnp.float32)
    d = x.shape[-1]
    sc = 1.0 / float(d) ** 0.5
    enc = enc.astype(jnp.float32)

    def ln(t, eps=1e-6):
        mu = jnp.mean(t, -1, keepdims=True)
        var = jnp.mean(t * t, -1, keepdims=True) - mu * mu
        return (t - mu) * lax.rsqrt(var + eps)

    def mm(a, b):
        return jnp.einsum("bsk,kn->bsn", a.astype(jnp.bfloat16), b.astype(jnp.bfloat16),
                          preferred_element_type=jnp.float32)

    def att(q, k, v, bias):
        s = jnp.einsum("bqd,bkd->bqk", q.astype(jnp.bfloat16), k.astype(jnp.bfloat16),
                       preferred_element_type=jnp.float32) * sc + bias
        p = jax.nn.softmax(s, axis=-1)
        return jnp.einsum("bqk,bkd->bqd", p.astype(jnp.bfloat16), v.astype(jnp.bfloat16),
                          preferred_element_type=jnp.float32)

    shift_msa, scale_msa, gate_msa = tmod[:, 0:1, :], tmod[:, 1:2, :], tmod[:, 2:3, :]
    shift_mlp, scale_mlp, gate_mlp = tmod[:, 3:4, :], tmod[:, 4:5, :], tmod[:, 5:6, :]

    for w in layer_weights:
        h = ln(x) * (1.0 + scale_msa) + shift_msa
        q, k, v = mm(h, w["wq"]), mm(h, w["wk"]), mm(h, w["wv"])
        a = mm(att(q, k, v, amask), w["wo"])
        x = x + gate_msa * a
        q2, k2, v2 = mm(x, w["wq2"]), mm(enc, w["wk2"]), mm(enc, w["wv2"])
        c = mm(att(q2, k2, v2, emask), w["wo2"])
        x = x + c
        h2 = ln(x) * (1.0 + scale_mlp) + shift_mlp
        f = mm(h2, w["w1"])
        f = jax.nn.gelu(f, approximate=True)
        f = mm(f, w["w2"])
        x = x + gate_mlp * f
    return x


# ----------------------------- deterministic params ----------------------------
def init_layer_weights(key, d, dff):
    shapes = {
        "wq": (d, d), "wk": (d, d), "wv": (d, d), "wo": (d, d),
        "wq2": (d, d), "wk2": (d, d), "wv2": (d, d), "wo2": (d, d),
        "w1": (d, dff), "w2": (dff, d),
    }
    w = {}
    for i, name in enumerate(RAW_WEIGHT_NAMES):
        w[name] = 0.05 * jax.random.normal(jax.random.fold_in(key, i),
                                           shapes[name], jnp.float32)
    return w


# ----------------------------- demo ---------------------------------------------
if __name__ == "__main__":
    key = jax.random.PRNGKey(0)
    k_x, k_enc, k_t, k_tab, k_w = jax.random.split(key, 5)

    hidden_states = jax.random.normal(k_x, (B, S, D), jnp.float32)
    encoder_hidden_states = jax.random.normal(k_enc, (B, SE, D), jnp.float32)
    attention_mask = jnp.zeros((B, 1, S), jnp.float32)           # additive bias (all valid)
    encoder_attention_mask = jnp.zeros((B, 1, SE), jnp.float32)  # additive bias (all valid)
    timestep = jax.random.uniform(k_t, (B,), jnp.float32)

    # adaLN modulation glue: scale_shift_table + timestep projection -> (B, 6, D)
    scale_shift_table = 0.02 * jax.random.normal(k_tab, (6, D), jnp.float32)
    freqs = jnp.linspace(0.0, 4.0, 6 * D, dtype=jnp.float32).reshape(1, 6, D)
    tmod = scale_shift_table[None] + 0.1 * jnp.sin(timestep[:, None, None] * freqs)

    layer_weights = [init_layer_weights(jax.random.fold_in(k_w, li), D, DFF)
                     for li in range(NUM_LAYERS)]

    module = SanaCachedTransformerBlocks(
        layer_weights=layer_weights,
        residual_diff_threshold=THRESHOLD,
        verbose=False,
    )

    # First call: cache miss -> runs layer 0, then layers 1..N-1, fills the cache.
    out_miss = module.forward(hidden_states, attention_mask, encoder_hidden_states,
                              encoder_attention_mask=encoder_attention_mask,
                              timestep=tmod,
                              post_patch_height=4, post_patch_width=4)
    jax.block_until_ready(out_miss)

    # Second call, identical inputs: rel-L1 diff == 0 -> cache hit -> residual applied.
    out_hit = module.forward(hidden_states, attention_mask, encoder_hidden_states,
                             encoder_attention_mask=encoder_attention_mask,
                             timestep=tmod,
                             post_patch_height=4, post_patch_width=4)
    jax.block_until_ready(out_hit)

    # Pure-JAX reference (loose tolerance: approx softmax reciprocal + bf16 MXU operands).
    ref = ref_forward_stack(hidden_states, encoder_hidden_states, attention_mask,
                            encoder_attention_mask, tmod, layer_weights)

    assert out_miss.shape == (B, S, D)
    assert bool(jnp.allclose(out_miss, out_hit, atol=1e-5)), "cache-hit path mismatch"
    assert float(jnp.max(jnp.abs(out_miss - ref))) < 2e-2, "mismatch vs jnp reference"

    print("KERNEL_OK")
</pallas_src>

<mosaic_0001>
module attributes {stable_mosaic.version = 11 : i64} {
  func.func @kernel(%arg0: i32, %arg1: memref<2x16x128xf32, #tpu.memory_space<vmem>>, %arg2: memref<2x8x128xbf16, #tpu.memory_space<vmem>>, %arg3: memref<2x1x16xf32, #tpu.memory_space<vmem>>, %arg4: memref<2x1x8xf32, #tpu.memory_space<vmem>>, %arg5: memref<2x6x128xf32, #tpu.memory_space<vmem>>, %arg6: memref<1x128x384xbf16, #tpu.memory_space<vmem>>, %arg7: memref<1x128x128xbf16, #tpu.memory_space<vmem>>, %arg8: memref<1x128x128xbf16, #tpu.memory_space<vmem>>, %arg9: memref<1x128x256xbf16, #tpu.memory_space<vmem>>, %arg10: memref<1x128x128xbf16, #tpu.memory_space<vmem>>, %arg11: memref<1x128x128xbf16, #tpu.memory_space<vmem>>, %arg12: memref<1x128x128xbf16, #tpu.memory_space<vmem>>, %arg13: memref<2x16x128xf32, #tpu.memory_space<vmem>>, %arg14: memref<2x16x128xf32, #tpu.memory_space<vmem>>) attributes {dimension_semantics = [#tpu.dimension_semantics<arbitrary>], iteration_bounds = array<i64: 2>, scalar_prefetch = 0 : i64, scratch_operands = 0 : i64, tpu.core_type = #tpu.core_type<tc>, window_params = [{pipeline_mode = #tpu.pipeline_mode<synchronous>, transform_indices = @transform_0, window_bounds = array<i64: 2, 16, 128>}, {pipeline_mode = #tpu.pipeline_mode<synchronous>, transform_indices = @transform_1, window_bounds = array<i64: 2, 8, 128>}, {pipeline_mode = #tpu.pipeline_mode<synchronous>, transform_indices = @transform_2, window_bounds = array<i64: 2, 1, 16>}, {pipeline_mode = #tpu.pipeline_mode<synchronous>, transform_indices = @transform_3, window_bounds = array<i64: 2, 1, 8>}, {pipeline_mode = #tpu.pipeline_mode<synchronous>, transform_indices = @transform_4, window_bounds = array<i64: 2, 6, 128>}, {transform_indices = @transform_5, window_bounds = array<i64: 1, 128, 384>}, {transform_indices = @transform_6, window_bounds = array<i64: 1, 128, 128>}, {transform_indices = @transform_7, window_bounds = array<i64: 1, 128, 128>}, {transform_indices = @transform_8, window_bounds = array<i64: 1, 128, 256>}, {transform_indices = @transform_9, window_bounds = array<i64: 1, 128, 128>}, {transform_indices = @transform_10, window_bounds = array<i64: 1, 128, 128>}, {transform_indices = @transform_11, window_bounds = array<i64: 1, 128, 128>}, {pipeline_mode = #tpu.pipeline_mode<synchronous>, transform_indices = @transform_12, window_bounds = array<i64: 2, 16, 128>}, {pipeline_mode = #tpu.pipeline_mode<synchronous>, transform_indices = @transform_13, window_bounds = array<i64: 2, 16, 128>}]} {
    %c0_i32 = arith.constant 0 : i32
    %0 = arith.cmpi eq, %arg0, %c0_i32 : i32
    %1 = arith.extui %0 : i1 to i32
    %c0_i32_0 = arith.constant 0 : i32
    %2 = arith.cmpi ne, %1, %c0_i32_0 : i32
    scf.if %2 {
      %c0_72 = arith.constant 0 : index
      %c0_73 = arith.constant 0 : index
      %c0_74 = arith.constant 0 : index
      %173 = vector.load %arg1[%c0_72, %c0_73, %c0_74] : memref<2x16x128xf32, #tpu.memory_space<vmem>>, vector<2x16x128xf32>
      %c0_75 = arith.constant 0 : index
      %c0_76 = arith.constant 0 : index
      %c0_77 = arith.constant 0 : index
      %174 = vector.load %arg13[%c0_75, %c0_76, %c0_77] : memref<2x16x128xf32, #tpu.memory_space<vmem>>, vector<2x16x128xf32>
      tpu.vector_store %arg13[%c0_75, %c0_76, %c0_77], %173 {strides = array<i32>} : memref<2x16x128xf32, #tpu.memory_space<vmem>>, vector<2x16x128xf32>,
    } else {
    }
    %c0 = arith.constant 0 : index
    %c0_1 = arith.constant 0 : index
    %c0_2 = arith.constant 0 : index
    %3 = vector.load %arg13[%c0, %c0_1, %c0_2] : memref<2x16x128xf32, #tpu.memory_space<vmem>>, vector<2x16x128xf32>
    %c0_3 = arith.constant 0 : index
    %c0_4 = arith.constant 0 : index
    %c0_5 = arith.constant 0 : index
    %4 = vector.load %arg2[%c0_3, %c0_4, %c0_5] : memref<2x8x128xbf16, #tpu.memory_space<vmem>>, vector<2x8x128xbf16>
    %c0_6 = arith.constant 0 : index
    %c0_7 = arith.constant 0 : index
    %c0_8 = arith.constant 0 : index
    %5 = vector.load %arg3[%c0_6, %c0_7, %c0_8] : memref<2x1x16xf32, #tpu.memory_space<vmem>>, vector<2x1x16xf32>
    %c0_9 = arith.constant 0 : index
    %c0_10 = arith.constant 0 : index
    %c0_11 = arith.constant 0 : index
    %6 = vector.load %arg4[%c0_9, %c0_10, %c0_11] : memref<2x1x8xf32, #tpu.memory_space<vmem>>, vector<2x1x8xf32>
    %c0_12 = arith.constant 0 : index
    %c0_13 = arith.constant 0 : index
    %c0_14 = arith.constant 0 : index
    %7 = vector.load %arg5[%c0_12, %c0_13, %c0_14] : memref<2x6x128xf32, #tpu.memory_space<vmem>>, vector<2x6x128xf32>
    %8 = vector.extract_strided_slice %7 {offsets = [0, 0, 0], sizes = [2, 1, 128], strides = [1, 1, 1]} : vector<2x6x128xf32> to vector<2x1x128xf32>
    %9 = vector.extract_strided_slice %7 {offsets = [0, 1, 0], sizes = [2, 1, 128], strides = [1, 1, 1]} : vector<2x6x128xf32> to vector<2x1x128xf32>
    %10 = vector.extract_strided_slice %7 {offsets = [0, 2, 0], sizes = [2, 1, 128], strides = [1, 1, 1]} : vector<2x6x128xf32> to vector<2x1x128xf32>
    %11 = vector.extract_strided_slice %7 {offsets = [0, 3, 0], sizes = [2, 1, 128], strides = [1, 1, 1]} : vector<2x6x128xf32> to vector<2x1x128xf32>
    %12 = vector.extract_strided_slice %7 {offsets = [0, 4, 0], sizes = [2, 1, 128], strides = [1, 1, 1]} : vector<2x6x128xf32> to vector<2x1x128xf32>
    %13 = vector.extract_strided_slice %7 {offsets = [0, 5, 0], sizes = [2, 1, 128], strides = [1, 1, 1]} : vector<2x6x128xf32> to vector<2x1x128xf32>
    %c0_15 = arith.constant 0 : index
    %c0_16 = arith.constant 0 : index
    %c0_17 = arith.constant 0 : index
    %14 = vector.load %arg6[%c0_15, %c0_16, %c0_17] : memref<1x128x384xbf16, #tpu.memory_space<vmem>>, vector<1x128x384xbf16>
    %15 = vector.shape_cast %14 : vector<1x128x384xbf16> to vector<128x384xbf16>
    %c0_18 = arith.constant 0 : index
    %c0_19 = arith.constant 0 : index
    %c0_20 = arith.constant 0 : index
    %16 = vector.load %arg7[%c0_18, %c0_19, %c0_20] : memref<1x128x128xbf16, #tpu.memory_space<vmem>>, vector<1x128x128xbf16>
    %17 = vector.shape_cast %16 : vector<1x128x128xbf16> to vector<128x128xbf16>
    %c0_21 = arith.constant 0 : index
    %c0_22 = arith.constant 0 : index
    %c0_23 = arith.constant 0 : index
    %18 = vector.load %arg8[%c0_21, %c0_22, %c0_23] : memref<1x128x128xbf16, #tpu.memory_space<vmem>>, vector<1x128x128xbf16>
    %19 = vector.shape_cast %18 : vector<1x128x128xbf16> to vector<128x128xbf16>
    %c0_24 = arith.constant 0 : index
    %c0_25 = arith.constant 0 : index
    %c0_26 = arith.constant 0 : index
    %20 = vector.load %arg9[%c0_24, %c0_25, %c0_26] : memref<1x128x256xbf16, #tpu.memory_space<vmem>>, vector<1x128x256xbf16>
    %21 = vector.shape_cast %20 : vector<1x128x256xbf16> to vector<128x256xbf16>
    %c0_27 = arith.constant 0 : index
    %c0_28 = arith.constant 0 : index
    %c0_29 = arith.constant 0 : index
    %22 = vector.load %arg10[%c0_27, %c0_28, %c0_29] : memref<1x128x128xbf16, #tpu.memory_space<vmem>>, vector<1x128x128xbf16>
    %23 = vector.shape_cast %22 : vector<1x128x128xbf16> to vector<128x128xbf16>
    %c0_30 = arith.constant 0 : index
    %c0_31 = arith.constant 0 : index
    %c0_32 = arith.constant 0 : index
    %24 = vector.load %arg11[%c0_30, %c0_31, %c0_32] : memref<1x128x128xbf16, #tpu.memory_space<vmem>>, vector<1x128x128xbf16>
    %25 = vector.shape_cast %24 : vector<1x128x128xbf16> to vector<128x128xbf16>
    %c0_33 = arith.constant 0 : index
    %c0_34 = arith.constant 0 : index
    %c0_35 = arith.constant 0 : index
    %26 = vector.load %arg12[%c0_33, %c0_34, %c0_35] : memref<1x128x128xbf16, #tpu.memory_space<vmem>>, vector<1x128x128xbf16>
    %27 = vector.shape_cast %26 : vector<1x128x128xbf16> to vector<128x128xbf16>
    %cst = arith.constant dense<0.000000e+00> : vector<2x16xf32>
    %28 = vector.multi_reduction <add>, %3, %cst [2] : vector<2x16x128xf32> to vector<2x16xf32>
    %29 = vector.shape_cast %28 : vector<2x16xf32> to vector<2x16x1xf32>
    %cst_36 = arith.constant 3.125000e-02 : f32
    %30 = vector.broadcast %cst_36 : f32 to vector<2x16x1xf32>
    %31 = arith.mulf %29, %30 : vector<2x16x1xf32>
    %32 = arith.mulf %3, %3 : vector<2x16x128xf32>
    %cst_37 = arith.constant dense<0.000000e+00> : vector<2x16xf32>
    %33 = vector.multi_reduction <add>, %32, %cst_37 [2] : vector<2x16x128xf32> to vector<2x16xf32>
    %34 = vector.shape_cast %33 : vector<2x16xf32> to vector<2x16x1xf32>
    %cst_38 = arith.constant 3.125000e-02 : f32
    %35 = vector.broadcast %cst_38 : f32 to vector<2x16x1xf32>
    %36 = arith.mulf %34, %35 : vector<2x16x1xf32>
    %37 = arith.mulf %31, %31 : vector<2x16x1xf32>
    %38 = arith.subf %36, %37 : vector<2x16x1xf32>
    %39 = vector.broadcast %31 : vector<2x16x1xf32> to vector<2x16x128xf32>
    %40 = arith.subf %3, %39 : vector<2x16x128xf32>
    %cst_39 = arith.constant 9.99999997E-7 : f32
    %41 = vector.broadcast %cst_39 : f32 to vector<2x16x1xf32>
    %42 = arith.addf %38, %41 : vector<2x16x1xf32>
    %43 = math.rsqrt %42 : vector<2x16x1xf32>
    %44 = vector.broadcast %43 : vector<2x16x1xf32> to vector<2x16x128xf32>
    %45 = arith.mulf %40, %44 : vector<2x16x128xf32>
    %cst_40 = arith.constant 1.000000e+00 : f32
    %46 = vector.broadcast %cst_40 : f32 to vector<2x1x128xf32>
    %47 = arith.addf %46, %9 : vector<2x1x128xf32>
    %48 = vector.broadcast %47 : vector<2x1x128xf32> to vector<2x16x128xf32>
    %49 = arith.mulf %45, %48 : vector<2x16x128xf32>
    %50 = vector.broadcast %8 : vector<2x1x128xf32> to vector<2x16x128xf32>
    %51 = arith.addf %49, %50 : vector<2x16x128xf32>
    %52 = vector.shape_cast %51 : vector<2x16x128xf32> to vector<32x128xf32>
    %53 = arith.truncf %52 : vector<32x128xf32> to vector<32x128xbf16>
    %cst_41 = arith.constant dense<0.000000e+00> : vector<32x384xf32>
    %54 = tpu.matmul %53, %15, %cst_41 {dimension_numbers = #tpu.dot_dimension_numbers<[1], [0], [0], [1], [0, 0, 1, 1], [], []>} : vector<32x128xbf16>, vector<128x384xbf16>, vector<32x384xf32> -> vector<32x384xf32>
    %55 = vector.extract_strided_slice %54 {offsets = [0, 0], sizes = [32, 128], strides = [1, 1]} : vector<32x384xf32> to vector<32x128xf32>
    %56 = vector.shape_cast %55 : vector<32x128xf32> to vector<2x16x128xf32>
    %57 = vector.extract_strided_slice %54 {offsets = [0, 128], sizes = [32, 128], strides = [1, 1]} : vector<32x384xf32> to vector<32x128xf32>
    %58 = vector.shape_cast %57 : vector<32x128xf32> to vector<2x16x128xf32>
    %59 = vector.extract_strided_slice %54 {offsets = [0, 256], sizes = [32, 128], strides = [1, 1]} : vector<32x384xf32> to vector<32x128xf32>
    %60 = vector.shape_cast %59 : vector<32x128xf32> to vector<2x16x128xf32>
    %61 = arith.truncf %56 : vector<2x16x128xf32> to vector<2x16x128xbf16>
    %62 = arith.truncf %58 : vector<2x16x128xf32> to vector<2x16x128xbf16>
    "tpu.trace_start"() <{level = 10 : i32, message = "bmk,bnk->bmn"}> : () -> ()
    %cst_42 = arith.constant dense<0.000000e+00> : vector<2x16x16xf32>
    %63 = tpu.matmul %61, %62, %cst_42 {dimension_numbers = #tpu.dot_dimension_numbers<[2], [2], [1], [1], [0, 0, 0, 1, 1, 1], [0], [0]>} : vector<2x16x128xbf16>, vector<2x16x128xbf16>, vector<2x16x16xf32> -> vector<2x16x16xf32>
    "tpu.trace_stop"() : () -> ()
    %cst_43 = arith.constant 0.176776692 : f32
    %64 = vector.broadcast %cst_43 : f32 to vector<2x16x16xf32>
    %65 = arith.mulf %63, %64 : vector<2x16x16xf32>
    %66 = vector.broadcast %5 : vector<2x1x16xf32> to vector<2x16x16xf32>
    %67 = arith.addf %65, %66 : vector<2x16x16xf32>
    %cst_44 = arith.constant dense<0xFF800000> : vector<2x16xf32>
    %68 = vector.multi_reduction <maximumf>, %67, %cst_44 [2] : vector<2x16x16xf32> to vector<2x16xf32>
    %69 = vector.shape_cast %68 : vector<2x16xf32> to vector<2x16x1xf32>
    %70 = vector.broadcast %69 : vector<2x16x1xf32> to vector<2x16x16xf32>
    %71 = arith.subf %67, %70 : vector<2x16x16xf32>
    %72 = math.exp %71 : vector<2x16x16xf32>
    %cst_45 = arith.constant dense<0.000000e+00> : vector<2x16xf32>
    %73 = vector.multi_reduction <add>, %72, %cst_45 [2] : vector<2x16x16xf32> to vector<2x16xf32>
    %74 = vector.shape_cast %73 : vector<2x16xf32> to vector<2x16x1xf32>
    %75 = tpu.reciprocal %74 {approx = true} : vector<2x16x1xf32> -> vector<2x16x1xf32>
    %76 = vector.broadcast %75 : vector<2x16x1xf32> to vector<2x16x16xf32>
    %77 = arith.mulf %72, %76 : vector<2x16x16xf32>
    %78 = arith.truncf %77 : vector<2x16x16xf32> to vector<2x16x16xbf16>
    %79 = arith.truncf %60 : vector<2x16x128xf32> to vector<2x16x128xbf16>
    "tpu.trace_start"() <{level = 10 : i32, message = "bmn,bnk->bmk"}> : () -> ()
    %cst_46 = arith.constant dense<0.000000e+00> : vector<2x16x128xf32>
    %80 = tpu.matmul %78, %79, %cst_46 {dimension_numbers = #tpu.dot_dimension_numbers<[2], [1], [1], [2], [0, 0, 0, 1, 1, 2], [0], [0]>} : vector<2x16x16xbf16>, vector<2x16x128xbf16>, vector<2x16x128xf32> -> vector<2x16x128xf32>
    "tpu.trace_stop"() : () -> ()
    %81 = vector.shape_cast %80 : vector<2x16x128xf32> to vector<32x128xf32>
    %82 = arith.truncf %81 : vector<32x128xf32> to vector<32x128xbf16>
    %cst_47 = arith.constant dense<0.000000e+00> : vector<32x128xf32>
    %83 = tpu.matmul %82, %17, %cst_47 {dimension_numbers = #tpu.dot_dimension_numbers<[1], [0], [0], [1], [0, 0, 1, 1], [], []>} : vector<32x128xbf16>, vector<128x128xbf16>, vector<32x128xf32> -> vector<32x128xf32>
    %84 = vector.shape_cast %83 : vector<32x128xf32> to vector<2x16x128xf32>
    %85 = vector.broadcast %10 : vector<2x1x128xf32> to vector<2x16x128xf32>
    %86 = arith.mulf %85, %84 : vector<2x16x128xf32>
    %87 = arith.addf %3, %86 : vector<2x16x128xf32>
    %88 = vector.shape_cast %87 : vector<2x16x128xf32> to vector<32x128xf32>
    %89 = arith.truncf %88 : vector<32x128xf32> to vector<32x128xbf16>
    %cst_48 = arith.constant dense<0.000000e+00> : vector<32x128xf32>
    %90 = tpu.matmul %89, %19, %cst_48 {dimension_numbers = #tpu.dot_dimension_numbers<[1], [0], [0], [1], [0, 0, 1, 1], [], []>} : vector<32x128xbf16>, vector<128x128xbf16>, vector<32x128xf32> -> vector<32x128xf32>
    %91 = vector.shape_cast %90 : vector<32x128xf32> to vector<2x16x128xf32>
    %92 = vector.shape_cast %4 : vector<2x8x128xbf16> to vector<16x128xbf16>
    %cst_49 = arith.constant dense<0.000000e+00> : vector<16x256xf32>
    %93 = tpu.matmul %92, %21, %cst_49 {dimension_numbers = #tpu.dot_dimension_numbers<[1], [0], [0], [1], [0, 0, 1, 1], [], []>} : vector<16x128xbf16>, vector<128x256xbf16>, vector<16x256xf32> -> vector<16x256xf32>
    %94 = vector.extract_strided_slice %93 {offsets = [0, 0], sizes = [16, 128], strides = [1, 1]} : vector<16x256xf32> to vector<16x128xf32>
    %95 = vector.shape_cast %94 : vector<16x128xf32> to vector<2x8x128xf32>
    %96 = vector.extract_strided_slice %93 {offsets = [0, 128], sizes = [16, 128], strides = [1, 1]} : vector<16x256xf32> to vector<16x128xf32>
    %97 = vector.shape_cast %96 : vector<16x128xf32> to vector<2x8x128xf32>
    %98 = arith.truncf %91 : vector<2x16x128xf32> to vector<2x16x128xbf16>
    %99 = arith.truncf %95 : vector<2x8x128xf32> to vector<2x8x128xbf16>
    "tpu.trace_start"() <{level = 10 : i32, message = "bmk,bnk->bmn"}> : () -> ()
    %cst_50 = arith.constant dense<0.000000e+00> : vector<2x16x8xf32>
    %100 = tpu.matmul %98, %99, %cst_50 {dimension_numbers = #tpu.dot_dimension_numbers<[2], [2], [1], [1], [0, 0, 0, 1, 1, 1], [0], [0]>} : vector<2x16x128xbf16>, vector<2x8x128xbf16>, vector<2x16x8xf32> -> vector<2x16x8xf32>
    "tpu.trace_stop"() : () -> ()
    %cst_51 = arith.constant 0.176776692 : f32
    %101 = vector.broadcast %cst_51 : f32 to vector<2x16x8xf32>
    %102 = arith.mulf %100, %101 : vector<2x16x8xf32>
    %103 = vector.broadcast %6 : vector<2x1x8xf32> to vector<2x16x8xf32>
    %104 = arith.addf %102, %103 : vector<2x16x8xf32>
    %cst_52 = arith.constant dense<0xFF800000> : vector<2x16xf32>
    %105 = vector.multi_reduction <maximumf>, %104, %cst_52 [2] : vector<2x16x8xf32> to vector<2x16xf32>
    %106 = vector.shape_cast %105 : vector<2x16xf32> to vector<2x16x1xf32>
    %107 = vector.broadcast %106 : vector<2x16x1xf32> to vector<2x16x8xf32>
    %108 = arith.subf %104, %107 : vector<2x16x8xf32>
    %109 = math.exp %108 : vector<2x16x8xf32>
    %cst_53 = arith.constant dense<0.000000e+00> : vector<2x16xf32>
    %110 = vector.multi_reduction <add>, %109, %cst_53 [2] : vector<2x16x8xf32> to vector<2x16xf32>
    %111 = vector.shape_cast %110 : vector<2x16xf32> to vector<2x16x1xf32>
    %112 = tpu.reciprocal %111 {approx = true} : vector<2x16x1xf32> -> vector<2x16x1xf32>
    %113 = vector.broadcast %112 : vector<2x16x1xf32> to vector<2x16x8xf32>
    %114 = arith.mulf %109, %113 : vector<2x16x8xf32>
    %115 = arith.truncf %114 : vector<2x16x8xf32> to vector<2x16x8xbf16>
    %116 = arith.truncf %97 : vector<2x8x128xf32> to vector<2x8x128xbf16>
    "tpu.trace_start"() <{level = 10 : i32, message = "bmn,bnk->bmk"}> : () -> ()
    %cst_54 = arith.constant dense<0.000000e+00> : vector<2x16x128xf32>
    %117 = tpu.matmul %115, %116, %cst_54 {dimension_numbers = #tpu.dot_dimension_numbers<[2], [1], [1], [2], [0, 0, 0, 1, 1, 2], [0], [0]>} : vector<2x16x8xbf16>, vector<2x8x128xbf16>, vector<2x16x128xf32> -> vector<2x16x128xf32>
    "tpu.trace_stop"() : () -> ()
    %118 = vector.shape_cast %117 : vector<2x16x128xf32> to vector<32x128xf32>
    %119 = arith.truncf %118 : vector<32x128xf32> to vector<32x128xbf16>
    %cst_55 = arith.constant dense<0.000000e+00> : vector<32x128xf32>
    %120 = tpu.matmul %119, %23, %cst_55 {dimension_numbers = #tpu.dot_dimension_numbers<[1], [0], [0], [1], [0, 0, 1, 1], [], []>} : vector<32x128xbf16>, vector<128x128xbf16>, vector<32x128xf32> -> vector<32x128xf32>
    %121 = vector.shape_cast %120 : vector<32x128xf32> to vector<2x16x128xf32>
    %122 = arith.addf %87, %121 : vector<2x16x128xf32>
    %cst_56 = arith.constant dense<0.000000e+00> : vector<2x16xf32>
    %123 = vector.multi_reduction <add>, %122, %cst_56 [2] : vector<2x16x128xf32> to vector<2x16xf32>
    %124 = vector.shape_cast %123 : vector<2x16xf32> to vector<2x16x1xf32>
    %cst_57 = arith.constant 3.125000e-02 : f32
    %125 = vector.broadcast %cst_57 : f32 to vector<2x16x1xf32>
    %126 = arith.mulf %124, %125 : vector<2x16x1xf32>
    %127 = arith.mulf %122, %122 : vector<2x16x128xf32>
    %cst_58 = arith.constant dense<0.000000e+00> : vector<2x16xf32>
    %128 = vector.multi_reduction <add>, %127, %cst_58 [2] : vector<2x16x128xf32> to vector<2x16xf32>
    %129 = vector.shape_cast %128 : vector<2x16xf32> to vector<2x16x1xf32>
    %cst_59 = arith.constant 3.125000e-02 : f32
    %130 = vector.broadcast %cst_59 : f32 to vector<2x16x1xf32>
    %131 = arith.mulf %129, %130 : vector<2x16x1xf32>
    %132 = arith.mulf %126, %126 : vector<2x16x1xf32>
    %133 = arith.subf %131, %132 : vector<2x16x1xf32>
    %134 = vector.broadcast %126 : vector<2x16x1xf32> to vector<2x16x128xf32>
    %135 = arith.subf %122, %134 : vector<2x16x128xf32>
    %cst_60 = arith.constant 9.99999997E-7 : f32
    %136 = vector.broadcast %cst_60 : f32 to vector<2x16x1xf32>
    %137 = arith.addf %133, %136 : vector<2x16x1xf32>
    %138 = math.rsqrt %137 : vector<2x16x1xf32>
    %139 = vector.broadcast %138 : vector<2x16x1xf32> to vector<2x16x128xf32>
    %140 = arith.mulf %135, %139 : vector<2x16x128xf32>
    %cst_61 = arith.constant 1.000000e+00 : f32
    %141 = vector.broadcast %cst_61 : f32 to vector<2x1x128xf32>
    %142 = arith.addf %141, %12 : vector<2x1x128xf32>
    %143 = vector.broadcast %142 : vector<2x1x128xf32> to vector<2x16x128xf32>
    %144 = arith.mulf %140, %143 : vector<2x16x128xf32>
    %145 = vector.broadcast %11 : vector<2x1x128xf32> to vector<2x16x128xf32>
    %146 = arith.addf %144, %145 : vector<2x16x128xf32>
    %147 = vector.shape_cast %146 : vector<2x16x128xf32> to vector<32x128xf32>
    %148 = arith.truncf %147 : vector<32x128xf32> to vector<32x128xbf16>
    %cst_62 = arith.constant dense<0.000000e+00> : vector<32x128xf32>
    %149 = tpu.matmul %148, %25, %cst_62 {dimension_numbers = #tpu.dot_dimension_numbers<[1], [0], [0], [1], [0, 0, 1, 1], [], []>} : vector<32x128xbf16>, vector<128x128xbf16>, vector<32x128xf32> -> vector<32x128xf32>
    %150 = arith.mulf %149, %149 : vector<32x128xf32>
    %151 = arith.mulf %149, %150 : vector<32x128xf32>
    %cst_63 = arith.constant 4.471500e-02 : f32
    %152 = vector.broadcast %cst_63 : f32 to vector<32x128xf32>
    %153 = arith.mulf %152, %151 : vector<32x128xf32>
    %154 = arith.addf %149, %153 : vector<32x128xf32>
    %cst_64 = arith.constant 0.797884583 : f32
    %155 = vector.broadcast %cst_64 : f32 to vector<32x128xf32>
    %156 = arith.mulf %155, %154 : vector<32x128xf32>
    %157 = math.tanh %156 : vector<32x128xf32>
    %cst_65 = arith.constant 1.000000e+00 : f32
    %158 = vector.broadcast %cst_65 : f32 to vector<32x128xf32>
    %159 = arith.addf %158, %157 : vector<32x128xf32>
    %cst_66 = arith.constant 5.000000e-01 : f32
    %160 = vector.broadcast %cst_66 : f32 to vector<32x128xf32>
    %161 = arith.mulf %160, %159 : vector<32x128xf32>
    %162 = arith.mulf %149, %161 : vector<32x128xf32>
    %163 = arith.truncf %162 : vector<32x128xf32> to vector<32x128xbf16>
    %cst_67 = arith.constant dense<0.000000e+00> : vector<32x128xf32>
    %164 = tpu.matmul %163, %27, %cst_67 {dimension_numbers = #tpu.dot_dimension_numbers<[1], [0], [0], [1], [0, 0, 1, 1], [], []>} : vector<32x128xbf16>, vector<128x128xbf16>, vector<32x128xf32> -> vector<32x128xf32>
    %165 = vector.shape_cast %164 : vector<32x128xf32> to vector<2x16x128xf32>
    %166 = vector.broadcast %13 : vector<2x1x128xf32> to vector<2x16x128xf32>
    %167 = arith.mulf %166, %165 : vector<2x16x128xf32>
    %168 = arith.addf %122, %167 : vector<2x16x128xf32>
    %c0_68 = arith.constant 0 : index
    %c0_69 = arith.constant 0 : index
    %c0_70 = arith.constant 0 : index
    %169 = vector.load %arg13[%c0_68, %c0_69, %c0_70] : memref<2x16x128xf32, #tpu.memory_space<vmem>>, vector<2x16x128xf32>
    tpu.vector_store %arg13[%c0_68, %c0_69, %c0_70], %168 {strides = array<i32>} : memref<2x16x128xf32, #tpu.memory_space<vmem>>, vector<2x16x128xf32>,
    %c1_i32 = arith.constant 1 : i32
    %170 = arith.cmpi eq, %arg0, %c1_i32 : i32
    %171 = arith.extui %170 : i1 to i32
    %c0_i32_71 = arith.constant 0 : i32
    %172 = arith.cmpi ne, %171, %c0_i32_71 : i32
    scf.if %172 {
      %c0_72 = arith.constant 0 : index
      %c0_73 = arith.constant 0 : index
      %c0_74 = arith.constant 0 : index
      %173 = vector.load %arg1[%c0_72, %c0_73, %c0_74] : memref<2x16x128xf32, #tpu.memory_space<vmem>>, vector<2x16x128xf32>
      %174 = arith.subf %168, %173 : vector<2x16x128xf32>
      %c0_75 = arith.constant 0 : index
      %c0_76 = arith.constant 0 : index
      %c0_77 = arith.constant 0 : index
      %175 = vector.load %arg14[%c0_75, %c0_76, %c0_77] : memref<2x16x128xf32, #tpu.memory_space<vmem>>, vector<2x16x128xf32>
      tpu.vector_store %arg14[%c0_75, %c0_76, %c0_77], %174 {strides = array<i32>} : memref<2x16x128xf32, #tpu.memory_space<vmem>>, vector<2x16x128xf32>,
    } else {
    }
    return
  }
  func.func @transform_0(%arg0: i32) -> (i32, i32, i32) {
    %c0_i32 = arith.constant 0 : i32
    %c0_i32_0 = arith.constant 0 : i32
    %c0_i32_1 = arith.constant 0 : i32
    %c0_i32_2 = arith.constant 0 : i32
    return %c0_i32, %c0_i32_0, %c0_i32_1 : i32, i32, i32
  }
  func.func @transform_1(%arg0: i32) -> (i32, i32, i32) {
    %c0_i32 = arith.constant 0 : i32
    %c0_i32_0 = arith.constant 0 : i32
    %c0_i32_1 = arith.constant 0 : i32
    %c0_i32_2 = arith.constant 0 : i32
    return %c0_i32, %c0_i32_0, %c0_i32_1 : i32, i32, i32
  }
  func.func @transform_2(%arg0: i32) -> (i32, i32, i32) {
    %c0_i32 = arith.constant 0 : i32
    %c0_i32_0 = arith.constant 0 : i32
    %c0_i32_1 = arith.constant 0 : i32
    %c0_i32_2 = arith.constant 0 : i32
    return %c0_i32, %c0_i32_0, %c0_i32_1 : i32, i32, i32
  }
  func.func @transform_3(%arg0: i32) -> (i32, i32, i32) {
    %c0_i32 = arith.constant 0 : i32
    %c0_i32_0 = arith.constant 0 : i32
    %c0_i32_1 = arith.constant 0 : i32
    %c0_i32_2 = arith.constant 0 : i32
    return %c0_i32, %c0_i32_0, %c0_i32_1 : i32, i32, i32
  }
  func.func @transform_4(%arg0: i32) -> (i32, i32, i32) {
    %c0_i32 = arith.constant 0 : i32
    %c0_i32_0 = arith.constant 0 : i32
    %c0_i32_1 = arith.constant 0 : i32
    %c0_i32_2 = arith.constant 0 : i32
    return %c0_i32, %c0_i32_0, %c0_i32_1 : i32, i32, i32
  }
  func.func @transform_5(%arg0: i32) -> (i32, i32, i32) {
    %c0_i32 = arith.constant 0 : i32
    %c0_i32_0 = arith.constant 0 : i32
    %c0_i32_1 = arith.constant 0 : i32
    return %arg0, %c0_i32, %c0_i32_0 : i32, i32, i32
  }
  func.func @transform_6(%arg0: i32) -> (i32, i32, i32) {
    %c0_i32 = arith.constant 0 : i32
    %c0_i32_0 = arith.constant 0 : i32
    %c0_i32_1 = arith.constant 0 : i32
    return %arg0, %c0_i32, %c0_i32_0 : i32, i32, i32
  }
  func.func @transform_7(%arg0: i32) -> (i32, i32, i32) {
    %c0_i32 = arith.constant 0 : i32
    %c0_i32_0 = arith.constant 0 : i32
    %c0_i32_1 = arith.constant 0 : i32
    return %arg0, %c0_i32, %c0_i32_0 : i32, i32, i32
  }
  func.func @transform_8(%arg0: i32) -> (i32, i32, i32) {
    %c0_i32 = arith.constant 0 : i32
    %c0_i32_0 = arith.constant 0 : i32
    %c0_i32_1 = arith.constant 0 : i32
    return %arg0, %c0_i32, %c0_i32_0 : i32, i32, i32
  }
  func.func @transform_9(%arg0: i32) -> (i32, i32, i32) {
    %c0_i32 = arith.constant 0 : i32
    %c0_i32_0 = arith.constant 0 : i32
    %c0_i32_1 = arith.constant 0 : i32
    return %arg0, %c0_i32, %c0_i32_0 : i32, i32, i32
  }
  func.func @transform_10(%arg0: i32) -> (i32, i32, i32) {
    %c0_i32 = arith.constant 0 : i32
    %c0_i32_0 = arith.constant 0 : i32
    %c0_i32_1 = arith.constant 0 : i32
    return %arg0, %c0_i32, %c0_i32_0 : i32, i32, i32
  }
  func.func @transform_11(%arg0: i32) -> (i32, i32, i32) {
    %c0_i32 = arith.constant 0 : i32
    %c0_i32_0 = arith.constant 0 : i32
    %c0_i32_1 = arith.constant 0 : i32
    return %arg0, %c0_i32, %c0_i32_0 : i32, i32, i32
  }
  func.func @transform_12(%arg0: i32) -> (i32, i32, i32) {
    %c0_i32 = arith.constant 0 : i32
    %c0_i32_0 = arith.constant 0 : i32
    %c0_i32_1 = arith.constant 0 : i32
    %c0_i32_2 = arith.constant 0 : i32
    return %c0_i32, %c0_i32_0, %c0_i32_1 : i32, i32, i32
  }
  func.func @transform_13(%arg0: i32) -> (i32, i32, i32) {
    %c0_i32 = arith.constant 0 : i32
    %c0_i32_0 = arith.constant 0 : i32
    %c0_i32_1 = arith.constant 0 : i32
    %c0_i32_2 = arith.constant 0 : i32
    return %c0_i32, %c0_i32_0, %c0_i32_1 : i32, i32, i32
  }
}

module attributes {stable_mosaic.version = 11 : i64} {
  func.func @kernel(%arg0: i32, %arg1: memref<2x16x128xf32, #tpu.memory_space<vmem>>, %arg2: memref<2x8x128xbf16, #tpu.memory_space<vmem>>, %arg3: memref<2x1x16xf32, #tpu.memory_space<vmem>>, %arg4: memref<2x1x8xf32, #tpu.memory_space<vmem>>, %arg5: memref<2x6x128xf32, #tpu.memory_space<vmem>>, %arg6: memref<1x128x384xbf16, #tpu.memory_space<vmem>>, %arg7: memref<1x128x128xbf16, #tpu.memory_space<vmem>>, %arg8: memref<1x128x128xbf16, #tpu.memory_space<vmem>>, %arg9: memref<1x128x256xbf16, #tpu.memory_space<vmem>>, %arg10: memref<1x128x128xbf16, #tpu.memory_space<vmem>>, %arg11: memref<1x128x128xbf16, #tpu.memory_space<vmem>>, %arg12: memref<1x128x128xbf16, #tpu.memory_space<vmem>>, %arg13: memref<2x16x128xf32, #tpu.memory_space<vmem>>, %arg14: memref<2x16x128xf32, #tpu.memory_space<vmem>>) attributes {dimension_semantics = [#tpu.dimension_semantics<arbitrary>], iteration_bounds = array<i64: 1>, scalar_prefetch = 0 : i64, scratch_operands = 0 : i64, tpu.core_type = #tpu.core_type<tc>, window_params = [{pipeline_mode = #tpu.pipeline_mode<synchronous>, transform_indices = @transform_0, window_bounds = array<i64: 2, 16, 128>}, {pipeline_mode = #tpu.pipeline_mode<synchronous>, transform_indices = @transform_1, window_bounds = array<i64: 2, 8, 128>}, {pipeline_mode = #tpu.pipeline_mode<synchronous>, transform_indices = @transform_2, window_bounds = array<i64: 2, 1, 16>}, {pipeline_mode = #tpu.pipeline_mode<synchronous>, transform_indices = @transform_3, window_bounds = array<i64: 2, 1, 8>}, {pipeline_mode = #tpu.pipeline_mode<synchronous>, transform_indices = @transform_4, window_bounds = array<i64: 2, 6, 128>}, {transform_indices = @transform_5, window_bounds = array<i64: 1, 128, 384>}, {transform_indices = @transform_6, window_bounds = array<i64: 1, 128, 128>}, {transform_indices = @transform_7, window_bounds = array<i64: 1, 128, 128>}, {transform_indices = @transform_8, window_bounds = array<i64: 1, 128, 256>}, {transform_indices = @transform_9, window_bounds = array<i64: 1, 128, 128>}, {transform_indices = @transform_10, window_bounds = array<i64: 1, 128, 128>}, {transform_indices = @transform_11, window_bounds = array<i64: 1, 128, 128>}, {pipeline_mode = #tpu.pipeline_mode<synchronous>, transform_indices = @transform_12, window_bounds = array<i64: 2, 16, 128>}, {pipeline_mode = #tpu.pipeline_mode<synchronous>, transform_indices = @transform_13, window_bounds = array<i64: 2, 16, 128>}]} {
    %c0_i32 = arith.constant 0 : i32
    %0 = arith.cmpi eq, %arg0, %c0_i32 : i32
    %1 = arith.extui %0 : i1 to i32
    %c0_i32_0 = arith.constant 0 : i32
    %2 = arith.cmpi ne, %1, %c0_i32_0 : i32
    scf.if %2 {
      %c0_73 = arith.constant 0 : index
      %c0_74 = arith.constant 0 : index
      %c0_75 = arith.constant 0 : index
      %173 = vector.load %arg1[%c0_73, %c0_74, %c0_75] : memref<2x16x128xf32, #tpu.memory_space<vmem>>, vector<2x16x128xf32>
      %c0_76 = arith.constant 0 : index
      %c0_77 = arith.constant 0 : index
      %c0_78 = arith.constant 0 : index
      %174 = vector.load %arg13[%c0_76, %c0_77, %c0_78] : memref<2x16x128xf32, #tpu.memory_space<vmem>>, vector<2x16x128xf32>
      tpu.vector_store %arg13[%c0_76, %c0_77, %c0_78], %173 {strides = array<i32>} : memref<2x16x128xf32, #tpu.memory_space<vmem>>, vector<2x16x128xf32>,
    } else {
    }
    %c0 = arith.constant 0 : index
    %c0_1 = arith.constant 0 : index
    %c0_2 = arith.constant 0 : index
    %3 = vector.load %arg13[%c0, %c0_1, %c0_2] : memref<2x16x128xf32, #tpu.memory_space<vmem>>, vector<2x16x128xf32>
    %c0_3 = arith.constant 0 : index
    %c0_4 = arith.constant 0 : index
    %c0_5 = arith.constant 0 : index
    %4 = vector.load %arg2[%c0_3, %c0_4, %c0_5] : memref<2x8x128xbf16, #tpu.memory_space<vmem>>, vector<2x8x128xbf16>
    %c0_6 = arith.constant 0 : index
    %c0_7 = arith.constant 0 : index
    %c0_8 = arith.constant 0 : index
    %5 = vector.load %arg3[%c0_6, %c0_7, %c0_8] : memref<2x1x16xf32, #tpu.memory_space<vmem>>, vector<2x1x16xf32>
    %c0_9 = arith.constant 0 : index
    %c0_10 = arith.constant 0 : index
    %c0_11 = arith.constant 0 : index
    %6 = vector.load %arg4[%c0_9, %c0_10, %c0_11] : memref<2x1x8xf32, #tpu.memory_space<vmem>>, vector<2x1x8xf32>
    %c0_12 = arith.constant 0 : index
    %c0_13 = arith.constant 0 : index
    %c0_14 = arith.constant 0 : index
    %7 = vector.load %arg5[%c0_12, %c0_13, %c0_14] : memref<2x6x128xf32, #tpu.memory_space<vmem>>, vector<2x6x128xf32>
    %8 = vector.extract_strided_slice %7 {offsets = [0, 0, 0], sizes = [2, 1, 128], strides = [1, 1, 1]} : vector<2x6x128xf32> to vector<2x1x128xf32>
    %9 = vector.extract_strided_slice %7 {offsets = [0, 1, 0], sizes = [2, 1, 128], strides = [1, 1, 1]} : vector<2x6x128xf32> to vector<2x1x128xf32>
    %10 = vector.extract_strided_slice %7 {offsets = [0, 2, 0], sizes = [2, 1, 128], strides = [1, 1, 1]} : vector<2x6x128xf32> to vector<2x1x128xf32>
    %11 = vector.extract_strided_slice %7 {offsets = [0, 3, 0], sizes = [2, 1, 128], strides = [1, 1, 1]} : vector<2x6x128xf32> to vector<2x1x128xf32>
    %12 = vector.extract_strided_slice %7 {offsets = [0, 4, 0], sizes = [2, 1, 128], strides = [1, 1, 1]} : vector<2x6x128xf32> to vector<2x1x128xf32>
    %13 = vector.extract_strided_slice %7 {offsets = [0, 5, 0], sizes = [2, 1, 128], strides = [1, 1, 1]} : vector<2x6x128xf32> to vector<2x1x128xf32>
    %c0_15 = arith.constant 0 : index
    %c0_16 = arith.constant 0 : index
    %c0_17 = arith.constant 0 : index
    %14 = vector.load %arg6[%c0_15, %c0_16, %c0_17] : memref<1x128x384xbf16, #tpu.memory_space<vmem>>, vector<1x128x384xbf16>
    %15 = vector.shape_cast %14 : vector<1x128x384xbf16> to vector<128x384xbf16>
    %c0_18 = arith.constant 0 : index
    %c0_19 = arith.constant 0 : index
    %c0_20 = arith.constant 0 : index
    %16 = vector.load %arg7[%c0_18, %c0_19, %c0_20] : memref<1x128x128xbf16, #tpu.memory_space<vmem>>, vector<1x128x128xbf16>
    %17 = vector.shape_cast %16 : vector<1x128x128xbf16> to vector<128x128xbf16>
    %c0_21 = arith.constant 0 : index
    %c0_22 = arith.constant 0 : index
    %c0_23 = arith.constant 0 : index
    %18 = vector.load %arg8[%c0_21, %c0_22, %c0_23] : memref<1x128x128xbf16, #tpu.memory_space<vmem>>, vector<1x128x128xbf16>
    %19 = vector.shape_cast %18 : vector<1x128x128xbf16> to vector<128x128xbf16>
    %c0_24 = arith.constant 0 : index
    %c0_25 = arith.constant 0 : index
    %c0_26 = arith.constant 0 : index
    %20 = vector.load %arg9[%c0_24, %c0_25, %c0_26] : memref<1x128x256xbf16, #tpu.memory_space<vmem>>, vector<1x128x256xbf16>
    %21 = vector.shape_cast %20 : vector<1x128x256xbf16> to vector<128x256xbf16>
    %c0_27 = arith.constant 0 : index
    %c0_28 = arith.constant 0 : index
    %c0_29 = arith.constant 0 : index
    %22 = vector.load %arg10[%c0_27, %c0_28, %c0_29] : memref<1x128x128xbf16, #tpu.memory_space<vmem>>, vector<1x128x128xbf16>
    %23 = vector.shape_cast %22 : vector<1x128x128xbf16> to vector<128x128xbf16>
    %c0_30 = arith.constant 0 : index
    %c0_31 = arith.constant 0 : index
    %c0_32 = arith.constant 0 : index
    %24 = vector.load %arg11[%c0_30, %c0_31, %c0_32] : memref<1x128x128xbf16, #tpu.memory_space<vmem>>, vector<1x128x128xbf16>
    %25 = vector.shape_cast %24 : vector<1x128x128xbf16> to vector<128x128xbf16>
    %c0_33 = arith.constant 0 : index
    %c0_34 = arith.constant 0 : index
    %c0_35 = arith.constant 0 : index
    %26 = vector.load %arg12[%c0_33, %c0_34, %c0_35] : memref<1x128x128xbf16, #tpu.memory_space<vmem>>, vector<1x128x128xbf16>
    %27 = vector.shape_cast %26 : vector<1x128x128xbf16> to vector<128x128xbf16>
    %cst = arith.constant dense<0.000000e+00> : vector<2x16xf32>
    %28 = vector.multi_reduction <add>, %3, %cst [2] : vector<2x16x128xf32> to vector<2x16xf32>
    %29 = vector.shape_cast %28 : vector<2x16xf32> to vector<2x16x1xf32>
    %cst_36 = arith.constant 3.125000e-02 : f32
    %30 = vector.broadcast %cst_36 : f32 to vector<2x16x1xf32>
    %31 = arith.mulf %29, %30 : vector<2x16x1xf32>
    %32 = arith.mulf %3, %3 : vector<2x16x128xf32>
    %cst_37 = arith.constant dense<0.000000e+00> : vector<2x16xf32>
    %33 = vector.multi_reduction <add>, %32, %cst_37 [2] : vector<2x16x128xf32> to vector<2x16xf32>
    %34 = vector.shape_cast %33 : vector<2x16xf32> to vector<2x16x1xf32>
    %cst_38 = arith.constant 3.125000e-02 : f32
    %35 = vector.broadcast %cst_38 : f32 to vector<2x16x1xf32>
    %36 = arith.mulf %34, %35 : vector<2x16x1xf32>
    %37 = arith.mulf %31, %31 : vector<2x16x1xf32>
    %38 = arith.subf %36, %37 : vector<2x16x1xf32>
    %39 = vector.broadcast %31 : vector<2x16x1xf32> to vector<2x16x128xf32>
    %40 = arith.subf %3, %39 : vector<2x16x128xf32>
    %cst_39 = arith.constant 9.99999997E-7 : f32
    %41 = vector.broadcast %cst_39 : f32 to vector<2x16x1xf32>
    %42 = arith.addf %38, %41 : vector<2x16x1xf32>
    %43 = math.rsqrt %42 : vector<2x16x1xf32>
    %44 = vector.broadcast %43 : vector<2x16x1xf32> to vector<2x16x128xf32>
    %45 = arith.mulf %40, %44 : vector<2x16x128xf32>
    %cst_40 = arith.constant 1.000000e+00 : f32
    %46 = vector.broadcast %cst_40 : f32 to vector<2x1x128xf32>
    %47 = arith.addf %46, %9 : vector<2x1x128xf32>
    %48 = vector.broadcast %47 : vector<2x1x128xf32> to vector<2x16x128xf32>
    %49 = arith.mulf %45, %48 : vector<2x16x128xf32>
    %50 = vector.broadcast %8 : vector<2x1x128xf32> to vector<2x16x128xf32>
    %51 = arith.addf %49, %50 : vector<2x16x128xf32>
    %52 = vector.shape_cast %51 : vector<2x16x128xf32> to vector<32x128xf32>
    %53 = arith.truncf %52 : vector<32x128xf32> to vector<32x128xbf16>
    %cst_41 = arith.constant dense<0.000000e+00> : vector<32x384xf32>
    %54 = tpu.matmul %53, %15, %cst_41 {dimension_numbers = #tpu.dot_dimension_numbers<[1], [0], [0], [1], [0, 0, 1, 1], [], []>} : vector<32x128xbf16>, vector<128x384xbf16>, vector<32x384xf32> -> vector<32x384xf32>
    %55 = vector.extract_strided_slice %54 {offsets = [0, 0], sizes = [32, 128], strides = [1, 1]} : vector<32x384xf32> to vector<32x128xf32>
    %56 = vector.shape_cast %55 : vector<32x128xf32> to vector<2x16x128xf32>
    %57 = vector.extract_strided_slice %54 {offsets = [0, 128], sizes = [32, 128], strides = [1, 1]} : vector<32x384xf32> to vector<32x128xf32>
    %58 = vector.shape_cast %57 : vector<32x128xf32> to vector<2x16x128xf32>
    %59 = vector.extract_strided_slice %54 {offsets = [0, 256], sizes = [32, 128], strides = [1, 1]} : vector<32x384xf32> to vector<32x128xf32>
    %60 = vector.shape_cast %59 : vector<32x128xf32> to vector<2x16x128xf32>
    %61 = arith.truncf %56 : vector<2x16x128xf32> to vector<2x16x128xbf16>
    %62 = arith.truncf %58 : vector<2x16x128xf32> to vector<2x16x128xbf16>
    "tpu.trace_start"() <{level = 10 : i32, message = "bmk,bnk->bmn"}> : () -> ()
    %cst_42 = arith.constant dense<0.000000e+00> : vector<2x16x16xf32>
    %63 = tpu.matmul %61, %62, %cst_42 {dimension_numbers = #tpu.dot_dimension_numbers<[2], [2], [1], [1], [0, 0, 0, 1, 1, 1], [0], [0]>} : vector<2x16x128xbf16>, vector<2x16x128xbf16>, vector<2x16x16xf32> -> vector<2x16x16xf32>
    "tpu.trace_stop"() : () -> ()
    %cst_43 = arith.constant 0.176776692 : f32
    %64 = vector.broadcast %cst_43 : f32 to vector<2x16x16xf32>
    %65 = arith.mulf %63, %64 : vector<2x16x16xf32>
    %66 = vector.broadcast %5 : vector<2x1x16xf32> to vector<2x16x16xf32>
    %67 = arith.addf %65, %66 : vector<2x16x16xf32>
    %cst_44 = arith.constant dense<0xFF800000> : vector<2x16xf32>
    %68 = vector.multi_reduction <maximumf>, %67, %cst_44 [2] : vector<2x16x16xf32> to vector<2x16xf32>
    %69 = vector.shape_cast %68 : vector<2x16xf32> to vector<2x16x1xf32>
    %70 = vector.broadcast %69 : vector<2x16x1xf32> to vector<2x16x16xf32>
    %71 = arith.subf %67, %70 : vector<2x16x16xf32>
    %72 = math.exp %71 : vector<2x16x16xf32>
    %cst_45 = arith.constant dense<0.000000e+00> : vector<2x16xf32>
    %73 = vector.multi_reduction <add>, %72, %cst_45 [2] : vector<2x16x16xf32> to vector<2x16xf32>
    %74 = vector.shape_cast %73 : vector<2x16xf32> to vector<2x16x1xf32>
    %75 = tpu.reciprocal %74 {approx = true} : vector<2x16x1xf32> -> vector<2x16x1xf32>
    %76 = vector.broadcast %75 : vector<2x16x1xf32> to vector<2x16x16xf32>
    %77 = arith.mulf %72, %76 : vector<2x16x16xf32>
    %78 = arith.truncf %77 : vector<2x16x16xf32> to vector<2x16x16xbf16>
    %79 = arith.truncf %60 : vector<2x16x128xf32> to vector<2x16x128xbf16>
    "tpu.trace_start"() <{level = 10 : i32, message = "bmn,bnk->bmk"}> : () -> ()
    %cst_46 = arith.constant dense<0.000000e+00> : vector<2x16x128xf32>
    %80 = tpu.matmul %78, %79, %cst_46 {dimension_numbers = #tpu.dot_dimension_numbers<[2], [1], [1], [2], [0, 0, 0, 1, 1, 2], [0], [0]>} : vector<2x16x16xbf16>, vector<2x16x128xbf16>, vector<2x16x128xf32> -> vector<2x16x128xf32>
    "tpu.trace_stop"() : () -> ()
    %81 = vector.shape_cast %80 : vector<2x16x128xf32> to vector<32x128xf32>
    %82 = arith.truncf %81 : vector<32x128xf32> to vector<32x128xbf16>
    %cst_47 = arith.constant dense<0.000000e+00> : vector<32x128xf32>
    %83 = tpu.matmul %82, %17, %cst_47 {dimension_numbers = #tpu.dot_dimension_numbers<[1], [0], [0], [1], [0, 0, 1, 1], [], []>} : vector<32x128xbf16>, vector<128x128xbf16>, vector<32x128xf32> -> vector<32x128xf32>
    %84 = vector.shape_cast %83 : vector<32x128xf32> to vector<2x16x128xf32>
    %85 = vector.broadcast %10 : vector<2x1x128xf32> to vector<2x16x128xf32>
    %86 = arith.mulf %85, %84 : vector<2x16x128xf32>
    %87 = arith.addf %3, %86 : vector<2x16x128xf32>
    %88 = vector.shape_cast %87 : vector<2x16x128xf32> to vector<32x128xf32>
    %89 = arith.truncf %88 : vector<32x128xf32> to vector<32x128xbf16>
    %cst_48 = arith.constant dense<0.000000e+00> : vector<32x128xf32>
    %90 = tpu.matmul %89, %19, %cst_48 {dimension_numbers = #tpu.dot_dimension_numbers<[1], [0], [0], [1], [0, 0, 1, 1], [], []>} : vector<32x128xbf16>, vector<128x128xbf16>, vector<32x128xf32> -> vector<32x128xf32>
    %91 = vector.shape_cast %90 : vector<32x128xf32> to vector<2x16x128xf32>
    %92 = vector.shape_cast %4 : vector<2x8x128xbf16> to vector<16x128xbf16>
    %cst_49 = arith.constant dense<0.000000e+00> : vector<16x256xf32>
    %93 = tpu.matmul %92, %21, %cst_49 {dimension_numbers = #tpu.dot_dimension_numbers<[1], [0], [0], [1], [0, 0, 1, 1], [], []>} : vector<16x128xbf16>, vector<128x256xbf16>, vector<16x256xf32> -> vector<16x256xf32>
    %94 = vector.extract_strided_slice %93 {offsets = [0, 0], sizes = [16, 128], strides = [1, 1]} : vector<16x256xf32> to vector<16x128xf32>
    %95 = vector.shape_cast %94 : vector<16x128xf32> to vector<2x8x128xf32>
    %96 = vector.extract_strided_slice %93 {offsets = [0, 128], sizes = [16, 128], strides = [1, 1]} : vector<16x256xf32> to vector<16x128xf32>
    %97 = vector.shape_cast %96 : vector<16x128xf32> to vector<2x8x128xf32>
    %98 = arith.truncf %91 : vector<2x16x128xf32> to vector<2x16x128xbf16>
    %99 = arith.truncf %95 : vector<2x8x128xf32> to vector<2x8x128xbf16>
    "tpu.trace_start"() <{level = 10 : i32, message = "bmk,bnk->bmn"}> : () -> ()
    %cst_50 = arith.constant dense<0.000000e+00> : vector<2x16x8xf32>
    %100 = tpu.matmul %98, %99, %cst_50 {dimension_numbers = #tpu.dot_dimension_numbers<[2], [2], [1], [1], [0, 0, 0, 1, 1, 1], [0], [0]>} : vector<2x16x128xbf16>, vector<2x8x128xbf16>, vector<2x16x8xf32> -> vector<2x16x8xf32>
    "tpu.trace_stop"() : () -> ()
    %cst_51 = arith.constant 0.176776692 : f32
    %101 = vector.broadcast %cst_51 : f32 to vector<2x16x8xf32>
    %102 = arith.mulf %100, %101 : vector<2x16x8xf32>
    %103 = vector.broadcast %6 : vector<2x1x8xf32> to vector<2x16x8xf32>
    %104 = arith.addf %102, %103 : vector<2x16x8xf32>
    %cst_52 = arith.constant dense<0xFF800000> : vector<2x16xf32>
    %105 = vector.multi_reduction <maximumf>, %104, %cst_52 [2] : vector<2x16x8xf32> to vector<2x16xf32>
    %106 = vector.shape_cast %105 : vector<2x16xf32> to vector<2x16x1xf32>
    %107 = vector.broadcast %106 : vector<2x16x1xf32> to vector<2x16x8xf32>
    %108 = arith.subf %104, %107 : vector<2x16x8xf32>
    %109 = math.exp %108 : vector<2x16x8xf32>
    %cst_53 = arith.constant dense<0.000000e+00> : vector<2x16xf32>
    %110 = vector.multi_reduction <add>, %109, %cst_53 [2] : vector<2x16x8xf32> to vector<2x16xf32>
    %111 = vector.shape_cast %110 : vector<2x16xf32> to vector<2x16x1xf32>
    %112 = tpu.reciprocal %111 {approx = true} : vector<2x16x1xf32> -> vector<2x16x1xf32>
    %113 = vector.broadcast %112 : vector<2x16x1xf32> to vector<2x16x8xf32>
    %114 = arith.mulf %109, %113 : vector<2x16x8xf32>
    %115 = arith.truncf %114 : vector<2x16x8xf32> to vector<2x16x8xbf16>
    %116 = arith.truncf %97 : vector<2x8x128xf32> to vector<2x8x128xbf16>
    "tpu.trace_start"() <{level = 10 : i32, message = "bmn,bnk->bmk"}> : () -> ()
    %cst_54 = arith.constant dense<0.000000e+00> : vector<2x16x128xf32>
    %117 = tpu.matmul %115, %116, %cst_54 {dimension_numbers = #tpu.dot_dimension_numbers<[2], [1], [1], [2], [0, 0, 0, 1, 1, 2], [0], [0]>} : vector<2x16x8xbf16>, vector<2x8x128xbf16>, vector<2x16x128xf32> -> vector<2x16x128xf32>
    "tpu.trace_stop"() : () -> ()
    %118 = vector.shape_cast %117 : vector<2x16x128xf32> to vector<32x128xf32>
    %119 = arith.truncf %118 : vector<32x128xf32> to vector<32x128xbf16>
    %cst_55 = arith.constant dense<0.000000e+00> : vector<32x128xf32>
    %120 = tpu.matmul %119, %23, %cst_55 {dimension_numbers = #tpu.dot_dimension_numbers<[1], [0], [0], [1], [0, 0, 1, 1], [], []>} : vector<32x128xbf16>, vector<128x128xbf16>, vector<32x128xf32> -> vector<32x128xf32>
    %121 = vector.shape_cast %120 : vector<32x128xf32> to vector<2x16x128xf32>
    %122 = arith.addf %87, %121 : vector<2x16x128xf32>
    %cst_56 = arith.constant dense<0.000000e+00> : vector<2x16xf32>
    %123 = vector.multi_reduction <add>, %122, %cst_56 [2] : vector<2x16x128xf32> to vector<2x16xf32>
    %124 = vector.shape_cast %123 : vector<2x16xf32> to vector<2x16x1xf32>
    %cst_57 = arith.constant 3.125000e-02 : f32
    %125 = vector.broadcast %cst_57 : f32 to vector<2x16x1xf32>
    %126 = arith.mulf %124, %125 : vector<2x16x1xf32>
    %127 = arith.mulf %122, %122 : vector<2x16x128xf32>
    %cst_58 = arith.constant dense<0.000000e+00> : vector<2x16xf32>
    %128 = vector.multi_reduction <add>, %127, %cst_58 [2] : vector<2x16x128xf32> to vector<2x16xf32>
    %129 = vector.shape_cast %128 : vector<2x16xf32> to vector<2x16x1xf32>
    %cst_59 = arith.constant 3.125000e-02 : f32
    %130 = vector.broadcast %cst_59 : f32 to vector<2x16x1xf32>
    %131 = arith.mulf %129, %130 : vector<2x16x1xf32>
    %132 = arith.mulf %126, %126 : vector<2x16x1xf32>
    %133 = arith.subf %131, %132 : vector<2x16x1xf32>
    %134 = vector.broadcast %126 : vector<2x16x1xf32> to vector<2x16x128xf32>
    %135 = arith.subf %122, %134 : vector<2x16x128xf32>
    %cst_60 = arith.constant 9.99999997E-7 : f32
    %136 = vector.broadcast %cst_60 : f32 to vector<2x16x1xf32>
    %137 = arith.addf %133, %136 : vector<2x16x1xf32>
    %138 = math.rsqrt %137 : vector<2x16x1xf32>
    %139 = vector.broadcast %138 : vector<2x16x1xf32> to vector<2x16x128xf32>
    %140 = arith.mulf %135, %139 : vector<2x16x128xf32>
    %cst_61 = arith.constant 1.000000e+00 : f32
    %141 = vector.broadcast %cst_61 : f32 to vector<2x1x128xf32>
    %142 = arith.addf %141, %12 : vector<2x1x128xf32>
    %143 = vector.broadcast %142 : vector<2x1x128xf32> to vector<2x16x128xf32>
    %144 = arith.mulf %140, %143 : vector<2x16x128xf32>
    %145 = vector.broadcast %11 : vector<2x1x128xf32> to vector<2x16x128xf32>
    %146 = arith.addf %144, %145 : vector<2x16x128xf32>
    %147 = vector.shape_cast %146 : vector<2x16x128xf32> to vector<32x128xf32>
    %148 = arith.truncf %147 : vector<32x128xf32> to vector<32x128xbf16>
    %cst_62 = arith.constant dense<0.000000e+00> : vector<32x128xf32>
    %149 = tpu.matmul %148, %25, %cst_62 {dimension_numbers = #tpu.dot_dimension_numbers<[1], [0], [0], [1], [0, 0, 1, 1], [], []>} : vector<32x128xbf16>, vector<128x128xbf16>, vector<32x128xf32> -> vector<32x128xf32>
    %150 = arith.mulf %149, %149 : vector<32x128xf32>
    %151 = arith.mulf %149, %150 : vector<32x128xf32>
    %cst_63 = arith.constant 4.471500e-02 : f32
    %152 = vector.broadcast %cst_63 : f32 to vector<32x128xf32>
    %153 = arith.mulf %152, %151 : vector<32x128xf32>
    %154 = arith.addf %149, %153 : vector<32x128xf32>
    %cst_64 = arith.constant 0.797884583 : f32
    %155 = vector.broadcast %cst_64 : f32 to vector<32x128xf32>
    %156 = arith.mulf %155, %154 : vector<32x128xf32>
    %157 = math.tanh %156 : vector<32x128xf32>
    %cst_65 = arith.constant 1.000000e+00 : f32
    %158 = vector.broadcast %cst_65 : f32 to vector<32x128xf32>
    %159 = arith.addf %158, %157 : vector<32x128xf32>
    %cst_66 = arith.constant 5.000000e-01 : f32
    %160 = vector.broadcast %cst_66 : f32 to vector<32x128xf32>
    %161 = arith.mulf %160, %159 : vector<32x128xf32>
    %162 = arith.mulf %149, %161 : vector<32x128xf32>
    %163 = arith.truncf %162 : vector<32x128xf32> to vector<32x128xbf16>
    %cst_67 = arith.constant dense<0.000000e+00> : vector<32x128xf32>
    %164 = tpu.matmul %163, %27, %cst_67 {dimension_numbers = #tpu.dot_dimension_numbers<[1], [0], [0], [1], [0, 0, 1, 1], [], []>} : vector<32x128xbf16>, vector<128x128xbf16>, vector<32x128xf32> -> vector<32x128xf32>
    %165 = vector.shape_cast %164 : vector<32x128xf32> to vector<2x16x128xf32>
    %166 = vector.broadcast %13 : vector<2x1x128xf32> to vector<2x16x128xf32>
    %167 = arith.mulf %166, %165 : vector<2x16x128xf32>
    %168 = arith.addf %122, %167 : vector<2x16x128xf32>
    %c0_68 = arith.constant 0 : index
    %c0_69 = arith.constant 0 : index
    %c0_70 = arith.constant 0 : index
    %169 = vector.load %arg13[%c0_68, %c0_69, %c0_70] : memref<2x16x128xf32, #tpu.memory_space<vmem>>, vector<2x16x128xf32>
    tpu.vector_store %arg13[%c0_68, %c0_69, %c0_70], %168 {strides = array<i32>} : memref<2x16x128xf32, #tpu.memory_space<vmem>>, vector<2x16x128xf32>,
    %c0_i32_71 = arith.constant 0 : i32
    %170 = arith.cmpi eq, %arg0, %c0_i32_71 : i32
    %171 = arith.extui %170 : i1 to i32
    %c0_i32_72 = arith.constant 0 : i32
    %172 = arith.cmpi ne, %171, %c0_i32_72 : i32
    scf.if %172 {
      %c0_73 = arith.constant 0 : index
      %c0_74 = arith.constant 0 : index
      %c0_75 = arith.constant 0 : index
      %173 = vector.load %arg1[%c0_73, %c0_74, %c0_75] : memref<2x16x128xf32, #tpu.memory_space<vmem>>, vector<2x16x128xf32>
      %174 = arith.subf %168, %173 : vector<2x16x128xf32>
      %c0_76 = arith.constant 0 : index
      %c0_77 = arith.constant 0 : index
      %c0_78 = arith.constant 0 : index
      %175 = vector.load %arg14[%c0_76, %c0_77, %c0_78] : memref<2x16x128xf32, #tpu.memory_space<vmem>>, vector<2x16x128xf32>
      tpu.vector_store %arg14[%c0_76, %c0_77, %c0_78], %174 {strides = array<i32>} : memref<2x16x128xf32, #tpu.memory_space<vmem>>, vector<2x16x128xf32>,
    } else {
    }
    return
  }
  func.func @transform_0(%arg0: i32) -> (i32, i32, i32) {
    %c0_i32 = arith.constant 0 : i32
    %c0_i32_0 = arith.constant 0 : i32
    %c0_i32_1 = arith.constant 0 : i32
    %c0_i32_2 = arith.constant 0 : i32
    return %c0_i32, %c0_i32_0, %c0_i32_1 : i32, i32, i32
  }
  func.func @transform_1(%arg0: i32) -> (i32, i32, i32) {
    %c0_i32 = arith.constant 0 : i32
    %c0_i32_0 = arith.constant 0 : i32
    %c0_i32_1 = arith.constant 0 : i32
    %c0_i32_2 = arith.constant 0 : i32
    return %c0_i32, %c0_i32_0, %c0_i32_1 : i32, i32, i32
  }
  func.func @transform_2(%arg0: i32) -> (i32, i32, i32) {
    %c0_i32 = arith.constant 0 : i32
    %c0_i32_0 = arith.constant 0 : i32
    %c0_i32_1 = arith.constant 0 : i32
    %c0_i32_2 = arith.constant 0 : i32
    return %c0_i32, %c0_i32_0, %c0_i32_1 : i32, i32, i32
  }
  func.func @transform_3(%arg0: i32) -> (i32, i32, i32) {
    %c0_i32 = arith.constant 0 : i32
    %c0_i32_0 = arith.constant 0 : i32
    %c0_i32_1 = arith.constant 0 : i32
    %c0_i32_2 = arith.constant 0 : i32
    return %c0_i32, %c0_i32_0, %c0_i32_1 : i32, i32, i32
  }
  func.func @transform_4(%arg0: i32) -> (i32, i32, i32) {
    %c0_i32 = arith.constant 0 : i32
    %c0_i32_0 = arith.constant 0 : i32
    %c0_i32_1 = arith.constant 0 : i32
    %c0_i32_2 = arith.constant 0 : i32
    return %c0_i32, %c0_i32_0, %c0_i32_1 : i32, i32, i32
  }
  func.func @transform_5(%arg0: i32) -> (i32, i32, i32) {
    %c0_i32 = arith.constant 0 : i32
    %c0_i32_0 = arith.constant 0 : i32
    %c0_i32_1 = arith.constant 0 : i32
    return %arg0, %c0_i32, %c0_i32_0 : i32, i32, i32
  }
  func.func @transform_6(%arg0: i32) -> (i32, i32, i32) {
    %c0_i32 = arith.constant 0 : i32
    %c0_i32_0 = arith.constant 0 : i32
    %c0_i32_1 = arith.constant 0 : i32
    return %arg0, %c0_i32, %c0_i32_0 : i32, i32, i32
  }
  func.func @transform_7(%arg0: i32) -> (i32, i32, i32) {
    %c0_i32 = arith.constant 0 : i32
    %c0_i32_0 = arith.constant 0 : i32
    %c0_i32_1 = arith.constant 0 : i32
    return %arg0, %c0_i32, %c0_i32_0 : i32, i32, i32
  }
  func.func @transform_8(%arg0: i32) -> (i32, i32, i32) {
    %c0_i32 = arith.constant 0 : i32
    %c0_i32_0 = arith.constant 0 : i32
    %c0_i32_1 = arith.constant 0 : i32
    return %arg0, %c0_i32, %c0_i32_0 : i32, i32, i32
  }
  func.func @transform_9(%arg0: i32) -> (i32, i32, i32) {
    %c0_i32 = arith.constant 0 : i32
    %c0_i32_0 = arith.constant 0 : i32
    %c0_i32_1 = arith.constant 0 : i32
    return %arg0, %c0_i32, %c0_i32_0 : i32, i32, i32
  }
  func.func @transform_10(%arg0: i32) -> (i32, i32, i32) {
    %c0_i32 = arith.constant 0 : i32
    %c0_i32_0 = arith.constant 0 : i32
    %c0_i32_1 = arith.constant 0 : i32
    return %arg0, %c0_i32, %c0_i32_0 : i32, i32, i32
  }
  func.func @transform_11(%arg0: i32) -> (i32, i32, i32) {
    %c0_i32 = arith.constant 0 : i32
    %c0_i32_0 = arith.constant 0 : i32
    %c0_i32_1 = arith.constant 0 : i32
    return %arg0, %c0_i32, %c0_i32_0 : i32, i32, i32
  }
  func.func @transform_12(%arg0: i32) -> (i32, i32, i32) {
    %c0_i32 = arith.constant 0 : i32
    %c0_i32_0 = arith.constant 0 : i32
    %c0_i32_1 = arith.constant 0 : i32
    %c0_i32_2 = arith.constant 0 : i32
    return %c0_i32, %c0_i32_0, %c0_i32_1 : i32, i32, i32
  }
  func.func @transform_13(%arg0: i32) -> (i32, i32, i32) {
    %c0_i32 = arith.constant 0 : i32
    %c0_i32_0 = arith.constant 0 : i32
    %c0_i32_1 = arith.constant 0 : i32
    %c0_i32_2 = arith.constant 0 : i32
    return %c0_i32, %c0_i32_0, %c0_i32_1 : i32, i32, i32
  }
}

</mosaic_0001>

<bundles_post_ra>
// kernel: first_forward.3
= control target key start
LH: loop header
LB: loop body
LE: loop exit
PB: predicated region body
PF: predicated region fallthrough
CT: control target
= control target key end

     0   :  { %s4159_s0 = inlined_call_operand.vmem [shape: f32[2,16,128], index: 0, kind: input, shape index: {}]   ;;  %s4160_s1 = inlined_call_operand.vmem [shape: bf16[2,8,128], index: 1, kind: input, shape index: {}]   ;;  %s4161_s2 = inlined_call_operand.vmem [shape: f32[2,1,16], index: 2, kind: input, shape index: {}]   ;;  %s4162_s3 = inlined_call_operand.vmem [shape: f32[2,1,8], index: 3, kind: input, shape index: {}]   ;;  %s4163_s4 = inlined_call_operand.vmem [shape: f32[2,6,128], index: 4, kind: input, shape index: {}]   ;;  %s4164_s5 = inlined_call_operand.vmem [shape: bf16[2,128,384], index: 5, kind: input, shape index: {}]   ;;  %s4165_s6 = inlined_call_operand.hbm [shape: bf16[2,128,128], index: 6, kind: input, shape index: {}]   ;;  %s4166_s7 = inlined_call_operand.hbm [shape: bf16[2,128,128], index: 7, kind: input, shape index: {}]   ;;  %s4167_s8 = inlined_call_operand.vmem [shape: bf16[2,128,256], index: 8, kind: input, shape index: {}]   ;;  %s4168_s9 = inlined_call_operand.hbm [shape: bf16[2,128,128], index: 9, kind: input, shape index: {}]   ;;  %s4169_s10 = inlined_call_operand.hbm [shape: bf16[2,128,128], index: 10, kind: input, shape index: {}]   ;;  %s4170_s11 = inlined_call_operand.hbm [shape: bf16[2,128,128], index: 11, kind: input, shape index: {}]   ;;  %s4171_s12 = inlined_call_operand.hbm [shape: f32[2,16,128], index: 12, kind: output, shape index: {0}]   ;;  %s4172_s13 = inlined_call_operand.hbm [shape: f32[2,16,128], index: 13, kind: output, shape index: {1}]  }
   0x1   :  { %4186 = sst [smem:[#allocation21_spill]] %s4160_s1 }
   0x2   :  { %4187 = sst [smem:[#allocation22_spill]] %s4161_s2 }
   0x3   :  { %4188 = sst [smem:[#allocation23_spill]] %s4162_s3 }
   0x4   :  { %4189 = sst [smem:[#allocation24_spill]] %s4166_s7 }
   0x5   :  { %4190 = sst [smem:[#allocation25_spill]] %s4169_s10 }
   0x6   :  { %4191 = sst [smem:[#allocation26_spill]] %s4171_s12 }
   0x7   :  { %4192 = sst [smem:[#allocation27_spill]] %s4172_s13 }
   0x8   :  { %19 = vsyncpa [#allocation3], 0 }
   0x9   :  { %21 = vsyncpa [#allocation3 + $0x1], 0 }
   0xa   :  { %22 = vsyncpa [#allocation6], 0 }
   0xb   :  { %24 = vsyncpa [#allocation6 + $0x1], 0 }
   0xc   :  { %25 = vsyncpa [#allocation9], 0 }
   0xd   :  { %27 = vsyncpa [#allocation9 + $0x1], 0 }
   0xe   :  { %28 = vsyncpa [#allocation4], 0 }
   0xf   :  { %29 = vsyncpa [#allocation13], 0  ;;  %s3529_s25 = smov 0   ;;  %s3531_s26 = smov 0  }
  0x10   :  { %s3533_s27 = smov 0   ;;  %s3535_s28 = smov 0  }
  0x11 LB: > { %s3548_s29 = sadd.s32 4294967295, %s3443_s28   ;;  %s3551_s30 = sadd.s32 1, %s3443_s28   ;;  %s3443_s28 = sphi %s3535_s28, %s4214_s28   ;;  %s3439_s27 = sphi %s3533_s27, %s4218_s27   ;;  %s3435_s26 = sphi %s3531_s26, %s4217_s26   ;;  %s3431_s25 = sphi %s3529_s25, %s4216_s25  }
  0x12   : > { %4193 = sst [smem:[#allocation19_spill]] %s3551_s30  ;;  %s170_s14 = ssub.s32 %s3443_s28, %s3551_s30 }
  0x13   : > { %s173_s15 = sadd.s32 1, %s3439_s27  ;;  %p171_p0 = scmp.eq.s32.totalorder %s170_s14, 0 }
  0x14   : > { %p180_p1 = scmp.ne.s32.totalorder %s3439_s27, %s3435_s26  ;;  %p181_p2 = scmp.eq.s32.totalorder %s3443_s28, 0 }
  0x15   : > { %p186_p3 = scmp.ne.s32.totalorder %s3435_s26, %s3431_s25  ;;  %p187_p5 = scmp.eq.s32.totalorder %s3548_s29, 0 }
  0x16   : > { %s3561_s16 = scalar_select %p171_p0, %s3439_s27, %s173_s15  }
  0x17   : > { %p182_p4 = por %p181_p2, %p180_p1  ;;  %p2990_p6 = scmp.lt.s32.totalorder %s3443_s28, 2 }
  0x18   : > { %4194 = sst [smem:[#allocation20_spill]] %s3561_s16  ;;  %p3565_p7 = por %p187_p5, %p186_p3 }
  0x19   : > { %s4173_s18 = sand.u32 1, %s3439_s27   ;;  %s3575_s20 = sshll.u32 %s3443_s28, 10 }
  0x1a   : > { %s4195_s17 = scalar_select %p3565_p7, 1, 0 }
  0x1b   : > { %s3572_s19 = sshll.u32 %s4173_s18, 6  ;;  %p3577_p8 = pnand %p2990_p6, %p182_p4 }
  0x1c   : > { %s4178_s22 = sand.u32 1, %s3443_s28   ;;  %s4197_s7 = sld [smem:[#allocation24_spill]] }
  0x1d   : > { %s430_s14 = scalar_lea.vmem [#allocation5], %s3572_s19  ;;  %s3595_s18 = scalar_lea.sflag [#allocation6], %s4178_s22 }
  0x1e   : > { %s437_s15 = sshll.u32 %s430_s14, 4  ;;  %p3601_p12 = pneg %p3577_p8  ;;  %s3590_s15 = int_to_ptr.vmem [resolvable:$true] %s437_s15 }
  0x22   : > { %s3586_s25 = scalar_lea.hbm %s4197_s7, %s3575_s20  ;;  %s3196_s30 = scalar_lea.hbm %s4197_s7, 2048 }
  0x23   : > { %s3191_s16 = scalar_lea.hbm %s3586_s25, 1024  ;;  %p3197_p1 = scmp.lt.u32.totalorder %s3586_s25, %s4197_s7 }
  0x24   : > { %p3192_p11 = scmp.ne.s32.totalorder %s3586_s25, %s3191_s16  ;;  %p3198_p2 = scmp.lt.u32.totalorder %s3196_s30, %s3191_s16 }
  0x25   : > { %p3200_p4 = scmp.lt.u32.totalorder %s3191_s16, %s3586_s25 }
  0x26   : > { %p3194_p13 = pnand %p3601_p12, %p3192_p11  ;;  %p3199_p3 = por %p3198_p2, %p3197_p1 }
  0x28   : > { %p3195_p0 = pneg %p3194_p13  ;;  %p3201_p5 = por %p3200_p4, %p3199_p3 }
  0x2a   : > { %p3202_p6 = pnand %p3201_p5, %p3195_p0 }
  0x2c   : > { %3205 = shalt.err (!%p3202_p6)
}
  0x2d   : > { %s3206_s22 = scalar_lea.vmem %s3590_s15, 1024  ;;  %s3445_s24 = smov [#allocation5]  }
  0x2e   : > { %p3207_p11 = scmp.ne.s32.totalorder %s3590_s15, %s3206_s22  ;;  %s3211_s14 = sshll.u32 %s3445_s24, 4  ;;  %s3212_s14 = int_to_ptr.vmem [resolvable:$false] %s3211_s14 }
  0x2f   : > { %s3213_s12 = scalar_lea.vmem %s3212_s14, 2048  ;;  %p3214_p10 = scmp.lt.s32.totalorder %s3590_s15, %s3212_s14 }
  0x30   : > { %p3209_p13 = pnand %p3207_p11, %p3601_p12  ;;  %p3215_p7 = scmp.lt.s32.totalorder %s3213_s12, %s3206_s22 }
  0x32   : > { %p3210_p9 = pneg %p3209_p13  ;;  %p3216_p1 = por %p3215_p7, %p3214_p10 }
  0x34   : > { %p3217_p2 = pnand %p3216_p1, %p3210_p9 }
  0x36   : > { %3220 = shalt.err (!%p3217_p2)
}
  0x37   : > { %s4180_s13 = smov 64   ;;  %s4182_s30 = smov 4  }
  0x38   : > { %2980 = dma.hbm_to_vmem [thread:$0]  (!%p3577_p8), %s3586_s25, 1024, %s3590_s15, %s3595_s18, %s4180_s13, %s4180_s13, %s4182_s30  }
  0x39   : > { %p4199_p7 = scmp.lt.s32.totalorder %s3443_s28, 3  ;;  %p4200_p9 = scmp.ge.s32.totalorder %s3443_s28, 1 }
  0x3a   : > { %s4202_s10 = sld [smem:[#allocation25_spill]]  ;;  %s480_s12 = scalar_lea.vmem [#allocation8], %s3572_s19 }
  0x3b   : > { %p3632_p10 = pnand %p4200_p9, %p4199_p7  ;;  %s487_s7 = sshll.u32 %s480_s12, 4  ;;  %s3643_s7 = int_to_ptr.vmem [resolvable:$true] %s487_s7 }
  0x3c   : > { %s4203_s25 = sand.u32 1, %s3443_s28  }
  0x3d   : > { %s4201_s16 = scalar_select %p3632_p10, 1, 0 }
  0x3e   : > { %s3647_s15 = scalar_lea.sflag [#allocation9], %s4203_s25 }
  0x40   : > { %s3640_s14 = scalar_lea.hbm %s4202_s10, %s3575_s20  ;;  %s3226_s24 = scalar_lea.hbm %s4202_s10, 2048 }
  0x41   : > { %s3221_s13 = scalar_lea.hbm %s3640_s14, 1024  ;;  %p3227_p5 = scmp.lt.u32.totalorder %s3640_s14, %s4202_s10 }
  0x42   : > { %p3222_p0 = scmp.ne.s32.totalorder %s3640_s14, %s3221_s13  ;;  %p3228_p6 = scmp.lt.u32.totalorder %s3226_s24, %s3221_s13 }
  0x43   : > { %p3230_p13 = scmp.lt.u32.totalorder %s3221_s13, %s3640_s14 }
  0x44   : > { %p3224_p3 = pnand %p3222_p0, %p3601_p12  ;;  %p3229_p11 = por %p3228_p6, %p3227_p5 }
  0x46   : > { %p3225_p4 = pneg %p3224_p3  ;;  %p3231_p1 = por %p3230_p13, %p3229_p11 }
  0x48   : > { %p3232_p2 = pnand %p3231_p1, %p3225_p4 }
  0x4a   : > { %3235 = shalt.err (!%p3232_p2)
}
  0x4b   : > { %s3236_s28 = scalar_lea.vmem %s3643_s7, 1024  ;;  %s3448_s30 = smov [#allocation8]  }
  0x4c   : > { %p3237_p7 = scmp.ne.s32.totalorder %s3643_s7, %s3236_s28  ;;  %s3241_s12 = sshll.u32 %s3448_s30, 4  ;;  %s3242_s12 = int_to_ptr.vmem [resolvable:$false] %s3241_s12 }
  0x4d   : > { %s3243_s1 = scalar_lea.vmem %s3242_s12, 2048  ;;  %p3244_p3 = scmp.lt.s32.totalorder %s3643_s7, %s3242_s12 }
  0x4e   : > { %p3239_p9 = pnand %p3237_p7, %p3601_p12  ;;  %p3245_p10 = scmp.lt.s32.totalorder %s3243_s1, %s3236_s28 }
  0x50   : > { %p3240_p0 = pneg %p3239_p9  ;;  %p3246_p5 = por %p3245_p10, %p3244_p3 }
  0x52   : > { %p3247_p6 = pnand %p3246_p5, %p3240_p0 }
  0x54   : > { %3250 = shalt.err (!%p3247_p6)
}
  0x55   : > { %s4204_s3 = smov 4   ;;  %s4205_s13 = smov 64  }
  0x56   : > { %2986 = dma.hbm_to_vmem [thread:$0]  (!%p3577_p8), %s3640_s14, 1024, %s3643_s7, %s3647_s15, %s4205_s13, %s4205_s13, %s4204_s3  }
  0x57   : > { %s3678_s24 = scalar_lea.hbm %s4165_s6, %s3575_s20  ;;  %s409_s28 = scalar_lea.vmem [#allocation2], %s3572_s19 }
  0x58   : > { %s416_s30 = sshll.u32 %s409_s28, 4  ;;  %s4206_s12 = sand.u32 1, %s3439_s27   ;;  %s3681_s30 = int_to_ptr.vmem [resolvable:$true] %s416_s30 }
  0x59   : > { %s3685_s1 = scalar_lea.sflag [#allocation3], %s4206_s12  ;;  %s3251_s10 = scalar_lea.hbm %s3678_s24, 1024 }
  0x5a   : > { %p3252_p10 = scmp.ne.s32.totalorder %s3678_s24, %s3251_s10  ;;  %s3256_s25 = scalar_lea.hbm %s4165_s6, 2048 }
  0x5b   : > { %p3257_p13 = scmp.lt.u32.totalorder %s3678_s24, %s4165_s6  ;;  %p3258_p1 = scmp.lt.u32.totalorder %s3256_s25, %s3251_s10 }
  0x5c   : > { %p3254_p4 = pnand %p3252_p10, %p3601_p12  ;;  %p3260_p7 = scmp.lt.u32.totalorder %s3251_s10, %s3678_s24 }
  0x5d   : > { %p3259_p2 = por %p3258_p1, %p3257_p13 }
  0x5e   : > { %p3255_p11 = pneg %p3254_p4 }
  0x5f   : > { %p3261_p9 = por %p3260_p7, %p3259_p2 }
  0x61   : > { %p3262_p0 = pnand %p3261_p9, %p3255_p11 }
  0x63   : > { %3265 = shalt.err (!%p3262_p0)
}
  0x64   : > { %s3266_s28 = scalar_lea.vmem %s3681_s30, 1024  ;;  %s3449_s12 = smov [#allocation2]  }
  0x65   : > { %p3267_p3 = scmp.ne.s32.totalorder %s3681_s30, %s3266_s28  ;;  %s3271_s7 = sshll.u32 %s3449_s12, 4  ;;  %s3272_s7 = int_to_ptr.vmem [resolvable:$false] %s3271_s7 }
  0x66   : > { %s3273_s2 = scalar_lea.vmem %s3272_s7, 2048  ;;  %p3274_p10 = scmp.lt.s32.totalorder %s3681_s30, %s3272_s7 }
  0x67   : > { %p3269_p5 = pnand %p3267_p3, %p3601_p12  ;;  %p3275_p4 = scmp.lt.s32.totalorder %s3273_s2, %s3266_s28 }
  0x69   : > { %p3270_p6 = pneg %p3269_p5  ;;  %p3276_p13 = por %p3275_p4, %p3274_p10 }
  0x6b   : > { %p3277_p1 = pnand %p3276_p13, %p3270_p6 }
  0x6d   : > { %3280 = shalt.err (!%p3277_p1)
}
  0x6e   : > { %2977 = dma.hbm_to_vmem [thread:$0]  (!%p3577_p8), %s3678_s24, 1024, %s3681_s30, %s3685_s1, %s4205_s13, %s4205_s13, %s4204_s3  }
  0x6f   : > { %s3716_s25 = scalar_lea.hbm %s4168_s9, %s3575_s20  ;;  %s459_s22 = scalar_lea.vmem [#allocation7], %s3572_s19 }
  0x70   : > { %s466_s28 = sshll.u32 %s459_s22, 4  ;;  %s3281_s12 = scalar_lea.hbm %s3716_s25, 1024  ;;  %s3719_s28 = int_to_ptr.vmem [resolvable:$true] %s466_s28 }
  0x71   : > { %p3282_p11 = scmp.ne.s32.totalorder %s3716_s25, %s3281_s12  ;;  %s3286_s30 = scalar_lea.hbm %s4168_s9, 2048 }
  0x72   : > { %p3287_p9 = scmp.lt.u32.totalorder %s3716_s25, %s4168_s9  ;;  %p3288_p0 = scmp.lt.u32.totalorder %s3286_s30, %s3281_s12 }
  0x73   : > { %p3284_p2 = pnand %p3282_p11, %p3601_p12  ;;  %p3290_p5 = scmp.lt.u32.totalorder %s3281_s12, %s3716_s25 }
  0x74   : > { %p3289_p3 = por %p3288_p0, %p3287_p9 }
  0x75   : > { %p3285_p7 = pneg %p3284_p2 }
  0x76   : > { %p3291_p6 = por %p3290_p5, %p3289_p3 }
  0x78   : > { %p3292_p10 = pnand %p3291_p6, %p3285_p7 }
  0x7a   : > { %3295 = shalt.err (!%p3292_p10)
}
  0x7b   : > { %s3296_s10 = scalar_lea.vmem %s3719_s28, 1024  ;;  %s3450_s14 = smov [#allocation7]  }
  0x7c   : > { %p3297_p4 = scmp.ne.s32.totalorder %s3719_s28, %s3296_s10  ;;  %s3301_s22 = sshll.u32 %s3450_s14, 4  ;;  %s3302_s22 = int_to_ptr.vmem [resolvable:$false] %s3301_s22 }
  0x7d   : > { %s3303_s7 = scalar_lea.vmem %s3302_s22, 2048  ;;  %p3304_p11 = scmp.lt.s32.totalorder %s3719_s28, %s3302_s22 }
  0x7e   : > { %p3299_p13 = pnand %p3297_p4, %p3601_p12  ;;  %p3305_p2 = scmp.lt.s32.totalorder %s3303_s7, %s3296_s10 }
  0x80   : > { %p3300_p1 = pneg %p3299_p13  ;;  %p3306_p9 = por %p3305_p2, %p3304_p11 }
  0x82   : > { %p3307_p0 = pnand %p3306_p9, %p3300_p1 }
  0x84   : > { %3310 = shalt.err (!%p3307_p0)
}
  0x85   : > { %2983 = dma.hbm_to_vmem [thread:$0]  (!%p3577_p8), %s3716_s25, 1024, %s3719_s28, %s3595_s18, %s4205_s13, %s4205_s13, %s4204_s3  }
  0x86   : > { %s3750_s30 = scalar_lea.hbm %s4170_s11, %s3575_s20  ;;  %s501_s1 = scalar_lea.vmem [#allocation10], %s3572_s19 }
  0x87   : > { %s508_s2 = sshll.u32 %s501_s1, 4  ;;  %s3311_s10 = scalar_lea.hbm %s3750_s30, 1024  ;;  %s3753_s2 = int_to_ptr.vmem [resolvable:$true] %s508_s2 }
  0x88   : > { %p3312_p7 = scmp.ne.s32.totalorder %s3750_s30, %s3311_s10  ;;  %s3316_s25 = scalar_lea.hbm %s4170_s11, 2048 }
  0x89   : > { %p3317_p6 = scmp.lt.u32.totalorder %s3750_s30, %s4170_s11  ;;  %p3318_p10 = scmp.lt.u32.totalorder %s3316_s25, %s3311_s10 }
  0x8a   : > { %p3314_p3 = pnand %p3312_p7, %p3601_p12  ;;  %p3320_p13 = scmp.lt.u32.totalorder %s3311_s10, %s3750_s30 }
  0x8b   : > { %p3319_p4 = por %p3318_p10, %p3317_p6 }
  0x8c   : > { %p3315_p5 = pneg %p3314_p3 }
  0x8d   : > { %p3321_p1 = por %p3320_p13, %p3319_p4 }
  0x8f   : > { %p3322_p11 = pnand %p3321_p1, %p3315_p5 }
  0x91   : > { %3325 = shalt.err (!%p3322_p11)
}
  0x92   : > { %s3326_s19 = scalar_lea.vmem %s3753_s2, 1024  ;;  %s3451_s22 = smov [#allocation10]  }
  0x93   : > { %p3327_p2 = scmp.ne.s32.totalorder %s3753_s2, %s3326_s19  ;;  %s3331_s7 = sshll.u32 %s3451_s22, 4  ;;  %s3332_s7 = int_to_ptr.vmem [resolvable:$false] %s3331_s7 }
  0x94   : > { %s3333_s12 = scalar_lea.vmem %s3332_s7, 2048  ;;  %p3334_p7 = scmp.lt.s32.totalorder %s3753_s2, %s3332_s7 }
  0x95   : > { %p3329_p9 = pnand %p3327_p2, %p3601_p12  ;;  %p3335_p3 = scmp.lt.s32.totalorder %s3333_s12, %s3326_s19 }
  0x97   : > { %p3330_p0 = pneg %p3329_p9  ;;  %p3336_p6 = por %p3335_p3, %p3334_p7 }
  0x99   : > { %p3337_p10 = pnand %p3336_p6, %p3330_p0 }
  0x9b   : > { %3340 = shalt.err (!%p3337_p10)
}
  0x9c   : > { %2989 = dma.hbm_to_vmem [thread:$0]  (!%p3577_p8), %s3750_s30, 1024, %s3753_s2, %s3647_s15, %s4205_s13, %s4205_s13, %s4204_s3  }
  0x9d   : > { %p4207_p12 = scmp.ne.s32.totalorder %s4201_s16, 0 }
  0x9e   : > { %s522_s23 = sand.u32 (!%p4207_p12), 1, %s3435_s26   ;;  %p4208_p5 = scmp.ne.s32.totalorder (!%p4207_p12), %s4195_s17, 0 }
  0x9f   : > { %520 = sbr.rel (%p4207_p12) target bundleno = 3462 (0xd86), region = 68  ;;  %s2600_s24 = sshll.u32 (!%p4207_p12), %s522_s23, 6 }
  0xa0   : > { %s523_s1 = scalar_lea.sflag (!%p4207_p12), [#allocation3], %s522_s23  ;;  %s3783_s10 = scalar_lea.vmem (!%p4207_p12), [#allocation2], %s2600_s24 }
  0xa6   : > { %3410 = dma.done.wait (%p4208_p5), %s523_s1, 1024  }
  0xa7   : > { %3412 = vsyncadd (%p4208_p5), %s523_s1, 4294966272  ;;  %s531_s21 = sand.u32 1, %s3548_s29   ;;  %s3790_s15 = scalar_lea.vmem [#allocation5], %s2600_s24 }
  0xa8   : > { %s532_s14 = scalar_lea.sflag [#allocation6], %s531_s21 }
  0xa9   : > { %3414 = dma.done.wait (%p4208_p5), %s532_s14, 2048  }
  0xaa   : > { %3416 = vsyncadd (%p4208_p5), %s532_s14, 4294965248  ;;  %s3796_s16 = scalar_lea.vmem [#allocation7], %s2600_s24  ;;  %s550_s3 = scalar_lea.sflag [#allocation9], %s531_s21 }
  0xab   : > { %s3798_s13 = scalar_lea.vmem [#allocation8], %s2600_s24 }
  0xac   : > { %3418 = dma.done.wait (%p4208_p5), %s550_s3, 2048  }
  0xad   : > { %3420 = vsyncadd (%p4208_p5), %s550_s3, 4294965248  ;;  %p630_p8 = scmp.lt.s32.totalorder %s3548_s29, 1  ;;  %s3816_s12 = scalar_lea.vmem [#allocation10], %s2600_s24 }
  0xae   : > { %p2608_p4 = scmp.ne.s32.totalorder %s3548_s29, 0 }
  0xaf   : > { %s631_s30 = scalar_select %p630_p8, %s3548_s29, 1 }
  0xb0   : > { %644 = sbr.rel (%p2608_p4) target bundleno = 183 (0xb7), region = 92  ;;  %v645_v0 = vld [vmem:[%s4159_s0] sm:$0xff] (!%p2608_p4)  ;;  %v646_v1 = vld [vmem:[%s4159_s0 + $0x8] sm:$0xff] (!%p2608_p4)  ;;  %v647_v2 = vld [vmem:[%s4159_s0 + $0x10] sm:$0xff] (!%p2608_p4) }
  0xb1   : > { %s2955_s2 = smul.u32 192, %s631_s30  ;;  %s2710_s18 = sshll.u32 %s631_s30, 7  ;;  %649 = vst [vmem:[#allocation11] sm:$0xff] (!%p2608_p4), %v645_v0  ;;  %650 = vst [vmem:[#allocation11 + $0x8] sm:$0xff] (!%p2608_p4), %v646_v1  ;;  %v648_v3 = vld [vmem:[%s4159_s0 + $0x18] sm:$0xff] (!%p2608_p4) }
  0xb2   : > { %s3809_s20 = scalar_lea.vmem %s4167_s8, %s2710_s18  ;;  %651 = vst [vmem:[#allocation11 + $0x10] sm:$0xff] (!%p2608_p4), %v647_v2  ;;  %652 = vst [vmem:[#allocation11 + $0x18] sm:$0xff] (!%p2608_p4), %v648_v3 }
  0xb3   : > { %s3814_s7 = scalar_lea.vmem %s4164_s5, %s2955_s2 }
  0xb7 PF: > { %v3036_v7 = vld [vmem:[%s3814_s7 + $0x4] ss:$12 sps:$4 sm:$0xff]   ;;  %v3038_v13 = vld [vmem:[%s3814_s7] ss:$12 sps:$4 sm:$0xff]   ;;  %v3039_v14 = vld [vmem:[%s3814_s7 + $0x1c] ss:$12 sps:$4 sm:$0xff]   ;;  %v847_v50 = vlaneseq }
  0xb8   : > { %v3831_v4 = vld [vmem:[#allocation11] sm:$0xff]  ;;  %v3833_v5 = vld [vmem:[#allocation11 + $0x8] sm:$0xff]  ;;  %1001 = vmatprep.subr.bf16.mxu0 %v3036_v7  ;;  %v3045_v18 = vld [vmem:[%s3814_s7 + $0x30] ss:$12 sps:$4 sm:$0xff]   ;;  %v3452_v34 = vmov 0   ;;  %vm3454_vm0 = vmmov 0  }
  0xb9   : > { %793 = vadd.xlane.f32.xlu0 %v3831_v4  ;;  %v805_v6 = vmul.f32 %v3831_v4, %v3831_v4  ;;  %v806_v8 = vmul.f32 %v3833_v5, %v3833_v5  ;;  %v3841_v9 = vld [vmem:[#allocation11 + $0x10] sm:$0xff]  ;;  %v3844_v10 = vld [vmem:[#allocation11 + $0x18] sm:$0xff]  ;;  %1002 = vmatpush1.bf16.msra.mxu0 %v3038_v13  ;;  %v3048_v20 = vld [vmem:[%s3814_s7 + $0x20] ss:$12 sps:$4 sm:$0xff]   ;;  %v3876_v58 = vshrl.u32 %v847_v50, 7  ;;  %vm1209_vm1 = vcmask 130048  }
  0xba   : > { %v807_v11 = vmul.f32 %v3841_v9, %v3841_v9  ;;  %v808_v12 = vmul.f32 %v3844_v10, %v3844_v10  ;;  %v3041_v15 = vld [vmem:[%s3814_s7 + $0x18] ss:$12 sps:$4 sm:$0xff]   ;;  %1003 = vmatprep.subr.bf16.mxu0 %v3039_v14  ;;  %v3042_v16 = vld [vmem:[%s3814_s7 + $0x34] ss:$12 sps:$4 sm:$0xff]   ;;  %v3054_v25 = vld [vmem:[%s3814_s7 + $0x7c] ss:$12 sps:$4 sm:$0xff]   ;;  %1033 = vmatprep.mubr.bf16.mxu0 %v3452_v34 }
  0xbb   : > { %809 = vadd.xlane.f32.xlu1 %v805_v6  ;;  %v3044_v17 = vld [vmem:[%s3814_s7 + $0x8] ss:$12 sps:$4 sm:$0xff]   ;;  %v3046_v19 = vld [vmem:[%s3814_s7 + $0x4c] ss:$12 sps:$4 sm:$0xff]   ;;  %v3050_v22 = vld [vmem:[%s3814_s7 + $0x64] ss:$12 sps:$4 sm:$0xff]  }
  0xbc   : > { %2787 = vmatprep.subr.bf16.mxu1 %v3044_v17  ;;  %v3049_v21 = vld [vmem:[%s3814_s7 + $0x48] ss:$12 sps:$4 sm:$0xff]   ;;  %v3052_v23 = vld [vmem:[%s3814_s7 + $0x38] ss:$12 sps:$4 sm:$0xff]   ;;  %v3053_v24 = vld [vmem:[%s3814_s7 + $0x60] ss:$12 sps:$4 sm:$0xff]  }
  0xbd   : > { %795 = vadd.xlane.f32.xlu0 %v3833_v5  ;;  %1004 = vmatpush1.bf16.msra.mxu0 %v3041_v15  ;;  %v3056_v26 = vld [vmem:[%s3814_s7 + $0x50] ss:$12 sps:$4 sm:$0xff]   ;;  %v3057_v27 = vld [vmem:[%s3814_s7 + $0x78] ss:$12 sps:$4 sm:$0xff]   ;;  %v3058_v28 = vld [vmem:[%s3814_s7 + $0x94] ss:$12 sps:$4 sm:$0xff]  }
  0xbe   : > { %1005 = vmatprep.subr.bf16.mxu0 %v3042_v16  ;;  %2788 = vmatpush3.bf16.msra.mxu1 %v3044_v17  ;;  %v3060_v29 = vld [vmem:[%s3814_s7 + $0x68] ss:$12 sps:$4 sm:$0xff]   ;;  %v3061_v30 = vld [vmem:[%s3814_s7 + $0x90] ss:$12 sps:$4 sm:$0xff]   ;;  %v3062_v31 = vld [vmem:[%s3814_s7 + $0xac] ss:$12 sps:$4 sm:$0xff]  }
  0xbf   : > { %811 = vadd.xlane.f32.xlu1 %v806_v8  ;;  %2789 = vmatprep.subr.bf16.mxu1 %v3048_v20  ;;  %v3064_v32 = vld [vmem:[%s3814_s7 + $0x80] ss:$12 sps:$4 sm:$0xff]   ;;  %v3065_v33 = vld [vmem:[%s3814_s7 + $0xa8] ss:$12 sps:$4 sm:$0xff]   ;;  %v3066_v35 = vld [vmem:[%s3814_s7 + $0x98] ss:$12 sps:$4 sm:$0xff]  }
  0xc0   : > { %v3067_v36 = vld [vmem:[%s3814_s7 + $0xb0] ss:$12 sps:$4 sm:$0xff]   ;;  %v3881_v60 = vld [vmem:[%s4163_s4] sm:$0x3f]  ;;  %v849_v2 = vsub.s32 1, %v3876_v58  ;;  %v861_v14 = vsub.s32 0, %v3876_v58 }
  0xc1   : > { %797 = vadd.xlane.f32.xlu0 %v3841_v9  ;;  %1006 = vmatpush1.bf16.msra.mxu0 %v3045_v18  ;;  %v3884_v1 = vadd.f32 1.0, %v3881_v60  ;;  %v3893_v15 = vld [vmem:[%s4163_s4 + $0x8] sm:$0x3f]  ;;  %s4209_s7 = sld [smem:[#allocation22_spill]]  ;;  %s4210_s21 = sld [smem:[#allocation21_spill]]  ;;  %vm1847_vm2 = vcmask 1043456  }
  0xc2   : > { %1007 = vmatprep.subr.bf16.mxu0 %v3046_v19  ;;  %2790 = vmatpush3.bf16.msra.mxu1 %v3048_v20  ;;  %v862_v20 = vrot.slane %v3881_v60, %v861_v14  ;;  %s4211_s14 = sld [smem:[#allocation23_spill]]  ;;  %vm1795_vm3 = vcmask 64512   ;;  %p2698_p13 = scmp.ne.s32.totalorder %s3548_s29, 1 }
  0xc3   : > { %799 = vadd.xlane.f32.xlu1 %v3844_v10  ;;  %2791 = vmatprep.subr.bf16.mxu1 %v3052_v23  ;;  %v850_v13 = vrot.slane %v3884_v1, %v849_v2 }
  0xc5   : > { %813 = vadd.xlane.f32.xlu0 %v807_v11  ;;  %1008 = vmatpush1.bf16.msra.mxu0 %v3049_v21  ;;  %v3898_v21 = vadd.f32 1.0, %v3893_v15 }
  0xc6   : > { %1009 = vmatprep.subr.bf16.mxu0 %v3050_v22  ;;  %2792 = vmatpush3.bf16.msra.mxu1 %v3052_v23 }
  0xc7   : > { %815 = vadd.xlane.f32.xlu1 %v808_v12  ;;  %2793 = vmatprep.subr.bf16.mxu1 %v3056_v26 }
  0xc9   : > { %1010 = vmatpush1.bf16.msra.mxu0 %v3053_v24 }
  0xca   : > { %1011 = vmatprep.subr.bf16.mxu0 %v3054_v25  ;;  %2794 = vmatpush3.bf16.msra.mxu1 %v3056_v26  ;;  %v854_v26 = vrot.slane %v3898_v21, %v849_v2 }
  0xcb   : > { %2795 = vmatprep.subr.bf16.mxu1 %v3060_v29 }
  0xcd   : > { %1012 = vmatpush1.bf16.msra.mxu0 %v3057_v27 }
  0xce   : > { %1013 = vmatprep.subr.bf16.mxu0 %v3058_v28  ;;  %2796 = vmatpush3.bf16.msra.mxu1 %v3060_v29 }
  0xcf   : > { %2797 = vmatprep.subr.bf16.mxu1 %v3064_v32 }
  0xd1   : > { %1014 = vmatpush1.bf16.msra.mxu0 %v3061_v30 }
  0xd2   : > { %1015 = vmatprep.subr.bf16.mxu0 %v3062_v31  ;;  %2798 = vmatpush3.bf16.msra.mxu1 %v3064_v32 }
  0xd3   : > { %2799 = vmatprep.subr.bf16.mxu1 %v3066_v35 }
  0xd5   : > { %1016 = vmatpush1.bf16.msra.mxu0 %v3065_v33 }
  0xd6   : > { %2800 = vmatpush3.bf16.msra.mxu1 %v3066_v35  ;;  %v866_v35 = vrot.slane %v3893_v15, %v861_v14  ;;  %v2634_v14 = vld [vmem:[%s4209_s7 + $0x1] ss:$0 sm:$0xff] }
  0xd7   : > { %2801 = vmatprep.subr.bf16.mxu1 %v3067_v36 }
  0xda   : > { %2802 = vmatpush3.bf16.msra.mxu1 %v3067_v36 }
 0x146   : > { %v794_v37 = vpop.xlane.xlu0 %793 }
 0x147   : > { %v801_v38 = vmul.f32 0.03125, %v794_v37 }
 0x148   : > { %v810_v39 = vpop.xlane.xlu1 %809 }
 0x149   : > { %v821_v40 = vmul.f32 %v801_v38, %v801_v38  ;;  %v817_v41 = vmul.f32 0.03125, %v810_v39  ;;  %v829_v7 = vsub.f32 %v3831_v4, %v801_v38 }
 0x14a   : > { %v796_v42 = vpop.xlane.xlu0 %795 }
 0x14b   : > { %v825_v43 = vsub.f32 %v817_v41, %v821_v40  ;;  %v802_v44 = vmul.f32 0.03125, %v796_v42  ;;  %v3453_v40 = vmov 0.0  }
 0x14c   : > { %v812_v45 = vpop.xlane.xlu1 %811  ;;  %2807 = vmatprep.subr.bf16.mxu0 %v3453_v40  ;;  %2819 = vmatprep.subr.bf16.mxu1 %v3453_v40 }
 0x14d   : > { %v833_v46 = vadd.f32 1e-06, %v825_v43  ;;  %v822_v47 = vmul.f32 %v802_v44, %v802_v44  ;;  %v818_v48 = vmul.f32 0.03125, %v812_v45  ;;  %v830_v16 = vsub.f32 %v3833_v5, %v802_v44 }
 0x14e   : > { %v798_v49 = vpop.xlane.xlu0 %797 }
 0x14f   : > { %3133 = vrsqrt.f32 %v833_v46  ;;  %v826_v51 = vsub.f32 %v818_v48, %v822_v47  ;;  %v803_v52 = vmul.f32 0.03125, %v798_v49 }
 0x150   : > { %v800_v53 = vpop.xlane.xlu1 %799 }
 0x151   : > { %v834_v54 = vadd.f32 1e-06, %v826_v51  ;;  %v823_v55 = vmul.f32 %v803_v52, %v803_v52  ;;  %v804_v56 = vmul.f32 0.03125, %v800_v53  ;;  %v831_v23 = vsub.f32 %v3841_v9, %v803_v52 }
 0x152   : > { %v814_v57 = vpop.xlane.xlu0 %813 }
 0x153   : > { %3135 = vrsqrt.f32 %v834_v54  ;;  %v819_v59 = vmul.f32 0.03125, %v814_v57  ;;  %v824_v62 = vmul.f32 %v804_v56, %v804_v56  ;;  %v832_v28 = vsub.f32 %v3844_v10, %v804_v56 }
 0x154   : > { %v816_v61 = vpop.xlane.xlu1 %815 }
 0x155   : > { %v827_v63 = vsub.f32 %v819_v59, %v823_v55  ;;  %v820_v0 = vmul.f32 0.03125, %v816_v61 }
 0x157   : > { %v835_v3 = vadd.f32 1e-06, %v827_v63  ;;  %v828_v6 = vsub.f32 %v820_v0, %v824_v62  ;;  %v2633_v62 = vld [vmem:[%s4209_s7] ss:$0 sm:$0xff] }
 0x159   : > { %v3134_v8 = vpop.eup %3133  ;;  %3137 = vrsqrt.f32 %v835_v3  ;;  %v836_v11 = vadd.f32 1e-06, %v828_v6 }
 0x15a   : > { %v841_v12 = vmul.f32 %v3134_v8, %v829_v7 }
 0x15b   : > { %3139 = vrsqrt.f32 %v836_v11 }
 0x15c   : > { %v855_v19 = vmul.f32 %v850_v13, %v841_v12 }
 0x15d   : > { %v3136_v17 = vpop.eup %3135 }
 0x15e   : > { %v842_v18 = vmul.f32 %v3136_v17, %v830_v16  ;;  %v867_v24 = vadd.f32 %v862_v20, %v855_v19 }
 0x160   : > { %v856_v22 = vmul.f32 %v850_v13, %v842_v18 }
 0x162   : > { %v868_v25 = vadd.f32 %v862_v20, %v856_v22 }
 0x163   : > { %v3138_v27 = vpop.eup %3137 }
 0x164   : > { %v871_v29 = vpack.c.bf16 %v868_v25, %v867_v24  ;;  %v843_v30 = vmul.f32 %v3138_v27, %v831_v23 }
 0x165   : > { %v3140_v31 = vpop.eup %3139 }
 0x166   : > { %1034 = vmatmul.mubr.bf16.vlgmr.msra.gmra.mrb[0].mxu0 %v871_v29  ;;  %2803 = vmatprep.mubr.bf16.mxu1 %v871_v29  ;;  %v844_v32 = vmul.f32 %v3140_v31, %v832_v28  ;;  %v857_v33 = vmul.f32 %v854_v26, %v843_v30 }
 0x167   : > { %1043 = vmatprep.mubr.bf16.mxu0 %v3452_v34 }
 0x168   : > { %v858_v36 = vmul.f32 %v854_v26, %v844_v32  ;;  %v869_v37 = vadd.f32 %v866_v35, %v857_v33 }
 0x16a   : > { %v870_v38 = vadd.f32 %v866_v35, %v858_v36 }
 0x16c   : > { %v872_v39 = vpack.c.bf16 %v870_v38, %v869_v37 }
 0x16e   : > { %1044 = vmatmul.mubr.bf16.gmra.mrb[4].mxu0 %v872_v39  ;;  %2804 = vmatmul.mubr.bf16.vlgmr.msra.gmra.mrb[0].mxu1 %v872_v39 }
 0x16f   : > { %2809 = vmatprep.mubr.msk.bf16.mxu0 %vm3454_vm0, %v3453_v40  ;;  %2821 = vmatprep.mubr.msk.bf16.mxu1 %vm3454_vm0, %v3453_v40 }
 0x239   : > { %v1035_v41 = vpop.f32.mrb[0].mxu0 }
 0x23a   : > { %v1037_v42 = vpop.f32.mrb[1].mxu0 }
 0x23b   : > { %v1039_v43 = vpop.f32.mrb[2].mxu0 }
 0x23c   : > { %v1103_v44 = vpack.c.bf16 %v1039_v43, %v1035_v41  ;;  %v1041_v45 = vpop.f32.mrb[3].mxu0 }
 0x23d   : > { %v1105_v46 = vpack.c.bf16 %v1041_v45, %v1037_v42 }
 0x23f   : > { %2808 = vmatpush3.bf16.xpose.msra.mxu0 %v1105_v46 }
 0x240   : > { %2813 = vmatprep.subr.bf16.mxu0 %v3453_v40 }
 0x241   : > { %v1045_v47 = vpop.f32.mrb[4].mxu0  ;;  %v2805_v48 = vpop.f32.mrb[0].mxu1 }
 0x242   : > { %v1047_v49 = vpop.f32.mrb[5].mxu0  ;;  %v1088_v50 = vpop.f32.mrb[1].mxu1 }
 0x243   : > { %v1049_v51 = vpop.f32.mrb[6].mxu0  ;;  %v2806_v52 = vpop.f32.mrb[2].mxu1 }
 0x244   : > { %v1104_v53 = vpack.c.bf16 %v1049_v51, %v1045_v47  ;;  %v1257_v54 = vpack.c.bf16 %v2806_v52, %v2805_v48  ;;  %v1051_v55 = vpop.f32.mrb[7].mxu0  ;;  %v1091_v56 = vpop.f32.mrb[3].mxu1  ;;  %v3068_v48 = vld [vmem:[%s3783_s10] sm:$0xff]  }
 0x245   : > { %v1106_v57 = vpack.c.bf16 %v1051_v55, %v1047_v49  ;;  %v1256_v59 = vpack.c.bf16 %v1091_v56, %v1088_v50 }
 0x246   : > { %2810 = vmatmul.mubr.bf16.vlgmr.msra.gmra.mrb[8].mxu0 %v1103_v44 }
 0x247   : > { %2814 = vmatpush3.bf16.xpose.msra.mxu0 %v1106_v57  ;;  %2820 = vmatpush3.bf16.msra.mxu1 %v1256_v59  ;;  %v3069_v59 = vld [vmem:[%s3783_s10 + $0x8] sm:$0xff]  }
 0x248   : > { %2815 = vmatprep.mubr.msk.bf16.mxu0 %vm3454_vm0, %v3453_v40  ;;  %2825 = vmatprep.subr.bf16.mxu0 %v3453_v40 }
 0x249   : > { %2831 = vmatprep.subr.bf16.mxu1 %v3068_v48 }
 0x24e   : > { %2816 = vmatmul.mubr.bf16.vlgmr.msra.gmra.mrb[12].mxu0 %v1104_v53 }
 0x24f   : > { %2826 = vmatpush3.bf16.msra.mxu0 %v1257_v54  ;;  %2827 = vmatprep.mubr.msk.bf16.mxu0 %vm3454_vm0, %v3453_v40 }
 0x319   : > { %v1141_v61 = vpop.f32.mrb[8].mxu0 }
 0x31a   : > { %v1189_v63 = vmul.f32 0.17677669, %v1141_v61  ;;  %v2811_v0 = vpop.f32.mrb[9].mxu0 }
 0x31b   : > { %v1144_v2 = vpop.f32.mrb[10].mxu0 }
 0x31c   : > { %v1190_v3 = vmul.f32 0.17677669, %v1144_v2  ;;  %v2812_v6 = vpop.f32.mrb[11].mxu0  ;;  %v1205_v7 = vadd.f32 %v2633_v62, %v1189_v63 }
 0x31d   : > { %v3071_v6 = vld [vmem:[%s3783_s10 + $0x18] sm:$0xff]  }
 0x31e   : > { %v1210_v8 = vsel %vm1209_vm1, %v1205_v7, -inf  ;;  %v1206_v11 = vadd.f32 %v2633_v62, %v1190_v3  ;;  %v3070_v62 = vld [vmem:[%s3783_s10 + $0x10] sm:$0xff]  }
 0x31f   : > { %1211 = vmax.xlane.f32.xlu0 %v1210_v8  ;;  %v3073_v8 = vld [vmem:[%s3783_s10 + $0x28] sm:$0xff]  }
 0x320   : > { %v1213_v12 = vsel %vm1209_vm1, %v1206_v11, -inf }
 0x321   : > { %1214 = vmax.xlane.f32.xlu1 %v1213_v12  ;;  %v1182_v13 = vpop.f32.mrb[12].mxu0  ;;  %v3075_v12 = vld [vmem:[%s3783_s10 + $0x38] sm:$0xff]  }
 0x322   : > { %v1191_v16 = vmul.f32 0.17677669, %v1182_v13  ;;  %v2817_v17 = vpop.f32.mrb[13].mxu0  ;;  %v3078_v13 = vld [vmem:[%s3809_s20 + $0x4] ss:$8 sps:$4 sm:$0xff]  }
 0x323   : > { %v1185_v18 = vpop.f32.mrb[14].mxu0  ;;  %v3090_v17 = vld [vmem:[%s3790_s15 + $0x10] sm:$0xff]  }
 0x324   : > { %v1192_v19 = vmul.f32 0.17677669, %v1185_v18  ;;  %v2818_v20 = vpop.f32.mrb[15].mxu0  ;;  %v1207_v22 = vadd.f32 %v2634_v14, %v1191_v16  ;;  %v3086_v16 = vld [vmem:[%s3790_s15 + $0x8] sm:$0xff]   ;;  %v3094_v18 = vld [vmem:[%s3790_s15 + $0x18] sm:$0xff]  }
 0x325   : > { %v3102_v20 = vld [vmem:[%s3790_s15 + $0x28] sm:$0xff]  }
 0x326   : > { %v1216_v23 = vsel %vm1209_vm1, %v1207_v22, -inf  ;;  %v1208_v24 = vadd.f32 %v2634_v14, %v1192_v19  ;;  %v3082_v14 = vld [vmem:[%s3790_s15] sm:$0xff]  }
 0x327   : > { %1217 = vmax.xlane.f32.xlu0 %v1216_v23  ;;  %2851 = vmatprep.subr.bf16.mxu0 %v3082_v14  ;;  %v3098_v19 = vld [vmem:[%s3790_s15 + $0x20] sm:$0xff]  }
 0x328   : > { %v1219_v25 = vsel %vm1209_vm1, %v1208_v24, -inf }
 0x329   : > { %1220 = vmax.xlane.f32.xlu1 %v1219_v25 }
 0x3ac   : > { %v1212_v26 = vpop.xlane.xlu0 %1211 }
 0x3ad   : > { %v1222_v27 = vsub.f32 %v1205_v7, %v1212_v26  ;;  %v3072_v7 = vld [vmem:[%s3783_s10 + $0x20] sm:$0xff]  }
 0x3ae   : > { %v1215_v28 = vpop.xlane.xlu1 %1214 }
 0x3af   : > { %v1226_v29 = vmul.f32 1.442695, %v1222_v27  ;;  %v1223_v30 = vsub.f32 %v1206_v11, %v1215_v28  ;;  %v3074_v11 = vld [vmem:[%s3783_s10 + $0x30] sm:$0xff]  }
 0x3b1   : > { %3141 = vpow2.f32 %v1226_v29  ;;  %v1228_v31 = vmul.f32 1.442695, %v1223_v30  ;;  %v3076_v30 = vld [vmem:[%s3809_s20] ss:$8 sps:$4 sm:$0xff]  }
 0x3b3   : > { %3143 = vpow2.f32 %v1228_v31 }
 0x3b4   : > { %v1218_v32 = vpop.xlane.xlu0 %1217 }
 0x3b5   : > { %v1224_v33 = vsub.f32 %v1207_v22, %v1218_v32 }
 0x3b6   : > { %v1221_v35 = vpop.xlane.xlu1 %1220 }
 0x3b7   : > { %v1230_v36 = vmul.f32 1.442695, %v1224_v33  ;;  %v1225_v37 = vsub.f32 %v1208_v24, %v1221_v35  ;;  %v3081_v33 = vld [vmem:[%s3809_s20 + $0x14] ss:$8 sps:$4 sm:$0xff]   ;;  %v3079_v35 = vld [vmem:[%s3809_s20 + $0x10] ss:$8 sps:$4 sm:$0xff]  }
 0x3b9   : > { %3145 = vpow2.f32 %v1230_v36  ;;  %v1232_v38 = vmul.f32 1.442695, %v1225_v37  ;;  %v3085_v36 = vld [vmem:[%s3809_s20 + $0x24] ss:$8 sps:$4 sm:$0xff]   ;;  %v3083_v37 = vld [vmem:[%s3809_s20 + $0x20] ss:$8 sps:$4 sm:$0xff]  }
 0x3bb   : > { %v3142_v39 = vpop.eup %3141  ;;  %3147 = vpow2.f32 %v1232_v38  ;;  %v3089_v38 = vld [vmem:[%s3809_s20 + $0x34] ss:$8 sps:$4 sm:$0xff]  }
 0x3bc   : > { %v1234_v41 = vsel %vm1209_vm1, %v3142_v39, 0.0 }
 0x3bd   : > { %v3144_v42 = vpop.eup %3143  ;;  %1235 = vadd.xlane.f32.xlu0 %v1234_v41  ;;  %v3093_v41 = vld [vmem:[%s3809_s20 + $0x44] ss:$8 sps:$4 sm:$0xff]  }
 0x3be   : > { %v1237_v43 = vsel %vm1209_vm1, %v3144_v42, 0.0 }
 0x3bf   : > { %1238 = vadd.xlane.f32.xlu1 %v1237_v43  ;;  %v3095_v43 = vld [vmem:[%s3809_s20 + $0x50] ss:$8 sps:$4 sm:$0xff]  }
 0x3c3   : > { %v3146_v44 = vpop.eup %3145 }
 0x3c4   : > { %v1240_v45 = vsel %vm1209_vm1, %v3146_v44, 0.0 }
 0x3c5   : > { %v3148_v46 = vpop.eup %3147  ;;  %1241 = vadd.xlane.f32.xlu0 %v1240_v45  ;;  %v3099_v45 = vld [vmem:[%s3809_s20 + $0x60] ss:$8 sps:$4 sm:$0xff]  }
 0x3c6   : > { %v1243_v47 = vsel %vm1209_vm1, %v3148_v46, 0.0 }
 0x3c7   : > { %1244 = vadd.xlane.f32.xlu1 %v1243_v47  ;;  %v3103_v47 = vld [vmem:[%s3809_s20 + $0x70] ss:$8 sps:$4 sm:$0xff]  }
 0x44a   : > { %v1236_v49 = vpop.xlane.xlu0 %1235 }
 0x44b   : > { %3149 = vrcp.f32 %v1236_v49  ;;  %v3107_v49 = vld [vmem:[%s4210_s21] sm:$0xff]  }
 0x44c   : > { %v1239_v50 = vpop.xlane.xlu1 %1238 }
 0x44d   : > { %3151 = vrcp.f32 %v1239_v50  ;;  %v3108_v50 = vld [vmem:[%s3790_s15 + $0x38] sm:$0xff]  }
 0x452   : > { %v1242_v51 = vpop.xlane.xlu0 %1241 }
 0x453   : > { %3153 = vrcp.f32 %v1242_v51  ;;  %v1447_v51 = vsub.s32 2, %v3876_v58 }
 0x454   : > { %v1245_v52 = vpop.xlane.xlu1 %1244 }
 0x455   : > { %v3150_v53 = vpop.eup %3149  ;;  %3155 = vrcp.f32 %v1245_v52  ;;  %v1448_v52 = vrot.slane %v3881_v60, %v1447_v51 }
 0x456   : > { %v1250_v55 = vmul.f32 %v3150_v53, %v3142_v39  ;;  %v3087_v39 = vld [vmem:[%s3809_s20 + $0x30] ss:$8 sps:$4 sm:$0xff]   ;;  %v1452_v53 = vrot.slane %v3893_v15, %v1447_v51 }
 0x457   : > { %v3152_v54 = vpop.eup %3151 }
 0x458   : > { %v1251_v56 = vmul.f32 %v3152_v54, %v3144_v42  ;;  %v3091_v42 = vld [vmem:[%s3809_s20 + $0x40] ss:$8 sps:$4 sm:$0xff]  }
 0x45a   : > { %v1254_v57 = vpack.c.bf16 %v1251_v56, %v1250_v55 }
 0x45c   : > { %2822 = vmatmul.mubr.msk.bf16.vlgmr.msra.gmra.mrb[4].mxu1 %vm1209_vm1, %v1254_v57 }
 0x45d   : > { %v3154_v61 = vpop.eup %3153  ;;  %2832 = vmatpush3.bf16.msra.mxu1 %v3068_v48  ;;  %v3106_v48 = vld [vmem:[%s3790_s15 + $0x30] sm:$0xff]  }
 0x45e   : > { %2833 = vmatprep.subr.bf16.mxu1 %v3069_v59  ;;  %v1252_v0 = vmul.f32 %v3154_v61, %v3146_v44  ;;  %v3101_v44 = vld [vmem:[%s3809_s20 + $0x64] ss:$8 sps:$4 sm:$0xff]  }
 0x45f   : > { %v3156_v63 = vpop.eup %3155 }
 0x460   : > { %v1253_v2 = vmul.f32 %v3156_v63, %v3148_v46  ;;  %v3105_v46 = vld [vmem:[%s3809_s20 + $0x74] ss:$8 sps:$4 sm:$0xff]  }
 0x461   : > { %2834 = vmatpush3.bf16.msra.mxu1 %v3069_v59 }
 0x462   : > { %v1255_v3 = vpack.c.bf16 %v1253_v2, %v1252_v0  ;;  %2835 = vmatprep.subr.bf16.mxu1 %v3070_v62 }
 0x464   : > { %2828 = vmatmul.mubr.msk.bf16.vlgmr.msra.gmra.mrb[16].mxu0 %vm1209_vm1, %v1255_v3 }
 0x465   : > { %2836 = vmatpush3.bf16.msra.mxu1 %v3070_v62  ;;  %2852 = vmatpush3.bf16.msra.mxu0 %v3082_v14 }
 0x466   : > { %2837 = vmatprep.subr.bf16.mxu1 %v3071_v6  ;;  %2853 = vmatprep.subr.bf16.mxu0 %v3086_v16 }
 0x469   : > { %2838 = vmatpush3.bf16.msra.mxu1 %v3071_v6  ;;  %2854 = vmatpush3.bf16.msra.mxu0 %v3086_v16 }
 0x46a   : > { %2839 = vmatprep.subr.bf16.mxu1 %v3072_v7  ;;  %2855 = vmatprep.subr.bf16.mxu0 %v3090_v17 }
 0x46d   : > { %2840 = vmatpush3.bf16.msra.mxu1 %v3072_v7  ;;  %2856 = vmatpush3.bf16.msra.mxu0 %v3090_v17 }
 0x46e   : > { %2841 = vmatprep.subr.bf16.mxu1 %v3073_v8  ;;  %2857 = vmatprep.subr.bf16.mxu0 %v3094_v18 }
 0x471   : > { %2842 = vmatpush3.bf16.msra.mxu1 %v3073_v8  ;;  %2858 = vmatpush3.bf16.msra.mxu0 %v3094_v18 }
 0x472   : > { %2843 = vmatprep.subr.bf16.mxu1 %v3074_v11  ;;  %2859 = vmatprep.subr.bf16.mxu0 %v3098_v19 }
 0x475   : > { %2844 = vmatpush3.bf16.msra.mxu1 %v3074_v11  ;;  %2860 = vmatpush3.bf16.msra.mxu0 %v3098_v19 }
 0x476   : > { %2845 = vmatprep.subr.bf16.mxu1 %v3075_v12  ;;  %2861 = vmatprep.subr.bf16.mxu0 %v3102_v20 }
 0x479   : > { %2846 = vmatpush3.bf16.msra.mxu1 %v3075_v12  ;;  %2862 = vmatpush3.bf16.msra.mxu0 %v3102_v20 }
 0x47a   : > { %1646 = vmatprep.subr.bf16.mxu1 %v3078_v13  ;;  %2863 = vmatprep.subr.bf16.mxu0 %v3106_v48 }
 0x47d   : > { %2864 = vmatpush3.bf16.msra.mxu0 %v3106_v48 }
 0x47e   : > { %2865 = vmatprep.subr.bf16.mxu0 %v3108_v50 }
 0x481   : > { %2866 = vmatpush3.bf16.msra.mxu0 %v3108_v50 }
 0x482   : > { %2871 = vmatprep.subr.bf16.mxu0 %v3453_v40 }
 0x52f   : > { %v1295_v22 = vpop.f32.mrb[4].mxu1 }
 0x530   : > { %v2823_v23 = vpop.f32.mrb[5].mxu1 }
 0x531   : > { %v1298_v24 = vpop.f32.mrb[6].mxu1 }
 0x532   : > { %v1346_v25 = vpack.c.bf16 %v1298_v24, %v1295_v22  ;;  %v2824_v26 = vpop.f32.mrb[7].mxu1 }
 0x533   : > { %v2670_v26 = vld [vmem:[%s4211_s14] ss:$0 sm:$0xff] }
 0x534   : > { %2847 = vmatprep.mubr.bf16.mxu1 %v1346_v25 }
 0x537   : > { %v1339_v27 = vpop.f32.mrb[16].mxu0 }
 0x538   : > { %v2829_v28 = vpop.f32.mrb[17].mxu0 }
 0x539   : > { %v1342_v29 = vpop.f32.mrb[18].mxu0 }
 0x53a   : > { %v1347_v31 = vpack.c.bf16 %v1342_v29, %v1339_v27  ;;  %v2830_v32 = vpop.f32.mrb[19].mxu0 }
 0x53c   : > { %2848 = vmatmul.mubr.bf16.vlgmr.msra.gmra.mrb[8].mxu1 %v1347_v31 }
 0x53d   : > { %1647 = vmatpush1.bf16.msra.mxu1 %v3076_v30  ;;  %1678 = vmatprep.mubr.bf16.mxu1 %v3452_v34  ;;  %v3097_v34 = vld [vmem:[%s3809_s20 + $0x54] ss:$8 sps:$4 sm:$0xff]  }
 0x53e   : > { %1648 = vmatprep.subr.bf16.mxu1 %v3081_v33 }
 0x541   : > { %1649 = vmatpush1.bf16.msra.mxu1 %v3079_v35 }
 0x542   : > { %1650 = vmatprep.subr.bf16.mxu1 %v3085_v36 }
 0x545   : > { %1651 = vmatpush1.bf16.msra.mxu1 %v3083_v37 }
 0x546   : > { %1652 = vmatprep.subr.bf16.mxu1 %v3089_v38  ;;  %v2671_v38 = vld [vmem:[%s4211_s14 + $0x1] ss:$0 sm:$0xff] }
 0x549   : > { %1653 = vmatpush1.bf16.msra.mxu1 %v3087_v39 }
 0x54a   : > { %1654 = vmatprep.subr.bf16.mxu1 %v3093_v41 }
 0x54d   : > { %1655 = vmatpush1.bf16.msra.mxu1 %v3091_v42 }
 0x54e   : > { %1656 = vmatprep.subr.bf16.mxu1 %v3097_v34 }
 0x551   : > { %1657 = vmatpush1.bf16.msra.mxu1 %v3095_v43 }
 0x552   : > { %1658 = vmatprep.subr.bf16.mxu1 %v3101_v44 }
 0x555   : > { %1659 = vmatpush1.bf16.msra.mxu1 %v3099_v45 }
 0x556   : > { %1660 = vmatprep.subr.bf16.mxu1 %v3105_v46 }
 0x559   : > { %1661 = vmatpush1.bf16.msra.mxu1 %v3103_v47 }
 0x55c   : > { %1679 = vmatmul.mubr.bf16.vlgmr.msra.gmra.mrb[12].mxu1 %v3107_v49 }
 0x60f   : > { %v2849_v54 = vpop.f32.mrb[8].mxu1 }
 0x610   : > { %v1430_v55 = vpop.f32.mrb[9].mxu1  ;;  %v1455_v59 = vmul.f32 %v2849_v54, %v1452_v53 }
 0x611   : > { %v1453_v56 = vmul.f32 %v1448_v52, %v1430_v55  ;;  %v2850_v57 = vpop.f32.mrb[10].mxu1 }
 0x612   : > { %v1456_v61 = vmul.f32 %v2850_v57, %v1452_v53  ;;  %v1433_v62 = vpop.f32.mrb[11].mxu1  ;;  %v3983_v6 = vadd.f32 %v1455_v59, %v3841_v9 }
 0x613   : > { %v1454_v63 = vmul.f32 %v1448_v52, %v1433_v62  ;;  %v3977_v2 = vadd.f32 %v1453_v56, %v3831_v4 }
 0x614   : > { %v3974_v0 = vadd.f32 %v1456_v61, %v3844_v10 }
 0x615   : > { %v3980_v3 = vadd.f32 %v1454_v63, %v3833_v5 }
 0x616   : > { %v1462_v8 = vpack.c.bf16 %v3974_v0, %v3983_v6 }
 0x617   : > { %v1461_v7 = vpack.c.bf16 %v3980_v3, %v3977_v2 }
 0x619   : > { %2867 = vmatprep.mubr.bf16.mxu0 %v1461_v7 }
 0x61a   : > { %2868 = vmatmul.mubr.bf16.vlgmr.msra.gmra.mrb[20].mxu0 %v1462_v8 }
 0x61b   : > { %2873 = vmatprep.mubr.msk.bf16.mxu0 %vm3454_vm0, %v3453_v40 }
 0x62f   : > { %v1680_v10 = vpop.f32.mrb[12].mxu1 }
 0x630   : > { %v1691_v4 = vpack.c.bf16 %v1680_v10, %v1680_v10  ;;  %v1682_v11 = vpop.f32.mrb[13].mxu1 }
 0x631   : > { %v1684_v12 = vpop.f32.mrb[14].mxu1  ;;  %v1842_v23 = vpack.c.bf16 %v1682_v11, %v1682_v11 }
 0x632   : > { %2872 = vmatpush3.bf16.xpose.msra.mxu0 %v1691_v4  ;;  %v1686_v5 = vpop.f32.mrb[15].mxu1  ;;  %v1692_v22 = vpack.c.bf16 %v1684_v12, %v1684_v12 }
 0x633   : > { %v1843_v13 = vpack.c.bf16 %v1686_v5, %v1686_v5  ;;  %2877 = vmatprep.subr.bf16.mxu0 %v3453_v40  ;;  %v1849_v24 = vsel %vm1847_vm2, %v1842_v23, 0  ;;  %v3109_v5 = vld [vmem:[%s3796_s16] sm:$0xff]  }
 0x634   : > { %2895 = vmatprep.subr.bf16.mxu1 %v3109_v5 }
 0x635   : > { %v3992_v9 = vsel %vm1847_vm2, %v1843_v13, 0  ;;  %v3110_v13 = vld [vmem:[%s3796_s16 + $0x8] sm:$0xff]   ;;  %2896 = vmatpush3.bf16.msra.mxu1 %v3109_v5 }
 0x636   : > { %2897 = vmatprep.subr.bf16.mxu1 %v3110_v13 }
 0x639   : > { %2898 = vmatpush3.bf16.msra.mxu1 %v3110_v13 }
 0x6ed   : > { %v2869_v14 = vpop.f32.mrb[20].mxu0 }
 0x6ee   : > { %v1545_v16 = vpop.f32.mrb[21].mxu0 }
 0x6ef   : > { %v2870_v17 = vpop.f32.mrb[22].mxu0 }
 0x6f0   : > { %v1690_v18 = vpack.c.bf16 %v2870_v17, %v2869_v14  ;;  %v1548_v19 = vpop.f32.mrb[23].mxu0  ;;  %v3111_v14 = vld [vmem:[%s3796_s16 + $0x10] sm:$0xff]   ;;  %v3113_v17 = vld [vmem:[%s3796_s16 + $0x20] sm:$0xff]  }
 0x6f1   : > { %v1689_v20 = vpack.c.bf16 %v1548_v19, %v1545_v16  ;;  %2899 = vmatprep.subr.bf16.mxu1 %v3111_v14  ;;  %v3112_v16 = vld [vmem:[%s3796_s16 + $0x18] sm:$0xff]  }
 0x6f2   : > { %2900 = vmatpush3.bf16.msra.mxu1 %v3111_v14 }
 0x6f3   : > { %2874 = vmatmul.mubr.bf16.vlgmr.msra.gmra.mrb[24].mxu0 %v1689_v20  ;;  %2901 = vmatprep.subr.bf16.mxu1 %v3112_v16 }
 0x6f4   : > { %2878 = vmatpush3.bf16.xpose.msra.mxu0 %v1692_v22  ;;  %2879 = vmatprep.mubr.msk.bf16.mxu0 %vm3454_vm0, %v3453_v40 }
 0x6f5   : > { %2883 = vmatprep.subr.bf16.mxu0 %v3453_v40 }
 0x6f6   : > { %2902 = vmatpush3.bf16.msra.mxu1 %v3112_v16 }
 0x6f7   : > { %2903 = vmatprep.subr.bf16.mxu1 %v3113_v17 }
 0x6fa   : > { %2904 = vmatpush3.bf16.msra.mxu1 %v3113_v17 }
 0x6fb   : > { %2880 = vmatmul.mubr.bf16.vlgmr.msra.gmra.mrb[28].mxu0 %v1690_v18 }
 0x6fc   : > { %2884 = vmatpush3.bf16.msra.mxu0 %v1849_v24  ;;  %2885 = vmatprep.mubr.msk.bf16.mxu0 %vm3454_vm0, %v3453_v40 }
 0x6fd   : > { %2889 = vmatprep.subr.bf16.mxu0 %v3453_v40 }
 0x7c6   : > { %v1727_v25 = vpop.f32.mrb[24].mxu0 }
 0x7c7   : > { %v1775_v27 = vmul.f32 0.17677669, %v1727_v25  ;;  %v2875_v28 = vpop.f32.mrb[25].mxu0 }
 0x7c8   : > { %v1730_v29 = vpop.f32.mrb[26].mxu0 }
 0x7c9   : > { %v1776_v30 = vmul.f32 0.17677669, %v1730_v29  ;;  %v2876_v31 = vpop.f32.mrb[27].mxu0  ;;  %v1791_v32 = vadd.f32 %v2670_v26, %v1775_v27 }
 0x7cb   : > { %v1796_v33 = vsel %vm1795_vm3, %v1791_v32, -inf  ;;  %v1792_v35 = vadd.f32 %v2670_v26, %v1776_v30 }
 0x7cc   : > { %1797 = vmax.xlane.f32.xlu0 %v1796_v33  ;;  %v3114_v33 = vld [vmem:[%s3796_s16 + $0x28] sm:$0xff]  }
 0x7cd   : > { %v1799_v36 = vsel %vm1795_vm3, %v1792_v35, -inf  ;;  %2905 = vmatprep.subr.bf16.mxu1 %v3114_v33 }
 0x7ce   : > { %1800 = vmax.xlane.f32.xlu1 %v1799_v36  ;;  %v1768_v37 = vpop.f32.mrb[28].mxu0  ;;  %2906 = vmatpush3.bf16.msra.mxu1 %v3114_v33  ;;  %v3116_v36 = vld [vmem:[%s3796_s16 + $0x38] sm:$0xff]  }
 0x7cf   : > { %v1777_v39 = vmul.f32 0.17677669, %v1768_v37  ;;  %v2881_v41 = vpop.f32.mrb[29].mxu0 }
 0x7d0   : > { %v1771_v42 = vpop.f32.mrb[30].mxu0 }
 0x7d1   : > { %v1778_v34 = vmul.f32 0.17677669, %v1771_v42  ;;  %v2882_v43 = vpop.f32.mrb[31].mxu0  ;;  %v1793_v44 = vadd.f32 %v2671_v38, %v1777_v39 }
 0x7d3   : > { %v1802_v45 = vsel %vm1795_vm3, %v1793_v44, -inf  ;;  %v1794_v46 = vadd.f32 %v2671_v38, %v1778_v34 }
 0x7d4   : > { %1803 = vmax.xlane.f32.xlu0 %v1802_v45 }
 0x7d5   : > { %v1805_v47 = vsel %vm1795_vm3, %v1794_v46, -inf }
 0x7d6   : > { %1806 = vmax.xlane.f32.xlu1 %v1805_v47 }
 0x859   : > { %v1798_v48 = vpop.xlane.xlu0 %1797 }
 0x85a   : > { %v1808_v49 = vsub.f32 %v1791_v32, %v1798_v48 }
 0x85b   : > { %v1801_v50 = vpop.xlane.xlu1 %1800 }
 0x85c   : > { %v1812_v51 = vmul.f32 1.442695, %v1808_v49  ;;  %v1809_v52 = vsub.f32 %v1792_v35, %v1801_v50  ;;  %v3115_v35 = vld [vmem:[%s3796_s16 + $0x30] sm:$0xff]  }
 0x85d   : > { %2907 = vmatprep.subr.bf16.mxu1 %v3115_v35 }
 0x85e   : > { %3157 = vpow2.f32 %v1812_v51  ;;  %v1814_v53 = vmul.f32 1.442695, %v1809_v52  ;;  %2908 = vmatpush3.bf16.msra.mxu1 %v3115_v35 }
 0x85f   : > { %2909 = vmatprep.subr.bf16.mxu1 %v3116_v36 }
 0x860   : > { %3159 = vpow2.f32 %v1814_v53  ;;  %v3117_v53 = vld [vmem:[%s3798_s13] sm:$0xff]  }
 0x861   : > { %v1804_v54 = vpop.xlane.xlu0 %1803 }
 0x862   : > { %v1810_v55 = vsub.f32 %v1793_v44, %v1804_v54  ;;  %2910 = vmatpush3.bf16.msra.mxu1 %v3116_v36  ;;  %v3118_v54 = vld [vmem:[%s3798_s13 + $0x8] sm:$0xff]   ;;  %v2096_v36 = vsub.s32 4, %v3876_v58 }
 0x863   : > { %v1807_v56 = vpop.xlane.xlu1 %1806 }
 0x864   : > { %v1816_v57 = vmul.f32 1.442695, %v1810_v55  ;;  %v1811_v59 = vsub.f32 %v1794_v46, %v1807_v56  ;;  %v3119_v55 = vld [vmem:[%s3798_s13 + $0x10] sm:$0xff]   ;;  %v3120_v56 = vld [vmem:[%s3798_s13 + $0x18] sm:$0xff]  }
 0x866   : > { %3161 = vpow2.f32 %v1816_v57  ;;  %v1818_v61 = vmul.f32 1.442695, %v1811_v59  ;;  %v3121_v57 = vld [vmem:[%s3798_s13 + $0x20] sm:$0xff]   ;;  %v3122_v59 = vld [vmem:[%s3798_s13 + $0x28] sm:$0xff]  }
 0x868   : > { %v3158_v62 = vpop.eup %3157  ;;  %3163 = vpow2.f32 %v1818_v61  ;;  %v3123_v61 = vld [vmem:[%s3798_s13 + $0x30] sm:$0xff]  }
 0x869   : > { %v1820_v63 = vsel %vm1795_vm3, %v3158_v62, 0.0 }
 0x86a   : > { %v3160_v7 = vpop.eup %3159  ;;  %1821 = vadd.xlane.f32.xlu0 %v1820_v63 }
 0x86b   : > { %v1823_v8 = vsel %vm1795_vm3, %v3160_v7, 0.0 }
 0x86c   : > { %1824 = vadd.xlane.f32.xlu1 %v1823_v8 }
 0x870   : > { %v3162_v10 = vpop.eup %3161 }
 0x871   : > { %v1826_v4 = vsel %vm1795_vm3, %v3162_v10, 0.0 }
 0x872   : > { %v3164_v11 = vpop.eup %3163  ;;  %1827 = vadd.xlane.f32.xlu0 %v1826_v4 }
 0x873   : > { %v1829_v12 = vsel %vm1795_vm3, %v3164_v11, 0.0 }
 0x874   : > { %1830 = vadd.xlane.f32.xlu1 %v1829_v12 }
 0x8f7   : > { %v1822_v18 = vpop.xlane.xlu0 %1821 }
 0x8f8   : > { %3165 = vrcp.f32 %v1822_v18 }
 0x8f9   : > { %v1825_v19 = vpop.xlane.xlu1 %1824 }
 0x8fa   : > { %3167 = vrcp.f32 %v1825_v19 }
 0x8ff   : > { %v1828_v20 = vpop.xlane.xlu0 %1827 }
 0x900   : > { %3169 = vrcp.f32 %v1828_v20 }
 0x901   : > { %v1831_v22 = vpop.xlane.xlu1 %1830 }
 0x902   : > { %v3166_v23 = vpop.eup %3165  ;;  %3171 = vrcp.f32 %v1831_v22 }
 0x903   : > { %v1836_v25 = vmul.f32 %v3166_v23, %v3158_v62  ;;  %v3124_v62 = vld [vmem:[%s3798_s13 + $0x38] sm:$0xff]  }
 0x904   : > { %v3168_v24 = vpop.eup %3167 }
 0x905   : > { %v1837_v26 = vmul.f32 %v3168_v24, %v3160_v7 }
 0x907   : > { %v1840_v27 = vpack.c.bf16 %v1837_v26, %v1836_v25 }
 0x909   : > { %2886 = vmatmul.mubr.msk.bf16.vlgmr.msra.gmra.mrb[32].mxu0 %vm1795_vm3, %v1840_v27 }
 0x90a   : > { %v3170_v28 = vpop.eup %3169  ;;  %2890 = vmatpush3.bf16.msra.mxu0 %v3992_v9  ;;  %2891 = vmatprep.mubr.msk.bf16.mxu0 %vm3454_vm0, %v3453_v40 }
 0x90b   : > { %v1838_v30 = vmul.f32 %v3170_v28, %v3162_v10  ;;  %2915 = vmatprep.subr.bf16.mxu0 %v3117_v53 }
 0x90c   : > { %v3172_v29 = vpop.eup %3171 }
 0x90d   : > { %v1839_v31 = vmul.f32 %v3172_v29, %v3164_v11 }
 0x90f   : > { %v1841_v32 = vpack.c.bf16 %v1839_v31, %v1838_v30 }
 0x911   : > { %2892 = vmatmul.mubr.msk.bf16.vlgmr.msra.gmra.mrb[36].mxu0 %vm1795_vm3, %v1841_v32 }
 0x912   : > { %2916 = vmatpush3.bf16.msra.mxu0 %v3117_v53 }
 0x913   : > { %2917 = vmatprep.subr.bf16.mxu0 %v3118_v54 }
 0x916   : > { %2918 = vmatpush3.bf16.msra.mxu0 %v3118_v54 }
 0x917   : > { %2919 = vmatprep.subr.bf16.mxu0 %v3119_v55 }
 0x91a   : > { %2920 = vmatpush3.bf16.msra.mxu0 %v3119_v55 }
 0x91b   : > { %2921 = vmatprep.subr.bf16.mxu0 %v3120_v56 }
 0x91e   : > { %2922 = vmatpush3.bf16.msra.mxu0 %v3120_v56 }
 0x91f   : > { %2923 = vmatprep.subr.bf16.mxu0 %v3121_v57 }
 0x922   : > { %2924 = vmatpush3.bf16.msra.mxu0 %v3121_v57 }
 0x923   : > { %2925 = vmatprep.subr.bf16.mxu0 %v3122_v59 }
 0x926   : > { %2926 = vmatpush3.bf16.msra.mxu0 %v3122_v59 }
 0x927   : > { %2927 = vmatprep.subr.bf16.mxu0 %v3123_v61 }
 0x92a   : > { %2928 = vmatpush3.bf16.msra.mxu0 %v3123_v61  ;;  %v3125_v61 = vld [vmem:[%s3816_s12] sm:$0xff]  }
 0x92b   : > { %2929 = vmatprep.subr.bf16.mxu0 %v3124_v62  ;;  %2935 = vmatprep.subr.bf16.mxu1 %v3125_v61 }
 0x92e   : > { %2930 = vmatpush3.bf16.msra.mxu0 %v3124_v62  ;;  %v3127_v62 = vld [vmem:[%s3816_s12 + $0x10] sm:$0xff]  }
 0x9dc   : > { %v1885_v37 = vpop.f32.mrb[32].mxu0 }
 0x9dd   : > { %v2887_v9 = vpop.f32.mrb[33].mxu0 }
 0x9de   : > { %v1888_v38 = vpop.f32.mrb[34].mxu0 }
 0x9df   : > { %v1939_v39 = vpack.c.bf16 %v1888_v38, %v1885_v37  ;;  %v2888_v40 = vpop.f32.mrb[35].mxu0  ;;  %v2108_v37 = vsub.s32 3, %v3876_v58  ;;  %v2097_v38 = vrot.slane %v3884_v1, %v2096_v36 }
 0x9e1   : > { %2911 = vmatprep.mubr.bf16.mxu1 %v1939_v39 }
 0x9e4   : > { %v1932_v41 = vpop.f32.mrb[36].mxu0 }
 0x9e5   : > { %v2893_v42 = vpop.f32.mrb[37].mxu0 }
 0x9e6   : > { %v1935_v34 = vpop.f32.mrb[38].mxu0 }
 0x9e7   : > { %v1940_v43 = vpack.c.bf16 %v1935_v34, %v1932_v41  ;;  %v2894_v44 = vpop.f32.mrb[39].mxu0  ;;  %v2109_v34 = vrot.slane %v3881_v60, %v2108_v37 }
 0x9e9   : > { %2912 = vmatmul.mubr.bf16.vlgmr.msra.gmra.mrb[16].mxu1 %v1940_v43 }
 0x9ea   : > { %2936 = vmatpush3.bf16.msra.mxu1 %v3125_v61 }
 0xabc   : > { %v2913_v45 = vpop.f32.mrb[16].mxu1 }
 0xabd   : > { %v4028_v46 = vadd.f32 %v2913_v45, %v3983_v6  ;;  %v2023_v47 = vpop.f32.mrb[17].mxu1 }
 0xabe   : > { %v2914_v48 = vpop.f32.mrb[18].mxu1  ;;  %v4035_v51 = vadd.f32 %v2023_v47, %v3977_v2  ;;  %v2101_v47 = vrot.slane %v3898_v21, %v2096_v36 }
 0xabf   : > { %v4031_v49 = vadd.f32 %v2914_v48, %v3974_v0  ;;  %2046 = vadd.xlane.f32.xlu0 %v4028_v46  ;;  %v2026_v50 = vpop.f32.mrb[19].mxu1  ;;  %v2056_v6 = vmul.f32 %v4028_v46, %v4028_v46 }
 0xac0   : > { %v4039_v52 = vadd.f32 %v2026_v50, %v3980_v3  ;;  %v2054_v0 = vmul.f32 %v4035_v51, %v4035_v51 }
 0xac1   : > { %2048 = vadd.xlane.f32.xlu1 %v4031_v49  ;;  %v2057_v3 = vmul.f32 %v4031_v49, %v4031_v49 }
 0xac2   : > { %v2055_v2 = vmul.f32 %v4039_v52, %v4039_v52 }
 0xac3   : > { %2042 = vadd.xlane.f32.xlu0 %v4035_v51 }
 0xac5   : > { %2044 = vadd.xlane.f32.xlu1 %v4039_v52 }
 0xac7   : > { %2058 = vadd.xlane.f32.xlu0 %v2054_v0 }
 0xac9   : > { %2060 = vadd.xlane.f32.xlu1 %v2055_v2 }
 0xacb   : > { %2062 = vadd.xlane.f32.xlu0 %v2056_v6  ;;  %v2113_v6 = vrot.slane %v3893_v15, %v2108_v37  ;;  %v3126_v15 = vld [vmem:[%s3816_s12 + $0x8] sm:$0xff]  }
 0xacc   : > { %2937 = vmatprep.subr.bf16.mxu1 %v3126_v15 }
 0xacd   : > { %2064 = vadd.xlane.f32.xlu1 %v2057_v3  ;;  %2938 = vmatpush3.bf16.msra.mxu1 %v3126_v15 }
 0xace   : > { %2939 = vmatprep.subr.bf16.mxu1 %v3127_v62 }
 0xad1   : > { %2940 = vmatpush3.bf16.msra.mxu1 %v3127_v62 }
 0xb4c   : > { %v2047_v63 = vpop.xlane.xlu0 %2046 }
 0xb4d   : > { %v2052_v5 = vmul.f32 0.03125, %v2047_v63  ;;  %v3128_v63 = vld [vmem:[%s3816_s12 + $0x18] sm:$0xff]  }
 0xb4e   : > { %v2049_v7 = vpop.xlane.xlu1 %2048  ;;  %2941 = vmatprep.subr.bf16.mxu1 %v3128_v63 }
 0xb4f   : > { %v2053_v16 = vmul.f32 0.03125, %v2049_v7  ;;  %v2072_v23 = vmul.f32 %v2052_v5, %v2052_v5  ;;  %v2080_v43 = vsub.f32 %v4028_v46, %v2052_v5  ;;  %2942 = vmatpush3.bf16.msra.mxu1 %v3128_v63  ;;  %v3129_v7 = vld [vmem:[%s3816_s12 + $0x20] sm:$0xff]  }
 0xb50   : > { %v2043_v8 = vpop.xlane.xlu0 %2042  ;;  %2943 = vmatprep.subr.bf16.mxu1 %v3129_v7 }
 0xb51   : > { %v2050_v10 = vmul.f32 0.03125, %v2043_v8  ;;  %v2073_v27 = vmul.f32 %v2053_v16, %v2053_v16  ;;  %v2081_v50 = vsub.f32 %v4031_v49, %v2053_v16  ;;  %v3130_v8 = vld [vmem:[%s3816_s12 + $0x28] sm:$0xff]  }
 0xb52   : > { %v2045_v4 = vpop.xlane.xlu1 %2044 }
 0xb53   : > { %v2051_v11 = vmul.f32 0.03125, %v2045_v4  ;;  %v2070_v13 = vmul.f32 %v2050_v10, %v2050_v10  ;;  %v2078_v9 = vsub.f32 %v4035_v51, %v2050_v10  ;;  %2944 = vmatpush3.bf16.msra.mxu1 %v3129_v7  ;;  %v3131_v10 = vld [vmem:[%s3816_s12 + $0x30] sm:$0xff]   ;;  %v3132_v4 = vld [vmem:[%s3816_s12 + $0x38] sm:$0xff]  }
 0xb54   : > { %v2059_v12 = vpop.xlane.xlu0 %2058  ;;  %2945 = vmatprep.subr.bf16.mxu1 %v3130_v8 }
 0xb55   : > { %v2066_v14 = vmul.f32 0.03125, %v2059_v12  ;;  %v2071_v18 = vmul.f32 %v2051_v11, %v2051_v11  ;;  %v2079_v40 = vsub.f32 %v4039_v52, %v2051_v11 }
 0xb56   : > { %v2061_v17 = vpop.xlane.xlu1 %2060 }
 0xb57   : > { %v2074_v19 = vsub.f32 %v2066_v14, %v2070_v13  ;;  %v2067_v20 = vmul.f32 0.03125, %v2061_v17  ;;  %2946 = vmatpush3.bf16.msra.mxu1 %v3130_v8 }
 0xb58   : > { %v2063_v22 = vpop.xlane.xlu0 %2062  ;;  %2947 = vmatprep.subr.bf16.mxu1 %v3131_v10 }
 0xb59   : > { %v2082_v24 = vadd.f32 1e-06, %v2074_v19  ;;  %v2075_v25 = vsub.f32 %v2067_v20, %v2071_v18  ;;  %v2068_v26 = vmul.f32 0.03125, %v2063_v22 }
 0xb5a   : > { %v2065_v28 = vpop.xlane.xlu1 %2064 }
 0xb5b   : > { %3173 = vrsqrt.f32 %v2082_v24  ;;  %v2083_v29 = vadd.f32 1e-06, %v2075_v25  ;;  %v2076_v30 = vsub.f32 %v2068_v26, %v2072_v23  ;;  %v2069_v31 = vmul.f32 0.03125, %v2065_v28  ;;  %2948 = vmatpush3.bf16.msra.mxu1 %v3131_v10 }
 0xb5c   : > { %2949 = vmatprep.subr.bf16.mxu1 %v3132_v4 }
 0xb5d   : > { %3175 = vrsqrt.f32 %v2083_v29  ;;  %v2084_v32 = vadd.f32 1e-06, %v2076_v30  ;;  %v2077_v33 = vsub.f32 %v2069_v31, %v2073_v27 }
 0xb5f   : > { %3177 = vrsqrt.f32 %v2084_v32  ;;  %v2085_v35 = vadd.f32 1e-06, %v2077_v33  ;;  %2950 = vmatpush3.bf16.msra.mxu1 %v3132_v4 }
 0xb61   : > { %3179 = vrsqrt.f32 %v2085_v35 }
 0xb65   : > { %v3174_v39 = vpop.eup %3173 }
 0xb66   : > { %v2090_v41 = vmul.f32 %v3174_v39, %v2078_v9 }
 0xb67   : > { %v3176_v42 = vpop.eup %3175 }
 0xb68   : > { %v2091_v44 = vmul.f32 %v3176_v42, %v2079_v40  ;;  %v2102_v45 = vmul.f32 %v2097_v38, %v2090_v41 }
 0xb69   : > { %v3178_v48 = vpop.eup %3177 }
 0xb6a   : > { %v2103_v0 = vmul.f32 %v2097_v38, %v2091_v44  ;;  %v2092_v2 = vmul.f32 %v3178_v48, %v2080_v43  ;;  %v2114_v3 = vadd.f32 %v2109_v34, %v2102_v45 }
 0xb6b   : > { %v3180_v1 = vpop.eup %3179 }
 0xb6c   : > { %v2115_v53 = vadd.f32 %v2109_v34, %v2103_v0  ;;  %v2093_v60 = vmul.f32 %v3180_v1, %v2081_v50  ;;  %v2104_v54 = vmul.f32 %v2101_v47, %v2092_v2 }
 0xb6e   : > { %v2118_v55 = vpack.c.bf16 %v2115_v53, %v2114_v3  ;;  %v2105_v56 = vmul.f32 %v2101_v47, %v2093_v60  ;;  %v2116_v21 = vadd.f32 %v2113_v6, %v2104_v54  ;;  %v2354_v3 = vsub.s32 5, %v3876_v58  ;;  %v3189_v53 = vld [vmem:[%s4163_s4 + $0x8] sm:$0x3f]  ;;  %v3190_v54 = vld [vmem:[%s4163_s4] sm:$0x3f] }
 0xb70   : > { %2931 = vmatprep.mubr.bf16.mxu0 %v2118_v55  ;;  %v2117_v57 = vadd.f32 %v2113_v6, %v2105_v56  ;;  %v2359_v60 = vrot.slane %v3189_v53, %v2354_v3  ;;  %v2355_v55 = vrot.slane %v3190_v54, %v2354_v3 }
 0xb72   : > { %v2119_v59 = vpack.c.bf16 %v2117_v57, %v2116_v21 }
 0xb74   : > { %2932 = vmatmul.mubr.bf16.vlgmr.msra.gmra.mrb[40].mxu0 %v2119_v59 }
 0xc47   : > { %v2933_v11 = vpop.f32.mrb[40].mxu0 }
 0xc48   : > { %v2219_v12 = vmul.f32 %v2933_v11, %v2933_v11  ;;  %v2202_v5 = vpop.f32.mrb[41].mxu0 }
 0xc49   : > { %v2217_v13 = vmul.f32 %v2202_v5, %v2202_v5  ;;  %v2934_v14 = vpop.f32.mrb[42].mxu0 }
 0xc4a   : > { %v2223_v16 = vmul.f32 %v2933_v11, %v2219_v12  ;;  %v2220_v17 = vmul.f32 %v2934_v14, %v2934_v14  ;;  %v2205_v18 = vpop.f32.mrb[43].mxu0  ;;  %v2379_v12 = vld [vmem:[%s4159_s0 + $0x18] sm:$0xff] (!%p2698_p13) }
 0xc4b   : > { %v2221_v19 = vmul.f32 %v2217_v13, %v2202_v5  ;;  %v2218_v20 = vmul.f32 %v2205_v18, %v2205_v18 }
 0xc4c   : > { %v2227_v22 = vmul.f32 0.044715, %v2223_v16  ;;  %v2224_v23 = vmul.f32 %v2934_v14, %v2220_v17 }
 0xc4d   : > { %v2225_v24 = vmul.f32 0.044715, %v2221_v19  ;;  %v2222_v25 = vmul.f32 %v2218_v20, %v2205_v18 }
 0xc4e   : > { %v2231_v26 = vadd.f32 %v2933_v11, %v2227_v22  ;;  %v2228_v27 = vmul.f32 0.044715, %v2224_v23 }
 0xc4f   : > { %v2229_v28 = vadd.f32 %v2225_v24, %v2202_v5  ;;  %v2226_v29 = vmul.f32 0.044715, %v2222_v25 }
 0xc50   : > { %v2235_v30 = vmul.f32 0.7978846, %v2231_v26  ;;  %v2232_v31 = vadd.f32 %v2934_v14, %v2228_v27 }
 0xc51   : > { %v2233_v32 = vmul.f32 0.7978846, %v2229_v28  ;;  %v2230_v33 = vadd.f32 %v2226_v29, %v2205_v18 }
 0xc52   : > { %3181 = vtanh.f32 %v2235_v30  ;;  %v2236_v35 = vmul.f32 0.7978846, %v2232_v31 }
 0xc53   : > { %3183 = vtanh.f32 %v2233_v32  ;;  %v2234_v36 = vmul.f32 0.7978846, %v2230_v33 }
 0xc54   : > { %3185 = vtanh.f32 %v2236_v35 }
 0xc55   : > { %3187 = vtanh.f32 %v2234_v36 }
 0xc5c   : > { %v3182_v37 = vpop.eup %3181 }
 0xc5d   : > { %v3184_v9 = vpop.eup %3183  ;;  %v2243_v38 = vadd.f32 1.0, %v3182_v37 }
 0xc5e   : > { %v3186_v39 = vpop.eup %3185  ;;  %v2241_v40 = vadd.f32 1.0, %v3184_v9 }
 0xc5f   : > { %v3188_v41 = vpop.eup %3187  ;;  %v2247_v42 = vmul.f32 0.5, %v2243_v38  ;;  %v2244_v34 = vadd.f32 1.0, %v3186_v39 }
 0xc60   : > { %v2245_v43 = vmul.f32 0.5, %v2241_v40  ;;  %v2242_v44 = vadd.f32 1.0, %v3188_v41 }
 0xc61   : > { %v2248_v45 = vmul.f32 0.5, %v2244_v34  ;;  %v2251_v48 = vmul.f32 %v2933_v11, %v2247_v42 }
 0xc62   : > { %v2246_v47 = vmul.f32 0.5, %v2242_v44  ;;  %v2249_v0 = vmul.f32 %v2245_v43, %v2202_v5 }
 0xc63   : > { %v2252_v50 = vmul.f32 %v2934_v14, %v2248_v45 }
 0xc64   : > { %v2250_v2 = vmul.f32 %v2246_v47, %v2205_v18 }
 0xc65   : > { %v2254_v1 = vpack.c.bf16 %v2252_v50, %v2251_v48 }
 0xc66   : > { %v2253_v6 = vpack.c.bf16 %v2250_v2, %v2249_v0 }
 0xc68   : > { %2951 = vmatprep.mubr.bf16.mxu1 %v2253_v6 }
 0xc69   : > { %2952 = vmatmul.mubr.bf16.vlgmr.msra.gmra.mrb[20].mxu1 %v2254_v1 }
 0xd3c   : > { %v2953_v56 = vpop.f32.mrb[20].mxu1 }
 0xd3d   : > { %v2362_v21 = vmul.f32 %v2953_v56, %v2359_v60  ;;  %v2337_v57 = vpop.f32.mrb[21].mxu1 }
 0xd3e   : > { %v2360_v59 = vmul.f32 %v2355_v55, %v2337_v57  ;;  %v2954_v61 = vpop.f32.mrb[22].mxu1  ;;  %2375 = sbr.rel (%p2698_p13) target bundleno = 3399 (0xd47), region = 96 }
 0xd3f   : > { %v2366_v15 = vadd.f32 %v2362_v21, %v4028_v46  ;;  %v2363_v62 = vmul.f32 %v2954_v61, %v2359_v60  ;;  %v2340_v63 = vpop.f32.mrb[23].mxu1  ;;  %v2376_v46 = vld [vmem:[%s4159_s0] sm:$0xff] (!%p2698_p13) }
 0xd40   : > { %v2364_v58 = vadd.f32 %v2360_v59, %v4035_v51  ;;  %v2361_v7 = vmul.f32 %v2355_v55, %v2340_v63  ;;  %v2377_v51 = vld [vmem:[%s4159_s0 + $0x8] sm:$0xff] (!%p2698_p13) }
 0xd41   : > { %2370 = vst [vmem:[#allocation11 + $0x10] sm:$0xff] %v2366_v15  ;;  %v2367_v8 = vadd.f32 %v2363_v62, %v4031_v49  ;;  %v2378_v49 = vld [vmem:[%s4159_s0 + $0x10] sm:$0xff] (!%p2698_p13) }
 0xd42   : > { %2368 = vst [vmem:[#allocation11] sm:$0xff] %v2364_v58  ;;  %v2365_v10 = vadd.f32 %v2361_v7, %v4039_v52  ;;  %v2380_v4 = vsub.f32 (!%p2698_p13), %v2364_v58, %v2376_v46  ;;  %v2382_v52 = vsub.f32 (!%p2698_p13), %v2366_v15, %v2378_v49 }
 0xd43   : > { %2371 = vst [vmem:[#allocation11 + $0x18] sm:$0xff] %v2367_v8  ;;  %v2383_v5 = vsub.f32 (!%p2698_p13), %v2367_v8, %v2379_v12 }
 0xd44   : > { %2369 = vst [vmem:[#allocation11 + $0x8] sm:$0xff] %v2365_v10  ;;  %v2381_v11 = vsub.f32 (!%p2698_p13), %v2365_v10, %v2377_v51  ;;  %2384 = vst [vmem:[#allocation12] sm:$0xff] (!%p2698_p13), %v2380_v4 }
 0xd45   : > { %2386 = vst [vmem:[#allocation12 + $0x10] sm:$0xff] %v2382_v52  ;;  %2387 = vst [vmem:[#allocation12 + $0x18] sm:$0xff] %v2383_v5 }
 0xd46   : > { %2385 = vst [vmem:[#allocation12 + $0x8] sm:$0xff] %v2381_v11 }
 0xd47 PF: > { %p2991_p1 = scmp.eq.s32.totalorder %s3548_s29, 1  ;;  %s3455_s10 = smov [#allocation11]  }
 0xd48   : > { %s2394_s1 = sshll.u32 %s3455_s10, 4  ;;  %s2395_s1 = int_to_ptr.vmem [resolvable:$true] %s2394_s1 }
 0xd49   : > { %s3341_s21 = scalar_lea.vmem %s2395_s1, 512  ;;  %p3348_p0 = scmp.lt.s32.totalorder %s2395_s1, %s2395_s1 }
 0xd4a   : > { %p3342_p11 = scmp.ne.s32.totalorder %s2395_s1, %s3341_s21  ;;  %p3349_p7 = scmp.lt.s32.totalorder %s3341_s21, %s3341_s21 }
 0xd4c   : > { %p3343_p2 = pnand %p3342_p11, %p2991_p1  ;;  %p3350_p3 = por %p3349_p7, %p3348_p0 }
 0xd4e   : > { %p3344_p9 = pneg %p3343_p2 }
 0xd50   : > { %p3351_p6 = pnand %p3350_p3, %p3344_p9 }
 0xd52   : > { %3354 = shalt.err (!%p3351_p6)
}
 0xd53   : > { %s4212_s3 = sld [smem:[#allocation26_spill]] }
 0xd59   : > { %s3355_s24 = scalar_lea.hbm %s4212_s3, 512 }
 0xd5a   : > { %p3356_p10 = scmp.ne.s32.totalorder %s4212_s3, %s3355_s24  ;;  %p3361_p8 = scmp.lt.u32.totalorder %s3355_s24, %s4212_s3 }
 0xd5c   : > { %p3357_p12 = pnand %p3356_p10, %p2991_p1 }
 0xd5e   : > { %p3358_p5 = pneg %p3357_p12 }
 0xd60   : > { %p3363_p4 = pnand %p3361_p8, %p3358_p5 }
 0xd62   : > { %3366 = shalt.err (!%p3363_p4)
}
 0xd63   : > { %s3456_s2 = smov 128   ;;  %s3457_s18 = smov 8  }
 0xd64   : > { %2967 = dma.vmem_to_hbm [thread:$0]  (%p2991_p1), %s2395_s1, 512, %s4212_s3, [#allocation4], %s3456_s2, %s3456_s2, %s3457_s18  }
 0xd65   : > { %s3458_s19 = smov [#allocation12]  }
 0xd66   : > { %s2407_s22 = sshll.u32 %s3458_s19, 4  ;;  %s2408_s22 = int_to_ptr.vmem [resolvable:$true] %s2407_s22 }
 0xd67   : > { %s3367_s17 = scalar_lea.vmem %s2408_s22, 512  ;;  %p3374_p9 = scmp.lt.s32.totalorder %s2408_s22, %s2408_s22 }
 0xd68   : > { %p3368_p13 = scmp.ne.s32.totalorder %s2408_s22, %s3367_s17  ;;  %p3375_p0 = scmp.lt.s32.totalorder %s3367_s17, %s3367_s17 }
 0xd6a   : > { %p3369_p11 = pnand %p3368_p13, %p2991_p1  ;;  %p3376_p7 = por %p3375_p0, %p3374_p9 }
 0xd6c   : > { %p3370_p2 = pneg %p3369_p11 }
 0xd6e   : > { %p3377_p3 = pnand %p3376_p7, %p3370_p2 }
 0xd70   : > { %3380 = shalt.err (!%p3377_p3)
}
 0xd71   : > { %s4213_s21 = sld [smem:[#allocation27_spill]] }
 0xd77   : > { %s3381_s15 = scalar_lea.hbm %s4213_s21, 512 }
 0xd78   : > { %p3382_p6 = scmp.ne.s32.totalorder %s4213_s21, %s3381_s15  ;;  %p3387_p5 = scmp.lt.u32.totalorder %s3381_s15, %s4213_s21 }
 0xd7a   : > { %p3383_p10 = pnand %p3382_p6, %p2991_p1 }
 0xd7c   : > { %p3384_p12 = pneg %p3383_p10 }
 0xd7e   : > { %p3389_p8 = pnand %p3387_p5, %p3384_p12 }
 0xd80   : > { %3392 = shalt.err (!%p3389_p8)
}
 0xd81   : > { %2969 = dma.vmem_to_hbm [thread:$0]  (%p2991_p1), %s2408_s22, 512, %s4213_s21, [#allocation13], %s3456_s2, %s3456_s2, %s3457_s18  }
 0xd82   : > { %3422 = dma.done.wait (%p2991_p1), [#allocation4], 512  }
 0xd83   : > { %3424 = vsyncadd (%p2991_p1), [#allocation4], 4294966784 }
 0xd84   : > { %3426 = dma.done.wait (%p2991_p1), [#allocation13], 512  }
 0xd85   : > { %3428 = vsyncadd (%p2991_p1), [#allocation13], 4294966784 }
 0xd86 PF: > { %s4214_s28 = sld [smem:[#allocation19_spill]]  ;;  %s4215_s30 = sld [smem:[#allocation20_spill]] }
 0xd87   : > { %s4216_s25 = smov %s3435_s26  ;;  %s4217_s26 = smov %s3439_s27 }
 0xd8c   : > { %p32_p4 = scmp.ge.s32.totalorder %s4214_s28, 4   ;;  %s4218_s27 = smov %s4215_s30 }
 0xd8e   :  { %34 = sbr.rel (!%p32_p4) target bundleno = 17 (0x11), region = 175 }
 0xd95   :  { %2427 = vsyncpa [#allocation3], 1 }
 0xd96   :  { %2429 = vsyncpa [#allocation3 + $0x1], 1 }
 0xd97   :  { %2430 = vsyncpa [#allocation6], 1 }
 0xd98   :  { %2432 = vsyncpa [#allocation6 + $0x1], 1 }
 0xd99   :  { %2433 = vsyncpa [#allocation9], 1 }
 0xd9a   :  { %2435 = vsyncpa [#allocation9 + $0x1], 1 }
 0xd9b   :  { %2436 = vsyncpa [#allocation4], 1 }
 0xd9c   :  { %2438 = vsyncpa [#allocation4 + $0x1], 1 }
 0xd9d   :  { %2439 = vsyncpa [#allocation13], 1 }

// kernel: first_forward.2
= control target key start
LH: loop header
LB: loop body
LE: loop exit
PB: predicated region body
PF: predicated region fallthrough
CT: control target
= control target key end

     0   :  { %19 = vsyncpa [#allocation3], 0  ;;  %s3058_s0 = inlined_call_operand.vmem [shape: f32[2,16,128], index: 0, kind: input, shape index: {}]   ;;  %s3059_s1 = inlined_call_operand.vmem [shape: bf16[2,8,128], index: 1, kind: input, shape index: {}]   ;;  %s3060_s2 = inlined_call_operand.vmem [shape: f32[2,1,16], index: 2, kind: input, shape index: {}]   ;;  %s3061_s3 = inlined_call_operand.vmem [shape: f32[2,1,8], index: 3, kind: input, shape index: {}]   ;;  %s3062_s4 = inlined_call_operand.vmem [shape: f32[2,6,128], index: 4, kind: input, shape index: {}]   ;;  %s3063_s5 = inlined_call_operand.vmem [shape: bf16[1,128,384], index: 5, kind: input, shape index: {}]   ;;  %s3064_s6 = inlined_call_operand.hbm [shape: bf16[1,128,128], index: 6, kind: input, shape index: {}]   ;;  %s3065_s7 = inlined_call_operand.hbm [shape: bf16[1,128,128], index: 7, kind: input, shape index: {}]   ;;  %s3066_s8 = inlined_call_operand.hbm [shape: bf16[1,128,256], index: 8, kind: input, shape index: {}]   ;;  %s3067_s9 = inlined_call_operand.hbm [shape: bf16[1,128,128], index: 9, kind: input, shape index: {}]   ;;  %s3068_s10 = inlined_call_operand.hbm [shape: bf16[1,128,128], index: 10, kind: input, shape index: {}]   ;;  %s3069_s11 = inlined_call_operand.hbm [shape: bf16[1,128,128], index: 11, kind: input, shape index: {}]   ;;  %s3070_s12 = inlined_call_operand.vmem [shape: f32[2,16,128], index: 12, kind: output, shape index: {0}]   ;;  %s3071_s13 = inlined_call_operand.hbm [shape: f32[2,16,128], index: 13, kind: output, shape index: {1}]  }
   0x1   :  { %20 = vsyncpa [#allocation6], 0 }
   0x2   :  { %21 = vsyncpa [#allocation9], 0 }
   0x3   :  { %22 = vsyncpa [#allocation12], 0 }
   0x4   :  { %23 = vsyncpa [#allocation4], 0  ;;  %s2563_s25 = smov [#allocation5]   ;;  %s2564_s27 = smov [#allocation8]  }
   0x5   :  { %s53_s26 = sshll.u32 %s2563_s25, 4  ;;  %s77_s28 = sshll.u32 %s2564_s27, 4  ;;  %s54_s26 = int_to_ptr.vmem [resolvable:$true] %s53_s26  ;;  %s2647_s28 = int_to_ptr.vmem [resolvable:$true] %s77_s28 }
   0x6   :  { %s2399_s14 = scalar_lea.hbm %s3065_s7, 1024 }
   0x7   :  { %p2400_p0 = scmp.ne.s32.totalorder %s3065_s7, %s2399_s14  ;;  %p2403_p1 = scmp.lt.u32.totalorder %s2399_s14, %s3065_s7 }
   0x9   :  { %p2405_p2 = pnand %p2403_p1, %p2400_p0 }
   0xb   :  { %2408 = shalt.err (!%p2405_p2)
}
   0xc   :  { %s2409_s19 = scalar_lea.vmem %s54_s26, 1024  ;;  %p2414_p4 = scmp.lt.s32.totalorder %s54_s26, %s54_s26 }
   0xd   :  { %p2410_p3 = scmp.ne.s32.totalorder %s54_s26, %s2409_s19  ;;  %p2415_p5 = scmp.lt.s32.totalorder %s2409_s19, %s2409_s19 }
   0xf   :  { %p2416_p6 = por %p2415_p5, %p2414_p4 }
  0x11   :  { %p2417_p7 = pnand %p2416_p6, %p2410_p3 }
  0x13   :  { %2420 = shalt.err (!%p2417_p7)
}
  0x14   :  { %s2565_s20 = smov 64   ;;  %s2566_s21 = smov 4  }
  0x15   :  { %59 = dma.hbm_to_vmem [thread:$0]  %s3065_s7, 1024, %s54_s26, [#allocation6], %s2565_s20, %s2565_s20, %s2566_s21  }
  0x16   :  { %s2421_s27 = scalar_lea.hbm %s3067_s9, 1024 }
  0x17   :  { %p2422_p8 = scmp.ne.s32.totalorder %s3067_s9, %s2421_s27  ;;  %p2425_p9 = scmp.lt.u32.totalorder %s2421_s27, %s3067_s9 }
  0x19   :  { %p2427_p10 = pnand %p2425_p9, %p2422_p8 }
  0x1b   :  { %2430 = shalt.err (!%p2427_p10)
}
  0x1c   :  { %s2431_s16 = scalar_lea.vmem %s2647_s28, 1024  ;;  %p2436_p12 = scmp.lt.s32.totalorder %s2647_s28, %s2647_s28 }
  0x1d   :  { %p2432_p11 = scmp.ne.s32.totalorder %s2647_s28, %s2431_s16  ;;  %p2437_p13 = scmp.lt.s32.totalorder %s2431_s16, %s2431_s16 }
  0x1f   :  { %p2438_p0 = por %p2437_p13, %p2436_p12 }
  0x21   :  { %p2439_p1 = pnand %p2438_p0, %p2432_p11 }
  0x23   :  { %2442 = shalt.err (!%p2439_p1)
}
  0x24   :  { %83 = dma.hbm_to_vmem [thread:$0]  %s3067_s9, 1024, %s2647_s28, [#allocation9], %s2565_s20, %s2565_s20, %s2566_s21  }
  0x25   :  { %s2567_s17 = smov [#allocation2]   ;;  %s2568_s19 = smov [#allocation7]  }
  0x26   :  { %s41_s18 = sshll.u32 %s2567_s17, 4  ;;  %s65_s22 = sshll.u32 %s2568_s19, 4  ;;  %s42_s18 = int_to_ptr.vmem [resolvable:$true] %s41_s18  ;;  %s2684_s22 = int_to_ptr.vmem [resolvable:$true] %s65_s22 }
  0x27   :  { %s2443_s25 = scalar_lea.hbm %s3064_s6, 1024 }
  0x28   :  { %p2444_p2 = scmp.ne.s32.totalorder %s3064_s6, %s2443_s25  ;;  %p2447_p3 = scmp.lt.u32.totalorder %s2443_s25, %s3064_s6 }
  0x2a   :  { %p2449_p4 = pnand %p2447_p3, %p2444_p2 }
  0x2c   :  { %2452 = shalt.err (!%p2449_p4)
}
  0x2d   :  { %s2453_s9 = scalar_lea.vmem %s42_s18, 1024  ;;  %p2458_p6 = scmp.lt.s32.totalorder %s42_s18, %s42_s18 }
  0x2e   :  { %p2454_p5 = scmp.ne.s32.totalorder %s42_s18, %s2453_s9  ;;  %p2459_p7 = scmp.lt.s32.totalorder %s2453_s9, %s2453_s9 }
  0x30   :  { %p2460_p8 = por %p2459_p7, %p2458_p6 }
  0x32   :  { %p2461_p9 = pnand %p2460_p8, %p2454_p5 }
  0x34   :  { %2464 = shalt.err (!%p2461_p9)
}
  0x35   :  { %47 = dma.hbm_to_vmem [thread:$0]  %s3064_s6, 1024, %s42_s18, [#allocation3], %s2565_s20, %s2565_s20, %s2566_s21  }
  0x36   :  { %s2465_s26 = scalar_lea.hbm %s3066_s8, 2048 }
  0x37   :  { %p2466_p10 = scmp.ne.s32.totalorder %s3066_s8, %s2465_s26  ;;  %p2469_p11 = scmp.lt.u32.totalorder %s2465_s26, %s3066_s8 }
  0x39   :  { %p2471_p12 = pnand %p2469_p11, %p2466_p10 }
  0x3b   :  { %2474 = shalt.err (!%p2471_p12)
}
  0x3c   :  { %s2475_s25 = scalar_lea.vmem %s2684_s22, 2048  ;;  %p2480_p0 = scmp.lt.s32.totalorder %s2684_s22, %s2684_s22 }
  0x3d   :  { %p2476_p13 = scmp.ne.s32.totalorder %s2684_s22, %s2475_s25  ;;  %p2481_p1 = scmp.lt.s32.totalorder %s2475_s25, %s2475_s25 }
  0x3f   :  { %p2482_p2 = por %p2481_p1, %p2480_p0 }
  0x41   :  { %p2483_p3 = pnand %p2482_p2, %p2476_p13 }
  0x43   :  { %2486 = shalt.err (!%p2483_p3)
}
  0x44   :  { %s2569_s6 = smov 128   ;;  %s2570_s18 = smov 8  }
  0x45   :  { %71 = dma.hbm_to_vmem [thread:$0]  %s3066_s8, 2048, %s2684_s22, [#allocation6], %s2569_s6, %s2569_s6, %s2570_s18  }
  0x46   :  { %s2571_s30 = smov [#allocation10]   ;;  %s2572_s9 = smov [#allocation11]  }
  0x47   :  { %s89_s14 = sshll.u32 %s2571_s30, 4  ;;  %s101_s28 = sshll.u32 %s2572_s9, 4  ;;  %s90_s14 = int_to_ptr.vmem [resolvable:$true] %s89_s14  ;;  %s2721_s28 = int_to_ptr.vmem [resolvable:$true] %s101_s28 }
  0x48   :  { %s2487_s7 = scalar_lea.hbm %s3068_s10, 1024 }
  0x49   :  { %p2488_p4 = scmp.ne.s32.totalorder %s3068_s10, %s2487_s7  ;;  %p2491_p5 = scmp.lt.u32.totalorder %s2487_s7, %s3068_s10 }
  0x4b   :  { %p2493_p6 = pnand %p2491_p5, %p2488_p4 }
  0x4d   :  { %2496 = shalt.err (!%p2493_p6)
}
  0x4e   :  { %s2497_s8 = scalar_lea.vmem %s90_s14, 1024  ;;  %p2502_p8 = scmp.lt.s32.totalorder %s90_s14, %s90_s14 }
  0x4f   :  { %p2498_p7 = scmp.ne.s32.totalorder %s90_s14, %s2497_s8  ;;  %p2503_p9 = scmp.lt.s32.totalorder %s2497_s8, %s2497_s8 }
  0x51   :  { %p2504_p10 = por %p2503_p9, %p2502_p8 }
  0x53   :  { %p2505_p11 = pnand %p2504_p10, %p2498_p7 }
  0x55   :  { %2508 = shalt.err (!%p2505_p11)
}
  0x56   :  { %95 = dma.hbm_to_vmem [thread:$0]  %s3068_s10, 1024, %s90_s14, [#allocation9], %s2565_s20, %s2565_s20, %s2566_s21  }
  0x57   :  { %s2509_s29 = scalar_lea.hbm %s3069_s11, 1024 }
  0x58   :  { %p2510_p12 = scmp.ne.s32.totalorder %s3069_s11, %s2509_s29  ;;  %p2513_p13 = scmp.lt.u32.totalorder %s2509_s29, %s3069_s11 }
  0x5a   :  { %p2515_p0 = pnand %p2513_p13, %p2510_p12 }
  0x5c   :  { %2518 = shalt.err (!%p2515_p0)
}
  0x5d   :  { %s2519_s7 = scalar_lea.vmem %s2721_s28, 1024  ;;  %p2524_p2 = scmp.lt.s32.totalorder %s2721_s28, %s2721_s28 }
  0x5e   :  { %p2520_p1 = scmp.ne.s32.totalorder %s2721_s28, %s2519_s7  ;;  %p2525_p3 = scmp.lt.s32.totalorder %s2519_s7, %s2519_s7 }
  0x60   :  { %p2526_p4 = por %p2525_p3, %p2524_p2 }
  0x62   :  { %p2527_p5 = pnand %p2526_p4, %p2520_p1 }
  0x64   :  { %2530 = shalt.err (!%p2527_p5)
}
  0x65   :  { %107 = dma.hbm_to_vmem [thread:$0]  %s3069_s11, 1024, %s2721_s28, [#allocation12], %s2565_s20, %s2565_s20, %s2566_s21  }
  0x66   :  { %2553 = dma.done.wait [#allocation3], 1024  }
  0x67   :  { %2554 = vsyncadd [#allocation3], 4294966272 }
  0x68   :  { %2555 = dma.done.wait [#allocation6], 3072  }
  0x69   :  { %2556 = vsyncadd [#allocation6], 4294964224 }
  0x6a   :  { %2557 = dma.done.wait [#allocation9], 2048  }
  0x6b   :  { %2558 = vsyncadd [#allocation9], 4294965248 }
  0x6c   :  { %2559 = dma.done.wait [#allocation12], 1024  }
  0x6d   :  { %2560 = vsyncadd [#allocation12], 4294966272  ;;  %v2761_v0 = vld [vmem:[%s3058_s0] sm:$0xff]  ;;  %v2766_v1 = vld [vmem:[%s3058_s0 + $0x8] sm:$0xff]  ;;  %v2573_v30 = vmov 0   ;;  %v333_v46 = vlaneseq  ;;  %vm2575_vm0 = vmmov 0  }
  0x6e   :  { %279 = vadd.xlane.f32.xlu0 %v2761_v0  ;;  %v291_v2 = vmul.f32 %v2761_v0, %v2761_v0  ;;  %v2244_v3 = vld [vmem:[%s3063_s5 + $0x4] ss:$12 sps:$4 sm:$0xff]   ;;  %v292_v4 = vmul.f32 %v2766_v1, %v2766_v1  ;;  %v2785_v6 = vld [vmem:[%s3058_s0 + $0x18] sm:$0xff]  ;;  %v2246_v9 = vld [vmem:[%s3063_s5] ss:$12 sps:$4 sm:$0xff]   ;;  %519 = vmatprep.mubr.bf16.mxu0 %v2573_v30  ;;  %vm695_vm1 = vcmask 130048  }
  0x6f   :  { %v2779_v5 = vld [vmem:[%s3058_s0 + $0x10] sm:$0xff]  ;;  %487 = vmatprep.subr.bf16.mxu0 %v2244_v3  ;;  %v294_v8 = vmul.f32 %v2785_v6, %v2785_v6  ;;  %v2247_v10 = vld [vmem:[%s3063_s5 + $0x1c] ss:$12 sps:$4 sm:$0xff]   ;;  %v2249_v11 = vld [vmem:[%s3063_s5 + $0x18] ss:$12 sps:$4 sm:$0xff]   ;;  %v2863_v54 = vshrl.u32 %v333_v46, 7 }
  0x70   :  { %295 = vadd.xlane.f32.xlu1 %v291_v2  ;;  %v293_v7 = vmul.f32 %v2779_v5, %v2779_v5  ;;  %488 = vmatpush1.bf16.msra.mxu0 %v2246_v9  ;;  %v2250_v12 = vld [vmem:[%s3063_s5 + $0x34] ss:$12 sps:$4 sm:$0xff]   ;;  %v2253_v14 = vld [vmem:[%s3063_s5 + $0x30] ss:$12 sps:$4 sm:$0xff]   ;;  %v2254_v15 = vld [vmem:[%s3063_s5 + $0x4c] ss:$12 sps:$4 sm:$0xff]  }
  0x71   :  { %489 = vmatprep.subr.bf16.mxu0 %v2247_v10  ;;  %v2252_v13 = vld [vmem:[%s3063_s5 + $0x8] ss:$12 sps:$4 sm:$0xff]   ;;  %v2256_v16 = vld [vmem:[%s3063_s5 + $0x20] ss:$12 sps:$4 sm:$0xff]   ;;  %v2258_v18 = vld [vmem:[%s3063_s5 + $0x64] ss:$12 sps:$4 sm:$0xff]  }
  0x72   :  { %281 = vadd.xlane.f32.xlu0 %v2766_v1  ;;  %2062 = vmatprep.subr.bf16.mxu1 %v2252_v13  ;;  %v2257_v17 = vld [vmem:[%s3063_s5 + $0x48] ss:$12 sps:$4 sm:$0xff]   ;;  %v2260_v19 = vld [vmem:[%s3063_s5 + $0x38] ss:$12 sps:$4 sm:$0xff]   ;;  %v2261_v20 = vld [vmem:[%s3063_s5 + $0x60] ss:$12 sps:$4 sm:$0xff]  }
  0x73   :  { %2063 = vmatpush3.bf16.msra.mxu1 %v2252_v13  ;;  %v2262_v21 = vld [vmem:[%s3063_s5 + $0x7c] ss:$12 sps:$4 sm:$0xff]   ;;  %v2265_v23 = vld [vmem:[%s3063_s5 + $0x78] ss:$12 sps:$4 sm:$0xff]   ;;  %v2266_v24 = vld [vmem:[%s3063_s5 + $0x94] ss:$12 sps:$4 sm:$0xff]  }
  0x74   :  { %297 = vadd.xlane.f32.xlu1 %v292_v4  ;;  %490 = vmatpush1.bf16.msra.mxu0 %v2249_v11  ;;  %v2264_v22 = vld [vmem:[%s3063_s5 + $0x50] ss:$12 sps:$4 sm:$0xff]   ;;  %v2268_v25 = vld [vmem:[%s3063_s5 + $0x68] ss:$12 sps:$4 sm:$0xff]   ;;  %v2270_v27 = vld [vmem:[%s3063_s5 + $0xac] ss:$12 sps:$4 sm:$0xff]  }
  0x75   :  { %491 = vmatprep.subr.bf16.mxu0 %v2250_v12  ;;  %2064 = vmatprep.subr.bf16.mxu1 %v2256_v16  ;;  %v2269_v26 = vld [vmem:[%s3063_s5 + $0x90] ss:$12 sps:$4 sm:$0xff]   ;;  %v2272_v28 = vld [vmem:[%s3063_s5 + $0x80] ss:$12 sps:$4 sm:$0xff]   ;;  %v2273_v29 = vld [vmem:[%s3063_s5 + $0xa8] ss:$12 sps:$4 sm:$0xff]  }
  0x76   :  { %283 = vadd.xlane.f32.xlu0 %v2779_v5  ;;  %v2274_v31 = vld [vmem:[%s3063_s5 + $0x98] ss:$12 sps:$4 sm:$0xff]   ;;  %v2275_v32 = vld [vmem:[%s3063_s5 + $0xb0] ss:$12 sps:$4 sm:$0xff]   ;;  %v335_v62 = vsub.s32 1, %v2863_v54  ;;  %v347_v10 = vsub.s32 0, %v2863_v54 }
  0x77   :  { %2065 = vmatpush3.bf16.msra.mxu1 %v2256_v16  ;;  %v2868_v56 = vld [vmem:[%s3062_s4] sm:$0x3f]  ;;  %v2880_v11 = vld [vmem:[%s3062_s4 + $0x8] sm:$0x3f]  ;;  %vm1333_vm2 = vcmask 1043456   ;;  %vm1281_vm3 = vcmask 64512  }
  0x78   :  { %285 = vadd.xlane.f32.xlu1 %v2785_v6  ;;  %492 = vmatpush1.bf16.msra.mxu0 %v2253_v14  ;;  %v2871_v61 = vadd.f32 1.0, %v2868_v56  ;;  %v348_v16 = vrot.slane %v2868_v56, %v347_v10  ;;  %s2576_s9 = smov [#allocation13]  }
  0x79   :  { %493 = vmatprep.subr.bf16.mxu0 %v2254_v15  ;;  %2066 = vmatprep.subr.bf16.mxu1 %v2260_v19  ;;  %s1880_s15 = sshll.u32 %s2576_s9, 4  ;;  %s1881_s15 = int_to_ptr.vmem [resolvable:$true] %s1880_s15 }
  0x7a   :  { %299 = vadd.xlane.f32.xlu0 %v293_v7  ;;  %v336_v9 = vrot.slane %v2871_v61, %v335_v62  ;;  %p2536_p7 = scmp.lt.s32.totalorder %s1881_s15, %s1881_s15 }
  0x7b   :  { %2067 = vmatpush3.bf16.msra.mxu1 %v2260_v19 }
  0x7c   :  { %301 = vadd.xlane.f32.xlu1 %v294_v8  ;;  %494 = vmatpush1.bf16.msra.mxu0 %v2257_v17  ;;  %v2885_v17 = vadd.f32 1.0, %v2880_v11 }
  0x7d   :  { %495 = vmatprep.subr.bf16.mxu0 %v2258_v18  ;;  %2068 = vmatprep.subr.bf16.mxu1 %v2264_v22 }
  0x7f   :  { %2069 = vmatpush3.bf16.msra.mxu1 %v2264_v22  ;;  %v340_v22 = vrot.slane %v2885_v17, %v335_v62 }
  0x80   :  { %496 = vmatpush1.bf16.msra.mxu0 %v2261_v20  ;;  %2070 = vmatprep.subr.bf16.mxu1 %v2268_v25 }
  0x81   :  { %497 = vmatprep.subr.bf16.mxu0 %v2262_v21 }
  0x83   :  { %2071 = vmatpush3.bf16.msra.mxu1 %v2268_v25 }
  0x84   :  { %498 = vmatpush1.bf16.msra.mxu0 %v2265_v23  ;;  %2072 = vmatprep.subr.bf16.mxu1 %v2272_v28 }
  0x85   :  { %499 = vmatprep.subr.bf16.mxu0 %v2266_v24 }
  0x87   :  { %2073 = vmatpush3.bf16.msra.mxu1 %v2272_v28 }
  0x88   :  { %500 = vmatpush1.bf16.msra.mxu0 %v2269_v26  ;;  %2074 = vmatprep.subr.bf16.mxu1 %v2274_v31 }
  0x89   :  { %501 = vmatprep.subr.bf16.mxu0 %v2270_v27 }
  0x8b   :  { %2075 = vmatpush3.bf16.msra.mxu1 %v2274_v31  ;;  %v352_v31 = vrot.slane %v2880_v11, %v347_v10  ;;  %v1922_v10 = vld [vmem:[%s3060_s2 + $0x1] ss:$0 sm:$0xff] }
  0x8c   :  { %502 = vmatpush1.bf16.msra.mxu0 %v2273_v29  ;;  %2076 = vmatprep.subr.bf16.mxu1 %v2275_v32 }
  0x8f   :  { %2077 = vmatpush3.bf16.msra.mxu1 %v2275_v32 }
  0xfb   :  { %v280_v33 = vpop.xlane.xlu0 %279 }
  0xfc   :  { %v287_v34 = vmul.f32 0.03125, %v280_v33 }
  0xfd   :  { %v296_v35 = vpop.xlane.xlu1 %295 }
  0xfe   :  { %v307_v36 = vmul.f32 %v287_v34, %v287_v34  ;;  %v303_v37 = vmul.f32 0.03125, %v296_v35  ;;  %v315_v3 = vsub.f32 %v2761_v0, %v287_v34 }
  0xff   :  { %v282_v38 = vpop.xlane.xlu0 %281 }
 0x100   :  { %v311_v39 = vsub.f32 %v303_v37, %v307_v36  ;;  %v288_v40 = vmul.f32 0.03125, %v282_v38  ;;  %v2574_v36 = vmov 0.0  }
 0x101   :  { %v298_v41 = vpop.xlane.xlu1 %297  ;;  %2082 = vmatprep.subr.bf16.mxu0 %v2574_v36  ;;  %2094 = vmatprep.subr.bf16.mxu1 %v2574_v36 }
 0x102   :  { %v319_v42 = vadd.f32 1e-06, %v311_v39  ;;  %v308_v43 = vmul.f32 %v288_v40, %v288_v40  ;;  %v304_v44 = vmul.f32 0.03125, %v298_v41  ;;  %v316_v12 = vsub.f32 %v2766_v1, %v288_v40 }
 0x103   :  { %v284_v45 = vpop.xlane.xlu0 %283 }
 0x104   :  { %2341 = vrsqrt.f32 %v319_v42  ;;  %v312_v47 = vsub.f32 %v304_v44, %v308_v43  ;;  %v289_v48 = vmul.f32 0.03125, %v284_v45 }
 0x105   :  { %v286_v49 = vpop.xlane.xlu1 %285 }
 0x106   :  { %v320_v50 = vadd.f32 1e-06, %v312_v47  ;;  %v309_v51 = vmul.f32 %v289_v48, %v289_v48  ;;  %v290_v52 = vmul.f32 0.03125, %v286_v49  ;;  %v317_v19 = vsub.f32 %v2779_v5, %v289_v48 }
 0x107   :  { %v300_v53 = vpop.xlane.xlu0 %299 }
 0x108   :  { %2343 = vrsqrt.f32 %v320_v50  ;;  %v305_v55 = vmul.f32 0.03125, %v300_v53  ;;  %v310_v58 = vmul.f32 %v290_v52, %v290_v52  ;;  %v318_v24 = vsub.f32 %v2785_v6, %v290_v52 }
 0x109   :  { %v302_v57 = vpop.xlane.xlu1 %301 }
 0x10a   :  { %v313_v59 = vsub.f32 %v305_v55, %v309_v51  ;;  %v306_v60 = vmul.f32 0.03125, %v302_v57 }
 0x10c   :  { %v321_v63 = vadd.f32 1e-06, %v313_v59  ;;  %v314_v2 = vsub.f32 %v306_v60, %v310_v58  ;;  %v1921_v58 = vld [vmem:[%s3060_s2] ss:$0 sm:$0xff] }
 0x10e   :  { %v2342_v4 = vpop.eup %2341  ;;  %2345 = vrsqrt.f32 %v321_v63  ;;  %v322_v7 = vadd.f32 1e-06, %v314_v2 }
 0x10f   :  { %v327_v8 = vmul.f32 %v2342_v4, %v315_v3 }
 0x110   :  { %2347 = vrsqrt.f32 %v322_v7 }
 0x111   :  { %v341_v15 = vmul.f32 %v336_v9, %v327_v8 }
 0x112   :  { %v2344_v13 = vpop.eup %2343 }
 0x113   :  { %v328_v14 = vmul.f32 %v2344_v13, %v316_v12  ;;  %v353_v20 = vadd.f32 %v348_v16, %v341_v15 }
 0x115   :  { %v342_v18 = vmul.f32 %v336_v9, %v328_v14 }
 0x117   :  { %v354_v21 = vadd.f32 %v348_v16, %v342_v18 }
 0x118   :  { %v2346_v23 = vpop.eup %2345 }
 0x119   :  { %v357_v25 = vpack.c.bf16 %v354_v21, %v353_v20  ;;  %v329_v26 = vmul.f32 %v2346_v23, %v317_v19 }
 0x11a   :  { %v2348_v27 = vpop.eup %2347 }
 0x11b   :  { %520 = vmatmul.mubr.bf16.vlgmr.msra.gmra.mrb[0].mxu0 %v357_v25  ;;  %2078 = vmatprep.mubr.bf16.mxu1 %v357_v25  ;;  %v330_v28 = vmul.f32 %v2348_v27, %v318_v24  ;;  %v343_v29 = vmul.f32 %v340_v22, %v329_v26 }
 0x11c   :  { %529 = vmatprep.mubr.bf16.mxu0 %v2573_v30 }
 0x11d   :  { %v344_v32 = vmul.f32 %v340_v22, %v330_v28  ;;  %v355_v33 = vadd.f32 %v352_v31, %v343_v29 }
 0x11f   :  { %v356_v34 = vadd.f32 %v352_v31, %v344_v32 }
 0x121   :  { %v358_v35 = vpack.c.bf16 %v356_v34, %v355_v33 }
 0x123   :  { %530 = vmatmul.mubr.bf16.gmra.mrb[4].mxu0 %v358_v35  ;;  %2079 = vmatmul.mubr.bf16.vlgmr.msra.gmra.mrb[0].mxu1 %v358_v35 }
 0x124   :  { %2084 = vmatprep.mubr.msk.bf16.mxu0 %vm2575_vm0, %v2574_v36  ;;  %2096 = vmatprep.mubr.msk.bf16.mxu1 %vm2575_vm0, %v2574_v36 }
 0x1ee   :  { %v521_v37 = vpop.f32.mrb[0].mxu0 }
 0x1ef   :  { %v523_v38 = vpop.f32.mrb[1].mxu0 }
 0x1f0   :  { %v525_v39 = vpop.f32.mrb[2].mxu0 }
 0x1f1   :  { %v589_v40 = vpack.c.bf16 %v525_v39, %v521_v37  ;;  %v527_v41 = vpop.f32.mrb[3].mxu0 }
 0x1f2   :  { %v591_v42 = vpack.c.bf16 %v527_v41, %v523_v38 }
 0x1f4   :  { %2083 = vmatpush3.bf16.xpose.msra.mxu0 %v591_v42 }
 0x1f5   :  { %2088 = vmatprep.subr.bf16.mxu0 %v2574_v36 }
 0x1f6   :  { %v531_v43 = vpop.f32.mrb[4].mxu0  ;;  %v2080_v44 = vpop.f32.mrb[0].mxu1 }
 0x1f7   :  { %v533_v45 = vpop.f32.mrb[5].mxu0  ;;  %v574_v46 = vpop.f32.mrb[1].mxu1 }
 0x1f8   :  { %v535_v47 = vpop.f32.mrb[6].mxu0  ;;  %v2081_v48 = vpop.f32.mrb[2].mxu1 }
 0x1f9   :  { %v590_v49 = vpack.c.bf16 %v535_v47, %v531_v43  ;;  %v743_v50 = vpack.c.bf16 %v2081_v48, %v2080_v44  ;;  %v537_v51 = vpop.f32.mrb[7].mxu0  ;;  %v577_v52 = vpop.f32.mrb[3].mxu1  ;;  %v2276_v44 = vld [vmem:[#allocation2] sm:$0xff]  }
 0x1fa   :  { %v592_v53 = vpack.c.bf16 %v537_v51, %v533_v45  ;;  %v742_v55 = vpack.c.bf16 %v577_v52, %v574_v46 }
 0x1fb   :  { %2085 = vmatmul.mubr.bf16.vlgmr.msra.gmra.mrb[8].mxu0 %v589_v40 }
 0x1fc   :  { %2089 = vmatpush3.bf16.xpose.msra.mxu0 %v592_v53  ;;  %2095 = vmatpush3.bf16.msra.mxu1 %v742_v55  ;;  %v2277_v55 = vld [vmem:[#allocation2 + $0x8] sm:$0xff]  }
 0x1fd   :  { %2090 = vmatprep.mubr.msk.bf16.mxu0 %vm2575_vm0, %v2574_v36  ;;  %2100 = vmatprep.subr.bf16.mxu0 %v2574_v36 }
 0x1fe   :  { %2106 = vmatprep.subr.bf16.mxu1 %v2276_v44 }
 0x203   :  { %2091 = vmatmul.mubr.bf16.vlgmr.msra.gmra.mrb[12].mxu0 %v590_v49 }
 0x204   :  { %2101 = vmatpush3.bf16.msra.mxu0 %v743_v50  ;;  %2102 = vmatprep.mubr.msk.bf16.mxu0 %vm2575_vm0, %v2574_v36 }
 0x2ce   :  { %v627_v57 = vpop.f32.mrb[8].mxu0 }
 0x2cf   :  { %v675_v59 = vmul.f32 0.17677669, %v627_v57  ;;  %v2086_v60 = vpop.f32.mrb[9].mxu0 }
 0x2d0   :  { %v630_v62 = vpop.f32.mrb[10].mxu0 }
 0x2d1   :  { %v676_v63 = vmul.f32 0.17677669, %v630_v62  ;;  %v2087_v2 = vpop.f32.mrb[11].mxu0  ;;  %v691_v3 = vadd.f32 %v1921_v58, %v675_v59 }
 0x2d2   :  { %v2279_v2 = vld [vmem:[#allocation2 + $0x18] sm:$0xff]  }
 0x2d3   :  { %v696_v4 = vsel %vm695_vm1, %v691_v3, -inf  ;;  %v692_v7 = vadd.f32 %v1921_v58, %v676_v63  ;;  %v2278_v58 = vld [vmem:[#allocation2 + $0x10] sm:$0xff]  }
 0x2d4   :  { %697 = vmax.xlane.f32.xlu0 %v696_v4  ;;  %v2281_v4 = vld [vmem:[#allocation2 + $0x28] sm:$0xff]  }
 0x2d5   :  { %v699_v8 = vsel %vm695_vm1, %v692_v7, -inf }
 0x2d6   :  { %700 = vmax.xlane.f32.xlu1 %v699_v8  ;;  %v668_v9 = vpop.f32.mrb[12].mxu0  ;;  %v2283_v8 = vld [vmem:[#allocation2 + $0x38] sm:$0xff]  }
 0x2d7   :  { %v677_v12 = vmul.f32 0.17677669, %v668_v9  ;;  %v2092_v13 = vpop.f32.mrb[13].mxu0  ;;  %v2286_v9 = vld [vmem:[#allocation7 + $0x4] ss:$8 sps:$4 sm:$0xff]  }
 0x2d8   :  { %v671_v14 = vpop.f32.mrb[14].mxu0  ;;  %v2298_v13 = vld [vmem:[#allocation5 + $0x10] sm:$0xff]  }
 0x2d9   :  { %v678_v15 = vmul.f32 0.17677669, %v671_v14  ;;  %v2093_v16 = vpop.f32.mrb[15].mxu0  ;;  %v693_v18 = vadd.f32 %v1922_v10, %v677_v12  ;;  %v2294_v12 = vld [vmem:[#allocation5 + $0x8] sm:$0xff]   ;;  %v2302_v14 = vld [vmem:[#allocation5 + $0x18] sm:$0xff]  }
 0x2da   :  { %v2310_v16 = vld [vmem:[#allocation5 + $0x28] sm:$0xff]  }
 0x2db   :  { %v702_v19 = vsel %vm695_vm1, %v693_v18, -inf  ;;  %v694_v20 = vadd.f32 %v1922_v10, %v678_v15  ;;  %v2290_v10 = vld [vmem:[#allocation5] sm:$0xff]  }
 0x2dc   :  { %703 = vmax.xlane.f32.xlu0 %v702_v19  ;;  %2126 = vmatprep.subr.bf16.mxu0 %v2290_v10  ;;  %v2306_v15 = vld [vmem:[#allocation5 + $0x20] sm:$0xff]  }
 0x2dd   :  { %v705_v21 = vsel %vm695_vm1, %v694_v20, -inf }
 0x2de   :  { %706 = vmax.xlane.f32.xlu1 %v705_v21 }
 0x361   :  { %v698_v22 = vpop.xlane.xlu0 %697 }
 0x362   :  { %v708_v23 = vsub.f32 %v691_v3, %v698_v22  ;;  %v2280_v3 = vld [vmem:[#allocation2 + $0x20] sm:$0xff]  }
 0x363   :  { %v701_v24 = vpop.xlane.xlu1 %700 }
 0x364   :  { %v712_v25 = vmul.f32 1.442695, %v708_v23  ;;  %v709_v26 = vsub.f32 %v692_v7, %v701_v24  ;;  %v2282_v7 = vld [vmem:[#allocation2 + $0x30] sm:$0xff]  }
 0x366   :  { %2349 = vpow2.f32 %v712_v25  ;;  %v714_v27 = vmul.f32 1.442695, %v709_v26  ;;  %v2284_v26 = vld [vmem:[#allocation7] ss:$8 sps:$4 sm:$0xff]  }
 0x368   :  { %2351 = vpow2.f32 %v714_v27 }
 0x369   :  { %v704_v28 = vpop.xlane.xlu0 %703 }
 0x36a   :  { %v710_v29 = vsub.f32 %v693_v18, %v704_v28 }
 0x36b   :  { %v707_v31 = vpop.xlane.xlu1 %706 }
 0x36c   :  { %v716_v32 = vmul.f32 1.442695, %v710_v29  ;;  %v711_v33 = vsub.f32 %v694_v20, %v707_v31  ;;  %v2289_v29 = vld [vmem:[#allocation7 + $0x14] ss:$8 sps:$4 sm:$0xff]   ;;  %v2287_v31 = vld [vmem:[#allocation7 + $0x10] ss:$8 sps:$4 sm:$0xff]  }
 0x36e   :  { %2353 = vpow2.f32 %v716_v32  ;;  %v718_v34 = vmul.f32 1.442695, %v711_v33  ;;  %v2293_v32 = vld [vmem:[#allocation7 + $0x24] ss:$8 sps:$4 sm:$0xff]   ;;  %v2291_v33 = vld [vmem:[#allocation7 + $0x20] ss:$8 sps:$4 sm:$0xff]  }
 0x370   :  { %v2350_v35 = vpop.eup %2349  ;;  %2355 = vpow2.f32 %v718_v34  ;;  %v2297_v34 = vld [vmem:[#allocation7 + $0x34] ss:$8 sps:$4 sm:$0xff]  }
 0x371   :  { %v720_v37 = vsel %vm695_vm1, %v2350_v35, 0.0 }
 0x372   :  { %v2352_v38 = vpop.eup %2351  ;;  %721 = vadd.xlane.f32.xlu0 %v720_v37  ;;  %v2301_v37 = vld [vmem:[#allocation7 + $0x44] ss:$8 sps:$4 sm:$0xff]  }
 0x373   :  { %v723_v39 = vsel %vm695_vm1, %v2352_v38, 0.0 }
 0x374   :  { %724 = vadd.xlane.f32.xlu1 %v723_v39  ;;  %v2305_v39 = vld [vmem:[#allocation7 + $0x54] ss:$8 sps:$4 sm:$0xff]  }
 0x378   :  { %v2354_v40 = vpop.eup %2353 }
 0x379   :  { %v726_v41 = vsel %vm695_vm1, %v2354_v40, 0.0 }
 0x37a   :  { %v2356_v42 = vpop.eup %2355  ;;  %727 = vadd.xlane.f32.xlu0 %v726_v41  ;;  %v2309_v41 = vld [vmem:[#allocation7 + $0x64] ss:$8 sps:$4 sm:$0xff]  }
 0x37b   :  { %v729_v43 = vsel %vm695_vm1, %v2356_v42, 0.0 }
 0x37c   :  { %730 = vadd.xlane.f32.xlu1 %v729_v43  ;;  %v2311_v43 = vld [vmem:[#allocation7 + $0x70] ss:$8 sps:$4 sm:$0xff]  }
 0x3ff   :  { %v722_v45 = vpop.xlane.xlu0 %721 }
 0x400   :  { %2357 = vrcp.f32 %v722_v45  ;;  %v2315_v45 = vld [vmem:[%s3059_s1] sm:$0xff]  }
 0x401   :  { %v725_v46 = vpop.xlane.xlu1 %724 }
 0x402   :  { %2359 = vrcp.f32 %v725_v46  ;;  %v2316_v46 = vld [vmem:[#allocation5 + $0x38] sm:$0xff]  }
 0x407   :  { %v728_v47 = vpop.xlane.xlu0 %727 }
 0x408   :  { %2361 = vrcp.f32 %v728_v47  ;;  %v933_v47 = vsub.s32 2, %v2863_v54 }
 0x409   :  { %v731_v48 = vpop.xlane.xlu1 %730 }
 0x40a   :  { %v2358_v49 = vpop.eup %2357  ;;  %2363 = vrcp.f32 %v731_v48  ;;  %v934_v48 = vrot.slane %v2868_v56, %v933_v47 }
 0x40b   :  { %v736_v51 = vmul.f32 %v2358_v49, %v2350_v35  ;;  %v2295_v35 = vld [vmem:[#allocation7 + $0x30] ss:$8 sps:$4 sm:$0xff]   ;;  %v938_v49 = vrot.slane %v2880_v11, %v933_v47 }
 0x40c   :  { %v2360_v50 = vpop.eup %2359 }
 0x40d   :  { %v737_v52 = vmul.f32 %v2360_v50, %v2352_v38  ;;  %v2299_v38 = vld [vmem:[#allocation7 + $0x40] ss:$8 sps:$4 sm:$0xff]  }
 0x40f   :  { %v740_v53 = vpack.c.bf16 %v737_v52, %v736_v51 }
 0x411   :  { %2097 = vmatmul.mubr.msk.bf16.vlgmr.msra.gmra.mrb[4].mxu1 %vm695_vm1, %v740_v53 }
 0x412   :  { %v2362_v57 = vpop.eup %2361  ;;  %2107 = vmatpush3.bf16.msra.mxu1 %v2276_v44  ;;  %v2314_v44 = vld [vmem:[#allocation5 + $0x30] sm:$0xff]  }
 0x413   :  { %2108 = vmatprep.subr.bf16.mxu1 %v2277_v55  ;;  %v738_v60 = vmul.f32 %v2362_v57, %v2354_v40  ;;  %v2303_v40 = vld [vmem:[#allocation7 + $0x50] ss:$8 sps:$4 sm:$0xff]  }
 0x414   :  { %v2364_v59 = vpop.eup %2363 }
 0x415   :  { %v739_v62 = vmul.f32 %v2364_v59, %v2356_v42  ;;  %v2313_v42 = vld [vmem:[#allocation7 + $0x74] ss:$8 sps:$4 sm:$0xff]  }
 0x416   :  { %2109 = vmatpush3.bf16.msra.mxu1 %v2277_v55 }
 0x417   :  { %v741_v63 = vpack.c.bf16 %v739_v62, %v738_v60  ;;  %2110 = vmatprep.subr.bf16.mxu1 %v2278_v58 }
 0x419   :  { %2103 = vmatmul.mubr.msk.bf16.vlgmr.msra.gmra.mrb[16].mxu0 %vm695_vm1, %v741_v63 }
 0x41a   :  { %2111 = vmatpush3.bf16.msra.mxu1 %v2278_v58  ;;  %2127 = vmatpush3.bf16.msra.mxu0 %v2290_v10 }
 0x41b   :  { %2112 = vmatprep.subr.bf16.mxu1 %v2279_v2  ;;  %2128 = vmatprep.subr.bf16.mxu0 %v2294_v12 }
 0x41e   :  { %2113 = vmatpush3.bf16.msra.mxu1 %v2279_v2  ;;  %2129 = vmatpush3.bf16.msra.mxu0 %v2294_v12 }
 0x41f   :  { %2114 = vmatprep.subr.bf16.mxu1 %v2280_v3  ;;  %2130 = vmatprep.subr.bf16.mxu0 %v2298_v13 }
 0x422   :  { %2115 = vmatpush3.bf16.msra.mxu1 %v2280_v3  ;;  %2131 = vmatpush3.bf16.msra.mxu0 %v2298_v13 }
 0x423   :  { %2116 = vmatprep.subr.bf16.mxu1 %v2281_v4  ;;  %2132 = vmatprep.subr.bf16.mxu0 %v2302_v14 }
 0x426   :  { %2117 = vmatpush3.bf16.msra.mxu1 %v2281_v4  ;;  %2133 = vmatpush3.bf16.msra.mxu0 %v2302_v14 }
 0x427   :  { %2118 = vmatprep.subr.bf16.mxu1 %v2282_v7  ;;  %2134 = vmatprep.subr.bf16.mxu0 %v2306_v15 }
 0x42a   :  { %2119 = vmatpush3.bf16.msra.mxu1 %v2282_v7  ;;  %2135 = vmatpush3.bf16.msra.mxu0 %v2306_v15 }
 0x42b   :  { %2120 = vmatprep.subr.bf16.mxu1 %v2283_v8  ;;  %2136 = vmatprep.subr.bf16.mxu0 %v2310_v16 }
 0x42e   :  { %2121 = vmatpush3.bf16.msra.mxu1 %v2283_v8  ;;  %2137 = vmatpush3.bf16.msra.mxu0 %v2310_v16 }
 0x42f   :  { %1132 = vmatprep.subr.bf16.mxu1 %v2286_v9  ;;  %2138 = vmatprep.subr.bf16.mxu0 %v2314_v44 }
 0x432   :  { %2139 = vmatpush3.bf16.msra.mxu0 %v2314_v44 }
 0x433   :  { %2140 = vmatprep.subr.bf16.mxu0 %v2316_v46 }
 0x436   :  { %2141 = vmatpush3.bf16.msra.mxu0 %v2316_v46 }
 0x437   :  { %2146 = vmatprep.subr.bf16.mxu0 %v2574_v36 }
 0x4e4   :  { %v781_v18 = vpop.f32.mrb[4].mxu1 }
 0x4e5   :  { %v2098_v19 = vpop.f32.mrb[5].mxu1 }
 0x4e6   :  { %v784_v20 = vpop.f32.mrb[6].mxu1 }
 0x4e7   :  { %v832_v21 = vpack.c.bf16 %v784_v20, %v781_v18  ;;  %v2099_v22 = vpop.f32.mrb[7].mxu1 }
 0x4e8   :  { %v1958_v22 = vld [vmem:[%s3061_s3] ss:$0 sm:$0xff] }
 0x4e9   :  { %2122 = vmatprep.mubr.bf16.mxu1 %v832_v21 }
 0x4ec   :  { %v825_v23 = vpop.f32.mrb[16].mxu0 }
 0x4ed   :  { %v2104_v24 = vpop.f32.mrb[17].mxu0 }
 0x4ee   :  { %v828_v25 = vpop.f32.mrb[18].mxu0 }
 0x4ef   :  { %v833_v27 = vpack.c.bf16 %v828_v25, %v825_v23  ;;  %v2105_v28 = vpop.f32.mrb[19].mxu0 }
 0x4f1   :  { %2123 = vmatmul.mubr.bf16.vlgmr.msra.gmra.mrb[8].mxu1 %v833_v27 }
 0x4f2   :  { %1133 = vmatpush1.bf16.msra.mxu1 %v2284_v26  ;;  %1164 = vmatprep.mubr.bf16.mxu1 %v2573_v30  ;;  %v2307_v30 = vld [vmem:[#allocation7 + $0x60] ss:$8 sps:$4 sm:$0xff]  }
 0x4f3   :  { %1134 = vmatprep.subr.bf16.mxu1 %v2289_v29 }
 0x4f6   :  { %1135 = vmatpush1.bf16.msra.mxu1 %v2287_v31 }
 0x4f7   :  { %1136 = vmatprep.subr.bf16.mxu1 %v2293_v32 }
 0x4fa   :  { %1137 = vmatpush1.bf16.msra.mxu1 %v2291_v33 }
 0x4fb   :  { %1138 = vmatprep.subr.bf16.mxu1 %v2297_v34  ;;  %v1959_v34 = vld [vmem:[%s3061_s3 + $0x1] ss:$0 sm:$0xff] }
 0x4fe   :  { %1139 = vmatpush1.bf16.msra.mxu1 %v2295_v35 }
 0x4ff   :  { %1140 = vmatprep.subr.bf16.mxu1 %v2301_v37 }
 0x502   :  { %1141 = vmatpush1.bf16.msra.mxu1 %v2299_v38 }
 0x503   :  { %1142 = vmatprep.subr.bf16.mxu1 %v2305_v39 }
 0x506   :  { %1143 = vmatpush1.bf16.msra.mxu1 %v2303_v40 }
 0x507   :  { %1144 = vmatprep.subr.bf16.mxu1 %v2309_v41 }
 0x50a   :  { %1145 = vmatpush1.bf16.msra.mxu1 %v2307_v30 }
 0x50b   :  { %1146 = vmatprep.subr.bf16.mxu1 %v2313_v42 }
 0x50e   :  { %1147 = vmatpush1.bf16.msra.mxu1 %v2311_v43 }
 0x511   :  { %1165 = vmatmul.mubr.bf16.vlgmr.msra.gmra.mrb[12].mxu1 %v2315_v45 }
 0x5c4   :  { %v2124_v50 = vpop.f32.mrb[8].mxu1 }
 0x5c5   :  { %v916_v51 = vpop.f32.mrb[9].mxu1  ;;  %v941_v55 = vmul.f32 %v2124_v50, %v938_v49 }
 0x5c6   :  { %v939_v52 = vmul.f32 %v934_v48, %v916_v51  ;;  %v2125_v53 = vpop.f32.mrb[10].mxu1 }
 0x5c7   :  { %v942_v57 = vmul.f32 %v2125_v53, %v938_v49  ;;  %v919_v58 = vpop.f32.mrb[11].mxu1  ;;  %v2938_v2 = vadd.f32 %v941_v55, %v2779_v5 }
 0x5c8   :  { %v940_v59 = vmul.f32 %v934_v48, %v919_v58  ;;  %v2932_v62 = vadd.f32 %v939_v52, %v2761_v0 }
 0x5c9   :  { %v2929_v60 = vadd.f32 %v942_v57, %v2785_v6 }
 0x5ca   :  { %v2935_v63 = vadd.f32 %v940_v59, %v2766_v1 }
 0x5cb   :  { %v948_v4 = vpack.c.bf16 %v2929_v60, %v2938_v2 }
 0x5cc   :  { %v947_v3 = vpack.c.bf16 %v2935_v63, %v2932_v62 }
 0x5ce   :  { %2142 = vmatprep.mubr.bf16.mxu0 %v947_v3 }
 0x5cf   :  { %2143 = vmatmul.mubr.bf16.vlgmr.msra.gmra.mrb[20].mxu0 %v948_v4 }
 0x5d0   :  { %2148 = vmatprep.mubr.msk.bf16.mxu0 %vm2575_vm0, %v2574_v36 }
 0x5e4   :  { %v1166_v6 = vpop.f32.mrb[12].mxu1 }
 0x5e5   :  { %v1177_v0 = vpack.c.bf16 %v1166_v6, %v1166_v6  ;;  %v1168_v7 = vpop.f32.mrb[13].mxu1 }
 0x5e6   :  { %v1170_v8 = vpop.f32.mrb[14].mxu1  ;;  %v1328_v19 = vpack.c.bf16 %v1168_v7, %v1168_v7 }
 0x5e7   :  { %2147 = vmatpush3.bf16.xpose.msra.mxu0 %v1177_v0  ;;  %v1172_v1 = vpop.f32.mrb[15].mxu1  ;;  %v1178_v18 = vpack.c.bf16 %v1170_v8, %v1170_v8 }
 0x5e8   :  { %v1329_v9 = vpack.c.bf16 %v1172_v1, %v1172_v1  ;;  %2152 = vmatprep.subr.bf16.mxu0 %v2574_v36  ;;  %v1335_v20 = vsel %vm1333_vm2, %v1328_v19, 0  ;;  %v2317_v1 = vld [vmem:[#allocation8] sm:$0xff]  }
 0x5e9   :  { %2170 = vmatprep.subr.bf16.mxu1 %v2317_v1 }
 0x5ea   :  { %v2947_v5 = vsel %vm1333_vm2, %v1329_v9, 0  ;;  %v2318_v9 = vld [vmem:[#allocation8 + $0x8] sm:$0xff]   ;;  %2171 = vmatpush3.bf16.msra.mxu1 %v2317_v1 }
 0x5eb   :  { %2172 = vmatprep.subr.bf16.mxu1 %v2318_v9 }
 0x5ee   :  { %2173 = vmatpush3.bf16.msra.mxu1 %v2318_v9 }
 0x6a2   :  { %v2144_v10 = vpop.f32.mrb[20].mxu0 }
 0x6a3   :  { %v1031_v12 = vpop.f32.mrb[21].mxu0 }
 0x6a4   :  { %v2145_v13 = vpop.f32.mrb[22].mxu0 }
 0x6a5   :  { %v1176_v14 = vpack.c.bf16 %v2145_v13, %v2144_v10  ;;  %v1034_v15 = vpop.f32.mrb[23].mxu0  ;;  %v2319_v10 = vld [vmem:[#allocation8 + $0x10] sm:$0xff]   ;;  %v2321_v13 = vld [vmem:[#allocation8 + $0x20] sm:$0xff]  }
 0x6a6   :  { %v1175_v16 = vpack.c.bf16 %v1034_v15, %v1031_v12  ;;  %2174 = vmatprep.subr.bf16.mxu1 %v2319_v10  ;;  %v2320_v12 = vld [vmem:[#allocation8 + $0x18] sm:$0xff]  }
 0x6a7   :  { %2175 = vmatpush3.bf16.msra.mxu1 %v2319_v10 }
 0x6a8   :  { %2149 = vmatmul.mubr.bf16.vlgmr.msra.gmra.mrb[24].mxu0 %v1175_v16  ;;  %2176 = vmatprep.subr.bf16.mxu1 %v2320_v12 }
 0x6a9   :  { %2153 = vmatpush3.bf16.xpose.msra.mxu0 %v1178_v18  ;;  %2154 = vmatprep.mubr.msk.bf16.mxu0 %vm2575_vm0, %v2574_v36 }
 0x6aa   :  { %2158 = vmatprep.subr.bf16.mxu0 %v2574_v36 }
 0x6ab   :  { %2177 = vmatpush3.bf16.msra.mxu1 %v2320_v12 }
 0x6ac   :  { %2178 = vmatprep.subr.bf16.mxu1 %v2321_v13 }
 0x6af   :  { %2179 = vmatpush3.bf16.msra.mxu1 %v2321_v13 }
 0x6b0   :  { %2155 = vmatmul.mubr.bf16.vlgmr.msra.gmra.mrb[28].mxu0 %v1176_v14 }
 0x6b1   :  { %2159 = vmatpush3.bf16.msra.mxu0 %v1335_v20  ;;  %2160 = vmatprep.mubr.msk.bf16.mxu0 %vm2575_vm0, %v2574_v36 }
 0x6b2   :  { %2164 = vmatprep.subr.bf16.mxu0 %v2574_v36 }
 0x77b   :  { %v1213_v21 = vpop.f32.mrb[24].mxu0 }
 0x77c   :  { %v1261_v23 = vmul.f32 0.17677669, %v1213_v21  ;;  %v2150_v24 = vpop.f32.mrb[25].mxu0 }
 0x77d   :  { %v1216_v25 = vpop.f32.mrb[26].mxu0 }
 0x77e   :  { %v1262_v26 = vmul.f32 0.17677669, %v1216_v25  ;;  %v2151_v27 = vpop.f32.mrb[27].mxu0  ;;  %v1277_v28 = vadd.f32 %v1958_v22, %v1261_v23 }
 0x780   :  { %v1282_v29 = vsel %vm1281_vm3, %v1277_v28, -inf  ;;  %v1278_v31 = vadd.f32 %v1958_v22, %v1262_v26 }
 0x781   :  { %1283 = vmax.xlane.f32.xlu0 %v1282_v29  ;;  %v2322_v29 = vld [vmem:[#allocation8 + $0x28] sm:$0xff]  }
 0x782   :  { %v1285_v32 = vsel %vm1281_vm3, %v1278_v31, -inf  ;;  %2180 = vmatprep.subr.bf16.mxu1 %v2322_v29 }
 0x783   :  { %1286 = vmax.xlane.f32.xlu1 %v1285_v32  ;;  %v1254_v33 = vpop.f32.mrb[28].mxu0  ;;  %2181 = vmatpush3.bf16.msra.mxu1 %v2322_v29  ;;  %v2324_v32 = vld [vmem:[#allocation8 + $0x38] sm:$0xff]  }
 0x784   :  { %v1263_v35 = vmul.f32 0.17677669, %v1254_v33  ;;  %v2156_v37 = vpop.f32.mrb[29].mxu0 }
 0x785   :  { %v1257_v38 = vpop.f32.mrb[30].mxu0 }
 0x786   :  { %v1264_v39 = vmul.f32 0.17677669, %v1257_v38  ;;  %v2157_v40 = vpop.f32.mrb[31].mxu0  ;;  %v1279_v41 = vadd.f32 %v1959_v34, %v1263_v35 }
 0x788   :  { %v1288_v30 = vsel %vm1281_vm3, %v1279_v41, -inf  ;;  %v1280_v42 = vadd.f32 %v1959_v34, %v1264_v39 }
 0x789   :  { %1289 = vmax.xlane.f32.xlu0 %v1288_v30 }
 0x78a   :  { %v1291_v43 = vsel %vm1281_vm3, %v1280_v42, -inf }
 0x78b   :  { %1292 = vmax.xlane.f32.xlu1 %v1291_v43 }
 0x80e   :  { %v1284_v44 = vpop.xlane.xlu0 %1283 }
 0x80f   :  { %v1294_v45 = vsub.f32 %v1277_v28, %v1284_v44 }
 0x810   :  { %v1287_v46 = vpop.xlane.xlu1 %1286 }
 0x811   :  { %v1298_v47 = vmul.f32 1.442695, %v1294_v45  ;;  %v1295_v48 = vsub.f32 %v1278_v31, %v1287_v46  ;;  %v2323_v31 = vld [vmem:[#allocation8 + $0x30] sm:$0xff]  }
 0x812   :  { %2182 = vmatprep.subr.bf16.mxu1 %v2323_v31 }
 0x813   :  { %2365 = vpow2.f32 %v1298_v47  ;;  %v1300_v49 = vmul.f32 1.442695, %v1295_v48  ;;  %2183 = vmatpush3.bf16.msra.mxu1 %v2323_v31 }
 0x814   :  { %2184 = vmatprep.subr.bf16.mxu1 %v2324_v32 }
 0x815   :  { %2367 = vpow2.f32 %v1300_v49  ;;  %v2325_v49 = vld [vmem:[#allocation10] sm:$0xff]  }
 0x816   :  { %v1290_v50 = vpop.xlane.xlu0 %1289 }
 0x817   :  { %v1296_v51 = vsub.f32 %v1279_v41, %v1290_v50  ;;  %2185 = vmatpush3.bf16.msra.mxu1 %v2324_v32  ;;  %v2326_v50 = vld [vmem:[#allocation10 + $0x8] sm:$0xff]   ;;  %v1582_v32 = vsub.s32 4, %v2863_v54 }
 0x818   :  { %v1293_v52 = vpop.xlane.xlu1 %1292 }
 0x819   :  { %v1302_v53 = vmul.f32 1.442695, %v1296_v51  ;;  %v1297_v55 = vsub.f32 %v1280_v42, %v1293_v52  ;;  %v2327_v51 = vld [vmem:[#allocation10 + $0x10] sm:$0xff]   ;;  %v2328_v52 = vld [vmem:[#allocation10 + $0x18] sm:$0xff]  }
 0x81b   :  { %2369 = vpow2.f32 %v1302_v53  ;;  %v1304_v57 = vmul.f32 1.442695, %v1297_v55  ;;  %v2329_v53 = vld [vmem:[#allocation10 + $0x20] sm:$0xff]   ;;  %v2330_v55 = vld [vmem:[#allocation10 + $0x28] sm:$0xff]  }
 0x81d   :  { %v2366_v58 = vpop.eup %2365  ;;  %2371 = vpow2.f32 %v1304_v57  ;;  %v2331_v57 = vld [vmem:[#allocation10 + $0x30] sm:$0xff]  }
 0x81e   :  { %v1306_v59 = vsel %vm1281_vm3, %v2366_v58, 0.0 }
 0x81f   :  { %v2368_v3 = vpop.eup %2367  ;;  %1307 = vadd.xlane.f32.xlu0 %v1306_v59 }
 0x820   :  { %v1309_v4 = vsel %vm1281_vm3, %v2368_v3, 0.0 }
 0x821   :  { %1310 = vadd.xlane.f32.xlu1 %v1309_v4 }
 0x825   :  { %v2370_v6 = vpop.eup %2369 }
 0x826   :  { %v1312_v0 = vsel %vm1281_vm3, %v2370_v6, 0.0 }
 0x827   :  { %v2372_v7 = vpop.eup %2371  ;;  %1313 = vadd.xlane.f32.xlu0 %v1312_v0 }
 0x828   :  { %v1315_v8 = vsel %vm1281_vm3, %v2372_v7, 0.0 }
 0x829   :  { %1316 = vadd.xlane.f32.xlu1 %v1315_v8 }
 0x8ac   :  { %v1308_v14 = vpop.xlane.xlu0 %1307 }
 0x8ad   :  { %2373 = vrcp.f32 %v1308_v14 }
 0x8ae   :  { %v1311_v15 = vpop.xlane.xlu1 %1310 }
 0x8af   :  { %2375 = vrcp.f32 %v1311_v15 }
 0x8b4   :  { %v1314_v16 = vpop.xlane.xlu0 %1313 }
 0x8b5   :  { %2377 = vrcp.f32 %v1314_v16 }
 0x8b6   :  { %v1317_v18 = vpop.xlane.xlu1 %1316 }
 0x8b7   :  { %v2374_v19 = vpop.eup %2373  ;;  %2379 = vrcp.f32 %v1317_v18 }
 0x8b8   :  { %v1322_v21 = vmul.f32 %v2374_v19, %v2366_v58  ;;  %v2332_v58 = vld [vmem:[#allocation10 + $0x38] sm:$0xff]  }
 0x8b9   :  { %v2376_v20 = vpop.eup %2375 }
 0x8ba   :  { %v1323_v22 = vmul.f32 %v2376_v20, %v2368_v3 }
 0x8bc   :  { %v1326_v23 = vpack.c.bf16 %v1323_v22, %v1322_v21 }
 0x8be   :  { %2161 = vmatmul.mubr.msk.bf16.vlgmr.msra.gmra.mrb[32].mxu0 %vm1281_vm3, %v1326_v23 }
 0x8bf   :  { %v2378_v24 = vpop.eup %2377  ;;  %2165 = vmatpush3.bf16.msra.mxu0 %v2947_v5  ;;  %2166 = vmatprep.mubr.msk.bf16.mxu0 %vm2575_vm0, %v2574_v36 }
 0x8c0   :  { %v1324_v26 = vmul.f32 %v2378_v24, %v2370_v6  ;;  %2190 = vmatprep.subr.bf16.mxu0 %v2325_v49 }
 0x8c1   :  { %v2380_v25 = vpop.eup %2379 }
 0x8c2   :  { %v1325_v27 = vmul.f32 %v2380_v25, %v2372_v7 }
 0x8c4   :  { %v1327_v28 = vpack.c.bf16 %v1325_v27, %v1324_v26 }
 0x8c6   :  { %2167 = vmatmul.mubr.msk.bf16.vlgmr.msra.gmra.mrb[36].mxu0 %vm1281_vm3, %v1327_v28 }
 0x8c7   :  { %2191 = vmatpush3.bf16.msra.mxu0 %v2325_v49 }
 0x8c8   :  { %2192 = vmatprep.subr.bf16.mxu0 %v2326_v50 }
 0x8cb   :  { %2193 = vmatpush3.bf16.msra.mxu0 %v2326_v50 }
 0x8cc   :  { %2194 = vmatprep.subr.bf16.mxu0 %v2327_v51 }
 0x8cf   :  { %2195 = vmatpush3.bf16.msra.mxu0 %v2327_v51 }
 0x8d0   :  { %2196 = vmatprep.subr.bf16.mxu0 %v2328_v52 }
 0x8d3   :  { %2197 = vmatpush3.bf16.msra.mxu0 %v2328_v52 }
 0x8d4   :  { %2198 = vmatprep.subr.bf16.mxu0 %v2329_v53 }
 0x8d7   :  { %2199 = vmatpush3.bf16.msra.mxu0 %v2329_v53 }
 0x8d8   :  { %2200 = vmatprep.subr.bf16.mxu0 %v2330_v55 }
 0x8db   :  { %2201 = vmatpush3.bf16.msra.mxu0 %v2330_v55 }
 0x8dc   :  { %2202 = vmatprep.subr.bf16.mxu0 %v2331_v57 }
 0x8df   :  { %2203 = vmatpush3.bf16.msra.mxu0 %v2331_v57 }
 0x8e0   :  { %2204 = vmatprep.subr.bf16.mxu0 %v2332_v58 }
 0x8e3   :  { %2205 = vmatpush3.bf16.msra.mxu0 %v2332_v58  ;;  %v2334_v58 = vld [vmem:[#allocation11 + $0x8] sm:$0xff]  }
 0x991   :  { %v1371_v33 = vpop.f32.mrb[32].mxu0 }
 0x992   :  { %v2162_v5 = vpop.f32.mrb[33].mxu0 }
 0x993   :  { %v1374_v34 = vpop.f32.mrb[34].mxu0 }
 0x994   :  { %v1425_v35 = vpack.c.bf16 %v1374_v34, %v1371_v33  ;;  %v2163_v36 = vpop.f32.mrb[35].mxu0  ;;  %v1594_v33 = vsub.s32 3, %v2863_v54  ;;  %v1583_v34 = vrot.slane %v2871_v61, %v1582_v32 }
 0x996   :  { %2186 = vmatprep.mubr.bf16.mxu1 %v1425_v35  ;;  %v1599_v61 = vrot.slane %v2880_v11, %v1594_v33  ;;  %v2336_v11 = vld [vmem:[#allocation11 + $0x18] sm:$0xff]  }
 0x999   :  { %v1418_v37 = vpop.f32.mrb[36].mxu0 }
 0x99a   :  { %v2168_v38 = vpop.f32.mrb[37].mxu0 }
 0x99b   :  { %v1421_v39 = vpop.f32.mrb[38].mxu0 }
 0x99c   :  { %v1426_v40 = vpack.c.bf16 %v1421_v39, %v1418_v37  ;;  %v2169_v41 = vpop.f32.mrb[39].mxu0  ;;  %v1595_v39 = vrot.slane %v2868_v56, %v1594_v33 }
 0x99e   :  { %2187 = vmatmul.mubr.bf16.vlgmr.msra.gmra.mrb[16].mxu1 %v1426_v40 }
 0xa71   :  { %v2188_v30 = vpop.f32.mrb[16].mxu1 }
 0xa72   :  { %v2975_v42 = vadd.f32 %v2188_v30, %v2938_v2  ;;  %v1509_v43 = vpop.f32.mrb[17].mxu1 }
 0xa73   :  { %v2189_v44 = vpop.f32.mrb[18].mxu1  ;;  %v2982_v47 = vadd.f32 %v1509_v43, %v2932_v62  ;;  %v1587_v43 = vrot.slane %v2885_v17, %v1582_v32  ;;  %v2333_v17 = vld [vmem:[#allocation11] sm:$0xff]  }
 0xa74   :  { %v2978_v45 = vadd.f32 %v2189_v44, %v2929_v60  ;;  %1532 = vadd.xlane.f32.xlu0 %v2975_v42  ;;  %v1512_v46 = vpop.f32.mrb[19].mxu1  ;;  %v1542_v62 = vmul.f32 %v2975_v42, %v2975_v42  ;;  %2210 = vmatprep.subr.bf16.mxu1 %v2333_v17 }
 0xa75   :  { %v2986_v48 = vadd.f32 %v1512_v46, %v2935_v63  ;;  %v1540_v2 = vmul.f32 %v2982_v47, %v2982_v47  ;;  %2211 = vmatpush3.bf16.msra.mxu1 %v2333_v17 }
 0xa76   :  { %1534 = vadd.xlane.f32.xlu1 %v2978_v45  ;;  %v1543_v63 = vmul.f32 %v2978_v45, %v2978_v45  ;;  %2212 = vmatprep.subr.bf16.mxu1 %v2334_v58 }
 0xa77   :  { %v1541_v60 = vmul.f32 %v2986_v48, %v2986_v48 }
 0xa78   :  { %1528 = vadd.xlane.f32.xlu0 %v2982_v47 }
 0xa79   :  { %2213 = vmatpush3.bf16.msra.mxu1 %v2334_v58 }
 0xa7a   :  { %1530 = vadd.xlane.f32.xlu1 %v2986_v48 }
 0xa7c   :  { %1544 = vadd.xlane.f32.xlu0 %v1540_v2 }
 0xa7e   :  { %1546 = vadd.xlane.f32.xlu1 %v1541_v60 }
 0xa80   :  { %1548 = vadd.xlane.f32.xlu0 %v1542_v62 }
 0xa82   :  { %1550 = vadd.xlane.f32.xlu1 %v1543_v63 }
 0xb01   :  { %v1533_v59 = vpop.xlane.xlu0 %1532 }
 0xb02   :  { %v1538_v1 = vmul.f32 0.03125, %v1533_v59  ;;  %v2335_v59 = vld [vmem:[#allocation11 + $0x10] sm:$0xff]  }
 0xb03   :  { %v1535_v3 = vpop.xlane.xlu1 %1534  ;;  %2214 = vmatprep.subr.bf16.mxu1 %v2335_v59 }
 0xb04   :  { %v1539_v12 = vmul.f32 0.03125, %v1535_v3  ;;  %v1558_v19 = vmul.f32 %v1538_v1, %v1538_v1  ;;  %v1566_v40 = vsub.f32 %v2975_v42, %v1538_v1  ;;  %2215 = vmatpush3.bf16.msra.mxu1 %v2335_v59  ;;  %v2337_v3 = vld [vmem:[#allocation11 + $0x20] sm:$0xff]  }
 0xb05   :  { %v1529_v4 = vpop.xlane.xlu0 %1528  ;;  %2216 = vmatprep.subr.bf16.mxu1 %v2336_v11  ;;  %v1861_v59 = vld [vmem:[%s3058_s0] sm:$0xff] }
 0xb06   :  { %v1536_v6 = vmul.f32 0.03125, %v1529_v4  ;;  %v1559_v23 = vmul.f32 %v1539_v12, %v1539_v12  ;;  %v1567_v46 = vsub.f32 %v2978_v45, %v1539_v12  ;;  %v2338_v4 = vld [vmem:[#allocation11 + $0x28] sm:$0xff]  }
 0xb07   :  { %v1531_v0 = vpop.xlane.xlu1 %1530 }
 0xb08   :  { %v1537_v7 = vmul.f32 0.03125, %v1531_v0  ;;  %v1556_v9 = vmul.f32 %v1536_v6, %v1536_v6  ;;  %v1564_v5 = vsub.f32 %v2982_v47, %v1536_v6  ;;  %2217 = vmatpush3.bf16.msra.mxu1 %v2336_v11  ;;  %v2339_v6 = vld [vmem:[#allocation11 + $0x30] sm:$0xff]   ;;  %v2340_v0 = vld [vmem:[#allocation11 + $0x38] sm:$0xff]  }
 0xb09   :  { %v1545_v8 = vpop.xlane.xlu0 %1544  ;;  %2218 = vmatprep.subr.bf16.mxu1 %v2337_v3 }
 0xb0a   :  { %v1552_v10 = vmul.f32 0.03125, %v1545_v8  ;;  %v1557_v14 = vmul.f32 %v1537_v7, %v1537_v7  ;;  %v1565_v36 = vsub.f32 %v2986_v48, %v1537_v7 }
 0xb0b   :  { %v1547_v13 = vpop.xlane.xlu1 %1546 }
 0xb0c   :  { %v1560_v15 = vsub.f32 %v1552_v10, %v1556_v9  ;;  %v1553_v16 = vmul.f32 0.03125, %v1547_v13  ;;  %2219 = vmatpush3.bf16.msra.mxu1 %v2337_v3 }
 0xb0d   :  { %v1549_v18 = vpop.xlane.xlu0 %1548  ;;  %2220 = vmatprep.subr.bf16.mxu1 %v2338_v4 }
 0xb0e   :  { %v1568_v20 = vadd.f32 1e-06, %v1560_v15  ;;  %v1561_v21 = vsub.f32 %v1553_v16, %v1557_v14  ;;  %v1554_v22 = vmul.f32 0.03125, %v1549_v18 }
 0xb0f   :  { %v1551_v24 = vpop.xlane.xlu1 %1550 }
 0xb10   :  { %2381 = vrsqrt.f32 %v1568_v20  ;;  %v1569_v25 = vadd.f32 1e-06, %v1561_v21  ;;  %v1562_v26 = vsub.f32 %v1554_v22, %v1558_v19  ;;  %v1555_v27 = vmul.f32 0.03125, %v1551_v24  ;;  %2221 = vmatpush3.bf16.msra.mxu1 %v2338_v4 }
 0xb11   :  { %2222 = vmatprep.subr.bf16.mxu1 %v2339_v6 }
 0xb12   :  { %2383 = vrsqrt.f32 %v1569_v25  ;;  %v1570_v28 = vadd.f32 1e-06, %v1562_v26  ;;  %v1563_v29 = vsub.f32 %v1555_v27, %v1559_v23 }
 0xb14   :  { %2385 = vrsqrt.f32 %v1570_v28  ;;  %v1571_v31 = vadd.f32 1e-06, %v1563_v29  ;;  %2223 = vmatpush3.bf16.msra.mxu1 %v2339_v6  ;;  %v1864_v6 = vld [vmem:[%s3058_s0 + $0x18] sm:$0xff] }
 0xb15   :  { %2224 = vmatprep.subr.bf16.mxu1 %v2340_v0 }
 0xb16   :  { %2387 = vrsqrt.f32 %v1571_v31 }
 0xb18   :  { %2225 = vmatpush3.bf16.msra.mxu1 %v2340_v0 }
 0xb1a   :  { %v2382_v35 = vpop.eup %2381 }
 0xb1b   :  { %v1576_v37 = vmul.f32 %v2382_v35, %v1564_v5 }
 0xb1c   :  { %v2384_v38 = vpop.eup %2383 }
 0xb1d   :  { %v1577_v41 = vmul.f32 %v2384_v38, %v1565_v36  ;;  %v1588_v30 = vmul.f32 %v1583_v34, %v1576_v37 }
 0xb1e   :  { %v2386_v44 = vpop.eup %2385 }
 0xb1f   :  { %v1589_v2 = vmul.f32 %v1583_v34, %v1577_v41  ;;  %v1578_v60 = vmul.f32 %v2386_v44, %v1566_v40  ;;  %v1600_v63 = vadd.f32 %v1595_v39, %v1588_v30 }
 0xb20   :  { %v2388_v62 = vpop.eup %2387 }
 0xb21   :  { %v1601_v49 = vadd.f32 %v1595_v39, %v1589_v2  ;;  %v1579_v50 = vmul.f32 %v2388_v62, %v1567_v46  ;;  %v1590_v51 = vmul.f32 %v1587_v43, %v1578_v60 }
 0xb23   :  { %v1604_v52 = vpack.c.bf16 %v1601_v49, %v1600_v63  ;;  %v1591_v56 = vmul.f32 %v1587_v43, %v1579_v50  ;;  %v1602_v53 = vadd.f32 %v1599_v61, %v1590_v51  ;;  %v1840_v63 = vsub.s32 5, %v2863_v54  ;;  %v2397_v49 = vld [vmem:[%s3062_s4 + $0x8] sm:$0x3f]  ;;  %v2398_v51 = vld [vmem:[%s3062_s4] sm:$0x3f] }
 0xb25   :  { %2206 = vmatprep.mubr.bf16.mxu0 %v1604_v52  ;;  %v1603_v55 = vadd.f32 %v1599_v61, %v1591_v56  ;;  %v1845_v50 = vrot.slane %v2397_v49, %v1840_v63  ;;  %v1841_v52 = vrot.slane %v2398_v51, %v1840_v63 }
 0xb27   :  { %v1605_v57 = vpack.c.bf16 %v1603_v55, %v1602_v53 }
 0xb29   :  { %2207 = vmatmul.mubr.bf16.vlgmr.msra.gmra.mrb[40].mxu0 %v1605_v57  ;;  %v1863_v57 = vld [vmem:[%s3058_s0 + $0x10] sm:$0xff] }
 0xbfc   :  { %v2208_v7 = vpop.f32.mrb[40].mxu0 }
 0xbfd   :  { %v1705_v8 = vmul.f32 %v2208_v7, %v2208_v7  ;;  %v1688_v1 = vpop.f32.mrb[41].mxu0 }
 0xbfe   :  { %v1703_v9 = vmul.f32 %v1688_v1, %v1688_v1  ;;  %v2209_v10 = vpop.f32.mrb[42].mxu0 }
 0xbff   :  { %v1709_v12 = vmul.f32 %v2208_v7, %v1705_v8  ;;  %v1706_v13 = vmul.f32 %v2209_v10, %v2209_v10  ;;  %v1691_v14 = vpop.f32.mrb[43].mxu0  ;;  %v1862_v8 = vld [vmem:[%s3058_s0 + $0x8] sm:$0xff]  ;;  %s2531_s0 = scalar_lea.vmem %s1881_s15, 512 }
 0xc00   :  { %v1707_v15 = vmul.f32 %v1703_v9, %v1688_v1  ;;  %v1704_v16 = vmul.f32 %v1691_v14, %v1691_v14  ;;  %p2532_p6 = scmp.ne.s32.totalorder %s1881_s15, %s2531_s0  ;;  %p2537_p8 = scmp.lt.s32.totalorder %s2531_s0, %s2531_s0 }
 0xc01   :  { %v1713_v18 = vmul.f32 0.044715, %v1709_v12  ;;  %v1710_v19 = vmul.f32 %v2209_v10, %v1706_v13 }
 0xc02   :  { %v1711_v20 = vmul.f32 0.044715, %v1707_v15  ;;  %v1708_v21 = vmul.f32 %v1704_v16, %v1691_v14  ;;  %p2538_p9 = por %p2537_p8, %p2536_p7 }
 0xc03   :  { %v1717_v22 = vadd.f32 %v2208_v7, %v1713_v18  ;;  %v1714_v23 = vmul.f32 0.044715, %v1710_v19 }
 0xc04   :  { %v1715_v24 = vadd.f32 %v1711_v20, %v1688_v1  ;;  %v1712_v25 = vmul.f32 0.044715, %v1708_v21  ;;  %p2539_p10 = pnand %p2538_p9, %p2532_p6 }
 0xc05   :  { %v1721_v26 = vmul.f32 0.7978846, %v1717_v22  ;;  %v1718_v27 = vadd.f32 %v2209_v10, %v1714_v23 }
 0xc06   :  { %v1719_v28 = vmul.f32 0.7978846, %v1715_v24  ;;  %v1716_v29 = vadd.f32 %v1712_v25, %v1691_v14 }
 0xc07   :  { %2389 = vtanh.f32 %v1721_v26  ;;  %v1722_v31 = vmul.f32 0.7978846, %v1718_v27 }
 0xc08   :  { %2391 = vtanh.f32 %v1719_v28  ;;  %v1720_v32 = vmul.f32 0.7978846, %v1716_v29 }
 0xc09   :  { %2393 = vtanh.f32 %v1722_v31 }
 0xc0a   :  { %2395 = vtanh.f32 %v1720_v32 }
 0xc11   :  { %v2390_v33 = vpop.eup %2389 }
 0xc12   :  { %v2392_v5 = vpop.eup %2391  ;;  %v1729_v34 = vadd.f32 1.0, %v2390_v33 }
 0xc13   :  { %v2394_v35 = vpop.eup %2393  ;;  %v1727_v36 = vadd.f32 1.0, %v2392_v5 }
 0xc14   :  { %v2396_v37 = vpop.eup %2395  ;;  %v1733_v38 = vmul.f32 0.5, %v1729_v34  ;;  %v1730_v39 = vadd.f32 1.0, %v2394_v35 }
 0xc15   :  { %v1731_v40 = vmul.f32 0.5, %v1727_v36  ;;  %v1728_v41 = vadd.f32 1.0, %v2396_v37 }
 0xc16   :  { %v1734_v30 = vmul.f32 0.5, %v1730_v39  ;;  %v1737_v44 = vmul.f32 %v2208_v7, %v1733_v38 }
 0xc17   :  { %v1732_v43 = vmul.f32 0.5, %v1728_v41  ;;  %v1735_v2 = vmul.f32 %v1731_v40, %v1688_v1 }
 0xc18   :  { %v1738_v46 = vmul.f32 %v2209_v10, %v1734_v30 }
 0xc19   :  { %v1736_v60 = vmul.f32 %v1732_v43, %v1691_v14 }
 0xc1a   :  { %v1740_v62 = vpack.c.bf16 %v1738_v46, %v1737_v44 }
 0xc1b   :  { %v1739_v61 = vpack.c.bf16 %v1736_v60, %v1735_v2 }
 0xc1d   :  { %2226 = vmatprep.mubr.bf16.mxu1 %v1739_v61 }
 0xc1e   :  { %2227 = vmatmul.mubr.bf16.vlgmr.msra.gmra.mrb[20].mxu1 %v1740_v62 }
 0xcf1   :  { %v2228_v56 = vpop.f32.mrb[20].mxu1 }
 0xcf2   :  { %v1848_v53 = vmul.f32 %v2228_v56, %v1845_v50  ;;  %v1823_v55 = vpop.f32.mrb[21].mxu1 }
 0xcf3   :  { %v1846_v17 = vmul.f32 %v1841_v52, %v1823_v55  ;;  %v2229_v58 = vpop.f32.mrb[22].mxu1 }
 0xcf4   :  { %v1852_v54 = vadd.f32 %v1848_v53, %v2975_v42  ;;  %v1849_v11 = vmul.f32 %v2229_v58, %v1845_v50  ;;  %v1826_v3 = vpop.f32.mrb[23].mxu1 }
 0xcf5   :  { %v1850_v4 = vadd.f32 %v1846_v17, %v2982_v47  ;;  %v1847_v0 = vmul.f32 %v1841_v52, %v1826_v3 }
 0xcf6   :  { %1856 = vst [vmem:[%s3070_s12 + $0x10] sm:$0xff] %v1852_v54  ;;  %v1867_v7 = vsub.f32 %v1852_v54, %v1863_v57  ;;  %v1853_v42 = vadd.f32 %v1849_v11, %v2978_v45 }
 0xcf7   :  { %1854 = vst [vmem:[%s3070_s12] sm:$0xff] %v1850_v4  ;;  %v1865_v47 = vsub.f32 %v1850_v4, %v1861_v59  ;;  %v1851_v1 = vadd.f32 %v1847_v0, %v2986_v48 }
 0xcf8   :  { %1871 = vst [vmem:[#allocation13 + $0x10] sm:$0xff] %v1867_v7  ;;  %1857 = vst [vmem:[%s3070_s12 + $0x18] sm:$0xff] %v1853_v42  ;;  %v1868_v9 = vsub.f32 %v1853_v42, %v1864_v6 }
 0xcf9   :  { %1869 = vst [vmem:[#allocation13] sm:$0xff] %v1865_v47  ;;  %1855 = vst [vmem:[%s3070_s12 + $0x8] sm:$0xff] %v1851_v1  ;;  %v1866_v45 = vsub.f32 %v1851_v1, %v1862_v8 }
 0xcfa   :  { %1872 = vst [vmem:[#allocation13 + $0x18] sm:$0xff] %v1868_v9 }
 0xcfb   :  { %1870 = vst [vmem:[#allocation13 + $0x8] sm:$0xff] %v1866_v45 }
 0xcfc   :  { %2542 = shalt.err (!%p2539_p10)
}
 0xcfd   :  { %s2543_s19 = scalar_lea.hbm %s3071_s13, 512 }
 0xcfe   :  { %p2544_p11 = scmp.ne.s32.totalorder %s3071_s13, %s2543_s19  ;;  %p2547_p12 = scmp.lt.u32.totalorder %s2543_s19, %s3071_s13 }
 0xd00   :  { %p2549_p13 = pnand %p2547_p12, %p2544_p11 }
 0xd02   :  { %2552 = shalt.err (!%p2549_p13)
}
 0xd03   :  { %1886 = dma.vmem_to_hbm [thread:$0]  %s1881_s15, 512, %s3071_s13, [#allocation4], %s2569_s6, %s2569_s6, %s2570_s18  }
 0xd04   :  { %2561 = dma.done.wait [#allocation4], 512  }
 0xd05   :  { %2562 = vsyncadd [#allocation4], 4294966784 }
 0xd06   :  { %1892 = vsyncpa [#allocation3], 1 }
 0xd07   :  { %1893 = vsyncpa [#allocation6], 1 }
 0xd08   :  { %1894 = vsyncpa [#allocation9], 1 }
 0xd09   :  { %1895 = vsyncpa [#allocation12], 1 }
 0xd0a   :  { %1896 = vsyncpa [#allocation4], 1 }

</bundles_post_ra>
